<compile_context>
chip_gen: v7x
topology: tpu7x:2x2x1
jax: 0.10.0
libtpu: 0.0.40
codegen_flags: <defaults>
</compile_context>

<pallas_src>
import jax
import jax.numpy as jnp
from jax.experimental import pallas as pl
from jax.experimental.pallas import tpu as pltpu

EMBED_DIM = 512
MLP_DIM = 512


def _mlps_kernel(v_ref, t_ref,
                 wv1_ref, bv1_ref, wv2_ref, bv2_ref,
                 wt1_ref, bt1_ref, wt2_ref, bt2_ref,
                 o_ref):
    # Cast activations to bf16 so all four matmuls run in the MXU's native
    # dtype; accumulate in f32 (preferred_element_type); bias-add / tanh in f32.
    v = v_ref[...].astype(jnp.bfloat16)
    t = t_ref[...].astype(jnp.bfloat16)

    # Visual branch: Linear -> tanh -> Linear -> tanh
    hv = jnp.tanh(jnp.dot(v, wv1_ref[...], preferred_element_type=jnp.float32)
                  + bv1_ref[...])
    ov = jnp.tanh(jnp.dot(hv.astype(jnp.bfloat16), wv2_ref[...],
                          preferred_element_type=jnp.float32) + bv2_ref[...])

    # Textual branch: Linear -> tanh -> Linear -> tanh
    ht = jnp.tanh(jnp.dot(t, wt1_ref[...], preferred_element_type=jnp.float32)
                  + bt1_ref[...])
    ot = jnp.tanh(jnp.dot(ht.astype(jnp.bfloat16), wt2_ref[...],
                          preferred_element_type=jnp.float32) + bt2_ref[...])

    # diag(ov @ ot.T) == row-wise dot product, then sigmoid.
    sim = jnp.sum(ov * ot, axis=-1, keepdims=True)          # (tm, 1) f32
    o_ref[...] = jax.nn.sigmoid(sim)


def _round_up(x, m):
    return (x + m - 1) // m * m


def mlps_forward(visual_embedding, textual_embedding, params, *, block_rows=512):
    """Fused, batch-tiled Pallas forward. Returns sigmoid(diag similarity), (N,)."""
    N = visual_embedding.shape[0]
    block_rows = _round_up(block_rows, 128)
    # Batch tile: multiple of 128 rows (sublane/MXU friendly), capped at block_rows.
    tm = min(block_rows, _round_up(max(N, 1), 128))
    n_pad = _round_up(N, tm)
    if n_pad != N:
        pad = ((0, n_pad - N), (0, 0))
        visual_embedding = jnp.pad(visual_embedding, pad)
        textual_embedding = jnp.pad(textual_embedding, pad)

    grid = (n_pad // tm,)

    act_spec = pl.BlockSpec((tm, EMBED_DIM), lambda i: (i, 0))
    # Constant index_map -> weights/biases are fetched once and stay VMEM-resident.
    w_spec = lambda shape: pl.BlockSpec(shape, lambda i: (0, 0))

    out = pl.pallas_call(
        _mlps_kernel,
        out_shape=jax.ShapeDtypeStruct((n_pad, 1), jnp.float32),
        grid=grid,
        in_specs=[
            act_spec, act_spec,
            w_spec((EMBED_DIM, MLP_DIM)), w_spec((1, MLP_DIM)),
            w_spec((MLP_DIM, EMBED_DIM)), w_spec((1, EMBED_DIM)),
            w_spec((EMBED_DIM, MLP_DIM)), w_spec((1, MLP_DIM)),
            w_spec((MLP_DIM, EMBED_DIM)), w_spec((1, EMBED_DIM)),
        ],
        out_specs=pl.BlockSpec((tm, 1), lambda i: (i, 0)),
        compiler_params=pltpu.CompilerParams(
            dimension_semantics=("parallel",),
            vmem_limit_bytes=48 * 1024 * 1024),
    )(visual_embedding, textual_embedding,
      params["wv1"], params["bv1"], params["wv2"], params["bv2"],
      params["wt1"], params["bt1"], params["wt2"], params["bt2"])
    return out[:N, 0]


def init_params(key):
    """PyTorch-style uniform(+-1/sqrt(fan_in)) init.

    Weights are returned pre-transposed to (in, out) and cast to bf16 (the
    kernel's MXU dtype); biases stay f32 with shape (1, out)."""
    keys = jax.random.split(key, 8)

    def linear(kw, kb, fan_in, fan_out):
        bound = 1.0 / jnp.sqrt(jnp.float32(fan_in))
        w = jax.random.uniform(kw, (fan_in, fan_out), jnp.float32, -bound, bound)
        b = jax.random.uniform(kb, (1, fan_out), jnp.float32, -bound, bound)
        return w.astype(jnp.bfloat16), b

    wv1, bv1 = linear(keys[0], keys[1], EMBED_DIM, MLP_DIM)
    wv2, bv2 = linear(keys[2], keys[3], MLP_DIM, EMBED_DIM)
    wt1, bt1 = linear(keys[4], keys[5], EMBED_DIM, MLP_DIM)
    wt2, bt2 = linear(keys[6], keys[7], MLP_DIM, EMBED_DIM)
    return dict(wv1=wv1, bv1=bv1, wv2=wv2, bv2=bv2,
                wt1=wt1, bt1=bt1, wt2=wt2, bt2=bt2)


def _reference(v, t, p):
    """Plain-JAX reference with the same bf16-weight / f32-accumulate semantics."""
    def branch(x, w1, b1, w2, b2):
        h = jnp.tanh(jnp.dot(x.astype(jnp.bfloat16), w1,
                             preferred_element_type=jnp.float32) + b1)
        return jnp.tanh(jnp.dot(h.astype(jnp.bfloat16), w2,
                                preferred_element_type=jnp.float32) + b2)

    ov = branch(v, p["wv1"], p["bv1"], p["wv2"], p["bv2"])
    ot = branch(t, p["wt1"], p["bt1"], p["wt2"], p["bt2"])
    # diag(ov @ ot.T) == row-wise dot (the module's x[eye > 0.5] path).
    return jax.nn.sigmoid(jnp.sum(ov * ot, axis=-1))


if __name__ == "__main__":
    key = jax.random.PRNGKey(0)
    k_params, k_v, k_t = jax.random.split(key, 3)

    N = 8  # small batch of (visual, textual) embedding pairs
    params = init_params(k_params)
    visual = jax.random.normal(k_v, (N, EMBED_DIM), jnp.float32)
    textual = jax.random.normal(k_t, (N, EMBED_DIM), jnp.float32)

    out = mlps_forward(visual, textual, params)
    out = jax.block_until_ready(out)

    ref = _reference(visual, textual, params)
    assert out.shape == (N,)
    assert jnp.allclose(out, ref, atol=1e-4, rtol=1e-4), (
        float(jnp.max(jnp.abs(out - ref))))

    print("KERNEL_OK")
</pallas_src>

<mosaic_0001>
module attributes {stable_mosaic.version = 11 : i64} {
  func.func @_mlps_kernel(%arg0: i32, %arg1: memref<128x512xf32, #tpu.memory_space<vmem>>, %arg2: memref<128x512xf32, #tpu.memory_space<vmem>>, %arg3: memref<512x512xbf16, #tpu.memory_space<vmem>>, %arg4: memref<1x512xf32, #tpu.memory_space<vmem>>, %arg5: memref<512x512xbf16, #tpu.memory_space<vmem>>, %arg6: memref<1x512xf32, #tpu.memory_space<vmem>>, %arg7: memref<512x512xbf16, #tpu.memory_space<vmem>>, %arg8: memref<1x512xf32, #tpu.memory_space<vmem>>, %arg9: memref<512x512xbf16, #tpu.memory_space<vmem>>, %arg10: memref<1x512xf32, #tpu.memory_space<vmem>>, %arg11: memref<128x1xf32, #tpu.memory_space<vmem>>) attributes {dimension_semantics = [#tpu.dimension_semantics<parallel>], iteration_bounds = array<i64: 1>, scalar_prefetch = 0 : i64, scratch_operands = 0 : i64, tpu.core_type = #tpu.core_type<tc>, window_params = [{transform_indices = @transform_0, window_bounds = array<i64: 128, 512>}, {transform_indices = @transform_1, window_bounds = array<i64: 128, 512>}, {pipeline_mode = #tpu.pipeline_mode<synchronous>, transform_indices = @transform_2, window_bounds = array<i64: 512, 512>}, {pipeline_mode = #tpu.pipeline_mode<synchronous>, transform_indices = @transform_3, window_bounds = array<i64: 1, 512>}, {pipeline_mode = #tpu.pipeline_mode<synchronous>, transform_indices = @transform_4, window_bounds = array<i64: 512, 512>}, {pipeline_mode = #tpu.pipeline_mode<synchronous>, transform_indices = @transform_5, window_bounds = array<i64: 1, 512>}, {pipeline_mode = #tpu.pipeline_mode<synchronous>, transform_indices = @transform_6, window_bounds = array<i64: 512, 512>}, {pipeline_mode = #tpu.pipeline_mode<synchronous>, transform_indices = @transform_7, window_bounds = array<i64: 1, 512>}, {pipeline_mode = #tpu.pipeline_mode<synchronous>, transform_indices = @transform_8, window_bounds = array<i64: 512, 512>}, {pipeline_mode = #tpu.pipeline_mode<synchronous>, transform_indices = @transform_9, window_bounds = array<i64: 1, 512>}, {transform_indices = @transform_10, window_bounds = array<i64: 128, 1>}]} {
    %c0 = arith.constant 0 : index
    %c0_0 = arith.constant 0 : index
    %0 = vector.load %arg1[%c0, %c0_0] : memref<128x512xf32, #tpu.memory_space<vmem>>, vector<128x512xf32>
    %1 = arith.truncf %0 : vector<128x512xf32> to vector<128x512xbf16>
    %c0_1 = arith.constant 0 : index
    %c0_2 = arith.constant 0 : index
    %2 = vector.load %arg2[%c0_1, %c0_2] : memref<128x512xf32, #tpu.memory_space<vmem>>, vector<128x512xf32>
    %3 = arith.truncf %2 : vector<128x512xf32> to vector<128x512xbf16>
    %c0_3 = arith.constant 0 : index
    %c0_4 = arith.constant 0 : index
    %4 = vector.load %arg3[%c0_3, %c0_4] : memref<512x512xbf16, #tpu.memory_space<vmem>>, vector<512x512xbf16>
    %cst = arith.constant dense<0.000000e+00> : vector<128x512xf32>
    %5 = tpu.matmul %1, %4, %cst {dimension_numbers = #tpu.dot_dimension_numbers<[1], [0], [0], [1], [0, 0, 1, 1], [], []>} : vector<128x512xbf16>, vector<512x512xbf16>, vector<128x512xf32> -> vector<128x512xf32>
    %c0_5 = arith.constant 0 : index
    %c0_6 = arith.constant 0 : index
    %6 = vector.load %arg4[%c0_5, %c0_6] : memref<1x512xf32, #tpu.memory_space<vmem>>, vector<1x512xf32>
    %7 = vector.broadcast %6 : vector<1x512xf32> to vector<128x512xf32>
    %8 = arith.addf %5, %7 : vector<128x512xf32>
    %9 = math.tanh %8 : vector<128x512xf32>
    %10 = arith.truncf %9 : vector<128x512xf32> to vector<128x512xbf16>
    %c0_7 = arith.constant 0 : index
    %c0_8 = arith.constant 0 : index
    %11 = vector.load %arg5[%c0_7, %c0_8] : memref<512x512xbf16, #tpu.memory_space<vmem>>, vector<512x512xbf16>
    %cst_9 = arith.constant dense<0.000000e+00> : vector<128x512xf32>
    %12 = tpu.matmul %10, %11, %cst_9 {dimension_numbers = #tpu.dot_dimension_numbers<[1], [0], [0], [1], [0, 0, 1, 1], [], []>} : vector<128x512xbf16>, vector<512x512xbf16>, vector<128x512xf32> -> vector<128x512xf32>
    %c0_10 = arith.constant 0 : index
    %c0_11 = arith.constant 0 : index
    %13 = vector.load %arg6[%c0_10, %c0_11] : memref<1x512xf32, #tpu.memory_space<vmem>>, vector<1x512xf32>
    %14 = vector.broadcast %13 : vector<1x512xf32> to vector<128x512xf32>
    %15 = arith.addf %12, %14 : vector<128x512xf32>
    %16 = math.tanh %15 : vector<128x512xf32>
    %c0_12 = arith.constant 0 : index
    %c0_13 = arith.constant 0 : index
    %17 = vector.load %arg7[%c0_12, %c0_13] : memref<512x512xbf16, #tpu.memory_space<vmem>>, vector<512x512xbf16>
    %cst_14 = arith.constant dense<0.000000e+00> : vector<128x512xf32>
    %18 = tpu.matmul %3, %17, %cst_14 {dimension_numbers = #tpu.dot_dimension_numbers<[1], [0], [0], [1], [0, 0, 1, 1], [], []>} : vector<128x512xbf16>, vector<512x512xbf16>, vector<128x512xf32> -> vector<128x512xf32>
    %c0_15 = arith.constant 0 : index
    %c0_16 = arith.constant 0 : index
    %19 = vector.load %arg8[%c0_15, %c0_16] : memref<1x512xf32, #tpu.memory_space<vmem>>, vector<1x512xf32>
    %20 = vector.broadcast %19 : vector<1x512xf32> to vector<128x512xf32>
    %21 = arith.addf %18, %20 : vector<128x512xf32>
    %22 = math.tanh %21 : vector<128x512xf32>
    %23 = arith.truncf %22 : vector<128x512xf32> to vector<128x512xbf16>
    %c0_17 = arith.constant 0 : index
    %c0_18 = arith.constant 0 : index
    %24 = vector.load %arg9[%c0_17, %c0_18] : memref<512x512xbf16, #tpu.memory_space<vmem>>, vector<512x512xbf16>
    %cst_19 = arith.constant dense<0.000000e+00> : vector<128x512xf32>
    %25 = tpu.matmul %23, %24, %cst_19 {dimension_numbers = #tpu.dot_dimension_numbers<[1], [0], [0], [1], [0, 0, 1, 1], [], []>} : vector<128x512xbf16>, vector<512x512xbf16>, vector<128x512xf32> -> vector<128x512xf32>
    %c0_20 = arith.constant 0 : index
    %c0_21 = arith.constant 0 : index
    %26 = vector.load %arg10[%c0_20, %c0_21] : memref<1x512xf32, #tpu.memory_space<vmem>>, vector<1x512xf32>
    %27 = vector.broadcast %26 : vector<1x512xf32> to vector<128x512xf32>
    %28 = arith.addf %25, %27 : vector<128x512xf32>
    %29 = math.tanh %28 : vector<128x512xf32>
    %30 = arith.mulf %16, %29 : vector<128x512xf32>
    %cst_22 = arith.constant dense<0.000000e+00> : vector<128xf32>
    %31 = vector.multi_reduction <add>, %30, %cst_22 [1] : vector<128x512xf32> to vector<128xf32>
    %32 = vector.shape_cast %31 : vector<128xf32> to vector<128x1xf32>
    %33 = arith.negf %32 : vector<128x1xf32>
    %34 = math.exp %33 : vector<128x1xf32>
    %cst_23 = arith.constant 1.000000e+00 : f32
    %35 = vector.broadcast %cst_23 : f32 to vector<128x1xf32>
    %36 = arith.addf %35, %34 : vector<128x1xf32>
    %37 = arith.divf %35, %36 : vector<128x1xf32>
    %c0_24 = arith.constant 0 : index
    %c0_25 = arith.constant 0 : index
    %38 = vector.load %arg11[%c0_24, %c0_25] : memref<128x1xf32, #tpu.memory_space<vmem>>, vector<128x1xf32>
    tpu.vector_store %arg11[%c0_24, %c0_25], %37 {strides = array<i32>} : memref<128x1xf32, #tpu.memory_space<vmem>>, vector<128x1xf32>,
    return
  }
  func.func @transform_0(%arg0: i32) -> (i32, i32) {
    %c0_i32 = arith.constant 0 : i32
    %c0_i32_0 = arith.constant 0 : i32
    return %arg0, %c0_i32 : i32, i32
  }
  func.func @transform_1(%arg0: i32) -> (i32, i32) {
    %c0_i32 = arith.constant 0 : i32
    %c0_i32_0 = arith.constant 0 : i32
    return %arg0, %c0_i32 : i32, i32
  }
  func.func @transform_2(%arg0: i32) -> (i32, i32) {
    %c0_i32 = arith.constant 0 : i32
    %c0_i32_0 = arith.constant 0 : i32
    %c0_i32_1 = arith.constant 0 : i32
    return %c0_i32, %c0_i32_0 : i32, i32
  }
  func.func @transform_3(%arg0: i32) -> (i32, i32) {
    %c0_i32 = arith.constant 0 : i32
    %c0_i32_0 = arith.constant 0 : i32
    %c0_i32_1 = arith.constant 0 : i32
    return %c0_i32, %c0_i32_0 : i32, i32
  }
  func.func @transform_4(%arg0: i32) -> (i32, i32) {
    %c0_i32 = arith.constant 0 : i32
    %c0_i32_0 = arith.constant 0 : i32
    %c0_i32_1 = arith.constant 0 : i32
    return %c0_i32, %c0_i32_0 : i32, i32
  }
  func.func @transform_5(%arg0: i32) -> (i32, i32) {
    %c0_i32 = arith.constant 0 : i32
    %c0_i32_0 = arith.constant 0 : i32
    %c0_i32_1 = arith.constant 0 : i32
    return %c0_i32, %c0_i32_0 : i32, i32
  }
  func.func @transform_6(%arg0: i32) -> (i32, i32) {
    %c0_i32 = arith.constant 0 : i32
    %c0_i32_0 = arith.constant 0 : i32
    %c0_i32_1 = arith.constant 0 : i32
    return %c0_i32, %c0_i32_0 : i32, i32
  }
  func.func @transform_7(%arg0: i32) -> (i32, i32) {
    %c0_i32 = arith.constant 0 : i32
    %c0_i32_0 = arith.constant 0 : i32
    %c0_i32_1 = arith.constant 0 : i32
    return %c0_i32, %c0_i32_0 : i32, i32
  }
  func.func @transform_8(%arg0: i32) -> (i32, i32) {
    %c0_i32 = arith.constant 0 : i32
    %c0_i32_0 = arith.constant 0 : i32
    %c0_i32_1 = arith.constant 0 : i32
    return %c0_i32, %c0_i32_0 : i32, i32
  }
  func.func @transform_9(%arg0: i32) -> (i32, i32) {
    %c0_i32 = arith.constant 0 : i32
    %c0_i32_0 = arith.constant 0 : i32
    %c0_i32_1 = arith.constant 0 : i32
    return %c0_i32, %c0_i32_0 : i32, i32
  }
  func.func @transform_10(%arg0: i32) -> (i32, i32) {
    %c0_i32 = arith.constant 0 : i32
    %c0_i32_0 = arith.constant 0 : i32
    return %arg0, %c0_i32 : i32, i32
  }
}

</mosaic_0001>

<bundles_post_ra>
// kernel: tpu_custom_call.1
= control target key start
LH: loop header
LB: loop body
LE: loop exit
PB: predicated region body
PF: predicated region fallthrough
CT: control target
= control target key end

     0   :  { %15 = vsyncpa [#allocation3], 0  ;;  %s9443_s0 = inlined_call_operand.hbm [shape: f32[128,512], index: 0, kind: input, shape index: {}]   ;;  %s9444_s1 = inlined_call_operand.hbm [shape: f32[128,512], index: 1, kind: input, shape index: {}]   ;;  %s9445_s2 = inlined_call_operand.hbm [shape: bf16[512,512], index: 2, kind: input, shape index: {}]   ;;  %s9446_s3 = inlined_call_operand.vmem [shape: f32[1,512], index: 3, kind: input, shape index: {}]   ;;  %s9447_s4 = inlined_call_operand.hbm [shape: bf16[512,512], index: 4, kind: input, shape index: {}]   ;;  %s9448_s5 = inlined_call_operand.vmem [shape: f32[1,512], index: 5, kind: input, shape index: {}]   ;;  %s9449_s6 = inlined_call_operand.hbm [shape: bf16[512,512], index: 6, kind: input, shape index: {}]   ;;  %s9450_s7 = inlined_call_operand.vmem [shape: f32[1,512], index: 7, kind: input, shape index: {}]   ;;  %s9451_s8 = inlined_call_operand.hbm [shape: bf16[512,512], index: 8, kind: input, shape index: {}]   ;;  %s9452_s9 = inlined_call_operand.vmem [shape: f32[1,512], index: 9, kind: input, shape index: {}]   ;;  %s9453_s10 = inlined_call_operand.vmem [shape: f32[128,1], index: 10, kind: output, shape index: {}]  }
   0x1   :  { %16 = vsyncpa [#allocation5], 0 }
   0x2   :  { %17 = vsyncpa [#allocation8], 0 }
   0x3   :  { %18 = vsyncpa [#allocation11], 0  ;;  %s8396_s13 = smov [#allocation4]   ;;  %s8256_s17 = scalar_lea.hbm %s9444_s1, 8192 }
   0x4   :  { %s36_s14 = sshll.u32 %s8396_s13, 4  ;;  %p8257_p0 = scmp.ne.s32.totalorder %s9444_s1, %s8256_s17  ;;  %s37_s14 = int_to_ptr.vmem [resolvable:$true] %s36_s14 }
   0x5   :  { %p8260_p1 = scmp.lt.u32.totalorder %s8256_s17, %s9444_s1 }
   0x7   :  { %p8262_p2 = pnand %p8260_p1, %p8257_p0 }
   0x9   :  { %8265 = shalt.err (!%p8262_p2)
}
   0xa   :  { %s8266_s22 = scalar_lea.vmem %s37_s14, 8192  ;;  %p8271_p4 = scmp.lt.s32.totalorder %s37_s14, %s37_s14 }
   0xb   :  { %p8267_p3 = scmp.ne.s32.totalorder %s37_s14, %s8266_s22  ;;  %p8272_p5 = scmp.lt.s32.totalorder %s8266_s22, %s8266_s22 }
   0xd   :  { %p8273_p6 = por %p8272_p5, %p8271_p4 }
   0xf   :  { %p8274_p7 = pnand %p8273_p6, %p8267_p3 }
  0x11   :  { %8277 = shalt.err (!%p8274_p7)
}
  0x12   :  { %s8397_s23 = smov 512   ;;  %s8398_s24 = smov 32  }
  0x13   :  { %42 = dma.hbm_to_vmem [thread:$0]  %s9444_s1, 8192, %s37_s14, [#allocation5], %s8397_s23, %s8397_s23, %s8398_s24  }
  0x14   :  { %s8399_s27 = smov [#allocation7]   ;;  %s8400_s29 = smov [#allocation2]  }
  0x15   :  { %s62_s28 = sshll.u32 %s8399_s27, 4  ;;  %s24_s30 = sshll.u32 %s8400_s29, 4  ;;  %s63_s28 = int_to_ptr.vmem [resolvable:$true] %s62_s28  ;;  %s25_s30 = int_to_ptr.vmem [resolvable:$true] %s24_s30 }
  0x16   :  { %s8278_s13 = scalar_lea.hbm %s9447_s4, 16384 }
  0x17   :  { %p8279_p8 = scmp.ne.s32.totalorder %s9447_s4, %s8278_s13  ;;  %p8282_p9 = scmp.lt.u32.totalorder %s8278_s13, %s9447_s4 }
  0x19   :  { %p8284_p10 = pnand %p8282_p9, %p8279_p8 }
  0x1b   :  { %8287 = shalt.err (!%p8284_p10)
}
  0x1c   :  { %s8288_s1 = scalar_lea.vmem %s63_s28, 16384  ;;  %p8293_p12 = scmp.lt.s32.totalorder %s63_s28, %s63_s28 }
  0x1d   :  { %p8289_p11 = scmp.ne.s32.totalorder %s63_s28, %s8288_s1  ;;  %p8294_p13 = scmp.lt.s32.totalorder %s8288_s1, %s8288_s1 }
  0x1f   :  { %p8295_p0 = por %p8294_p13, %p8293_p12 }
  0x21   :  { %p8296_p1 = pnand %p8295_p0, %p8289_p11 }
  0x23   :  { %8299 = shalt.err (!%p8296_p1)
}
  0x24   :  { %s8401_s14 = smov 256   ;;  %s8402_s19 = smov 16  }
  0x25   :  { %68 = dma.hbm_to_vmem [thread:$0]  %s9447_s4, 16384, %s63_s28, [#allocation8], %s8401_s14, %s8401_s14, %s8402_s19  }
  0x26   :  { %s8300_s26 = scalar_lea.hbm %s9443_s0, 8192 }
  0x27   :  { %p8301_p2 = scmp.ne.s32.totalorder %s9443_s0, %s8300_s26  ;;  %p8304_p3 = scmp.lt.u32.totalorder %s8300_s26, %s9443_s0 }
  0x29   :  { %p8306_p4 = pnand %p8304_p3, %p8301_p2 }
  0x2b   :  { %8309 = shalt.err (!%p8306_p4)
}
  0x2c   :  { %s8310_s13 = scalar_lea.vmem %s25_s30, 8192  ;;  %p8315_p6 = scmp.lt.s32.totalorder %s25_s30, %s25_s30 }
  0x2d   :  { %p8311_p5 = scmp.ne.s32.totalorder %s25_s30, %s8310_s13  ;;  %p8316_p7 = scmp.lt.s32.totalorder %s8310_s13, %s8310_s13 }
  0x2f   :  { %p8317_p8 = por %p8316_p7, %p8315_p6 }
  0x31   :  { %p8318_p9 = pnand %p8317_p8, %p8311_p5 }
  0x33   :  { %8321 = shalt.err (!%p8318_p9)
}
  0x34   :  { %30 = dma.hbm_to_vmem [thread:$0]  %s9443_s0, 8192, %s25_s30, [#allocation3], %s8397_s23, %s8397_s23, %s8398_s24  }
  0x35   :  { %s8403_s15 = smov [#allocation6]   ;;  %s8404_s17 = smov [#allocation9]  }
  0x36   :  { %s48_s16 = sshll.u32 %s8403_s15, 4  ;;  %s76_s18 = sshll.u32 %s8404_s17, 4  ;;  %s49_s16 = int_to_ptr.vmem [resolvable:$true] %s48_s16  ;;  %s77_s18 = int_to_ptr.vmem [resolvable:$true] %s76_s18 }
  0x37   :  { %s8322_s21 = scalar_lea.hbm %s9445_s2, 16384 }
  0x38   :  { %p8323_p10 = scmp.ne.s32.totalorder %s9445_s2, %s8322_s21  ;;  %p8326_p11 = scmp.lt.u32.totalorder %s8322_s21, %s9445_s2 }
  0x3a   :  { %p8328_p12 = pnand %p8326_p11, %p8323_p10 }
  0x3c   :  { %8331 = shalt.err (!%p8328_p12)
}
  0x3d   :  { %s8332_s0 = scalar_lea.vmem %s49_s16, 16384  ;;  %p8337_p0 = scmp.lt.s32.totalorder %s49_s16, %s49_s16 }
  0x3e   :  { %p8333_p13 = scmp.ne.s32.totalorder %s49_s16, %s8332_s0  ;;  %p8338_p1 = scmp.lt.s32.totalorder %s8332_s0, %s8332_s0 }
  0x40   :  { %p8339_p2 = por %p8338_p1, %p8337_p0 }
  0x42   :  { %p8340_p3 = pnand %p8339_p2, %p8333_p13 }
  0x44   :  { %8343 = shalt.err (!%p8340_p3)
}
  0x45   :  { %54 = dma.hbm_to_vmem [thread:$0]  %s9445_s2, 16384, %s49_s16, [#allocation5], %s8401_s14, %s8401_s14, %s8402_s19  }
  0x46   :  { %s8344_s11 = scalar_lea.hbm %s9449_s6, 16384 }
  0x47   :  { %p8345_p4 = scmp.ne.s32.totalorder %s9449_s6, %s8344_s11  ;;  %p8348_p5 = scmp.lt.u32.totalorder %s8344_s11, %s9449_s6 }
  0x49   :  { %p8350_p6 = pnand %p8348_p5, %p8345_p4 }
  0x4b   :  { %8353 = shalt.err (!%p8350_p6)
}
  0x4c   :  { %s8354_s15 = scalar_lea.vmem %s77_s18, 16384  ;;  %p8359_p8 = scmp.lt.s32.totalorder %s77_s18, %s77_s18 }
  0x4d   :  { %p8355_p7 = scmp.ne.s32.totalorder %s77_s18, %s8354_s15  ;;  %p8360_p9 = scmp.lt.s32.totalorder %s8354_s15, %s8354_s15 }
  0x4f   :  { %p8361_p10 = por %p8360_p9, %p8359_p8 }
  0x51   :  { %p8362_p11 = pnand %p8361_p10, %p8355_p7 }
  0x53   :  { %8365 = shalt.err (!%p8362_p11)
}
  0x54   :  { %82 = dma.hbm_to_vmem [thread:$0]  %s9449_s6, 16384, %s77_s18, [#allocation8], %s8401_s14, %s8401_s14, %s8402_s19  }
  0x55   :  { %s8405_s17 = smov [#allocation10]   ;;  %s8366_s22 = scalar_lea.hbm %s9451_s8, 16384 }
  0x56   :  { %s90_s1 = sshll.u32 %s8405_s17, 4  ;;  %p8367_p12 = scmp.ne.s32.totalorder %s9451_s8, %s8366_s22  ;;  %s91_s1 = int_to_ptr.vmem [resolvable:$true] %s90_s1 }
  0x57   :  { %p8370_p13 = scmp.lt.u32.totalorder %s8366_s22, %s9451_s8 }
  0x59   :  { %p8372_p0 = pnand %p8370_p13, %p8367_p12 }
  0x5b   :  { %8375 = shalt.err (!%p8372_p0)
}
  0x5c   :  { %s8376_s23 = scalar_lea.vmem %s91_s1, 16384  ;;  %p8381_p2 = scmp.lt.s32.totalorder %s91_s1, %s91_s1 }
  0x5d   :  { %p8377_p1 = scmp.ne.s32.totalorder %s91_s1, %s8376_s23  ;;  %p8382_p3 = scmp.lt.s32.totalorder %s8376_s23, %s8376_s23 }
  0x5f   :  { %p8383_p4 = por %p8382_p3, %p8381_p2 }
  0x61   :  { %p8384_p5 = pnand %p8383_p4, %p8377_p1 }
  0x63   :  { %8387 = shalt.err (!%p8384_p5)
}
  0x64   :  { %96 = dma.hbm_to_vmem [thread:$0]  %s9451_s8, 16384, %s91_s1, [#allocation11], %s8401_s14, %s8401_s14, %s8402_s19  }
  0x65   :  { %8388 = dma.done.wait [#allocation3], 8192  }
  0x66   :  { %8389 = vsyncadd [#allocation3], 4294959104 }
  0x67   :  { %8390 = dma.done.wait [#allocation5], 24576  }
  0x68   :  { %8391 = vsyncadd [#allocation5], 4294942720 }
  0x69   :  { %8392 = dma.done.wait [#allocation8], 32768  }
  0x6a   :  { %8393 = vsyncadd [#allocation8], 4294934528 }
  0x6b   :  { %8394 = dma.done.wait [#allocation11], 16384  }
  0x6c   :  { %8395 = vsyncadd [#allocation11], 4294950912  ;;  %v6912_v0 = vld [vmem:[#allocation6 + $0x4] ss:$16 sps:$4 sm:$0xff]   ;;  %v6914_v1 = vld [vmem:[#allocation6 + $0xc] ss:$16 sps:$4 sm:$0xff]  }
  0x6d   :  { %1099 = vmatprep.subr.bf16.mxu0 %v6912_v0  ;;  %v6916_v2 = vld [vmem:[#allocation6] ss:$16 sps:$4 sm:$0xff]   ;;  %v6917_v3 = vld [vmem:[#allocation6 + $0x8] ss:$16 sps:$4 sm:$0xff]   ;;  %1325 = vmatprep.subr.bf16.mxu1 %v6914_v1  ;;  %v6918_v4 = vld [vmem:[#allocation6 + $0x24] ss:$16 sps:$4 sm:$0xff]  }
  0x6e   :  { %1100 = vmatpush1.bf16.msra.mxu0 %v6916_v2  ;;  %1326 = vmatpush1.bf16.msra.mxu1 %v6917_v3  ;;  %v6920_v5 = vld [vmem:[#allocation6 + $0x2c] ss:$16 sps:$4 sm:$0xff]   ;;  %v6922_v6 = vld [vmem:[#allocation6 + $0x20] ss:$16 sps:$4 sm:$0xff]   ;;  %v6923_v7 = vld [vmem:[#allocation6 + $0x28] ss:$16 sps:$4 sm:$0xff]  }
  0x6f   :  { %1101 = vmatprep.subr.bf16.mxu0 %v6918_v4  ;;  %1327 = vmatprep.subr.bf16.mxu1 %v6920_v5  ;;  %v6924_v8 = vld [vmem:[#allocation6 + $0x44] ss:$16 sps:$4 sm:$0xff]   ;;  %v6926_v9 = vld [vmem:[#allocation6 + $0x4c] ss:$16 sps:$4 sm:$0xff]   ;;  %v6928_v10 = vld [vmem:[#allocation6 + $0x40] ss:$16 sps:$4 sm:$0xff]  }
  0x70   :  { %v6929_v11 = vld [vmem:[#allocation6 + $0x48] ss:$16 sps:$4 sm:$0xff]   ;;  %v6930_v12 = vld [vmem:[#allocation6 + $0x64] ss:$16 sps:$4 sm:$0xff]   ;;  %v6932_v13 = vld [vmem:[#allocation6 + $0x6c] ss:$16 sps:$4 sm:$0xff]  }
  0x71   :  { %v6934_v14 = vld [vmem:[#allocation6 + $0x60] ss:$16 sps:$4 sm:$0xff]   ;;  %v6935_v15 = vld [vmem:[#allocation6 + $0x68] ss:$16 sps:$4 sm:$0xff]   ;;  %v6936_v16 = vld [vmem:[#allocation6 + $0x84] ss:$16 sps:$4 sm:$0xff]  }
  0x72   :  { %1102 = vmatpush1.bf16.msra.mxu0 %v6922_v6  ;;  %1328 = vmatpush1.bf16.msra.mxu1 %v6923_v7  ;;  %v6938_v17 = vld [vmem:[#allocation6 + $0x8c] ss:$16 sps:$4 sm:$0xff]   ;;  %v6940_v18 = vld [vmem:[#allocation6 + $0x80] ss:$16 sps:$4 sm:$0xff]   ;;  %v6941_v19 = vld [vmem:[#allocation6 + $0x88] ss:$16 sps:$4 sm:$0xff]  }
  0x73   :  { %1103 = vmatprep.subr.bf16.mxu0 %v6924_v8  ;;  %1329 = vmatprep.subr.bf16.mxu1 %v6926_v9  ;;  %v6942_v20 = vld [vmem:[#allocation6 + $0xa4] ss:$16 sps:$4 sm:$0xff]   ;;  %v6944_v21 = vld [vmem:[#allocation6 + $0xac] ss:$16 sps:$4 sm:$0xff]   ;;  %v6946_v22 = vld [vmem:[#allocation6 + $0xa0] ss:$16 sps:$4 sm:$0xff]  }
  0x74   :  { %v6947_v23 = vld [vmem:[#allocation6 + $0xa8] ss:$16 sps:$4 sm:$0xff]   ;;  %v6948_v24 = vld [vmem:[#allocation6 + $0xc4] ss:$16 sps:$4 sm:$0xff]   ;;  %v6950_v25 = vld [vmem:[#allocation6 + $0xcc] ss:$16 sps:$4 sm:$0xff]  }
  0x75   :  { %v6952_v26 = vld [vmem:[#allocation6 + $0xc0] ss:$16 sps:$4 sm:$0xff]   ;;  %v6953_v27 = vld [vmem:[#allocation6 + $0xc8] ss:$16 sps:$4 sm:$0xff]   ;;  %v6954_v28 = vld [vmem:[#allocation6 + $0xe4] ss:$16 sps:$4 sm:$0xff]  }
  0x76   :  { %1104 = vmatpush1.bf16.msra.mxu0 %v6928_v10  ;;  %1330 = vmatpush1.bf16.msra.mxu1 %v6929_v11  ;;  %v6956_v29 = vld [vmem:[#allocation6 + $0xec] ss:$16 sps:$4 sm:$0xff]   ;;  %v6958_v30 = vld [vmem:[#allocation6 + $0xe0] ss:$16 sps:$4 sm:$0xff]   ;;  %v6959_v31 = vld [vmem:[#allocation6 + $0xe8] ss:$16 sps:$4 sm:$0xff]  }
  0x77   :  { %1105 = vmatprep.subr.bf16.mxu0 %v6930_v12  ;;  %1331 = vmatprep.subr.bf16.mxu1 %v6932_v13  ;;  %v6960_v32 = vld [vmem:[#allocation6 + $0x104] ss:$16 sps:$4 sm:$0xff]   ;;  %v6962_v33 = vld [vmem:[#allocation6 + $0x10c] ss:$16 sps:$4 sm:$0xff]   ;;  %v6964_v34 = vld [vmem:[#allocation6 + $0x100] ss:$16 sps:$4 sm:$0xff]  }
  0x78   :  { %v6965_v35 = vld [vmem:[#allocation6 + $0x108] ss:$16 sps:$4 sm:$0xff]   ;;  %v6966_v36 = vld [vmem:[#allocation6 + $0x124] ss:$16 sps:$4 sm:$0xff]   ;;  %v6968_v37 = vld [vmem:[#allocation6 + $0x12c] ss:$16 sps:$4 sm:$0xff]  }
  0x79   :  { %v6970_v38 = vld [vmem:[#allocation6 + $0x120] ss:$16 sps:$4 sm:$0xff]   ;;  %v6971_v39 = vld [vmem:[#allocation6 + $0x128] ss:$16 sps:$4 sm:$0xff]   ;;  %v6972_v40 = vld [vmem:[#allocation6 + $0x144] ss:$16 sps:$4 sm:$0xff]  }
  0x7a   :  { %1106 = vmatpush1.bf16.msra.mxu0 %v6934_v14  ;;  %1332 = vmatpush1.bf16.msra.mxu1 %v6935_v15  ;;  %v6974_v41 = vld [vmem:[#allocation6 + $0x14c] ss:$16 sps:$4 sm:$0xff]   ;;  %v6976_v42 = vld [vmem:[#allocation6 + $0x140] ss:$16 sps:$4 sm:$0xff]   ;;  %v6977_v43 = vld [vmem:[#allocation6 + $0x148] ss:$16 sps:$4 sm:$0xff]  }
  0x7b   :  { %1107 = vmatprep.subr.bf16.mxu0 %v6936_v16  ;;  %1333 = vmatprep.subr.bf16.mxu1 %v6938_v17  ;;  %v6978_v44 = vld [vmem:[#allocation6 + $0x164] ss:$16 sps:$4 sm:$0xff]   ;;  %v6980_v45 = vld [vmem:[#allocation6 + $0x16c] ss:$16 sps:$4 sm:$0xff]   ;;  %v6982_v47 = vld [vmem:[#allocation6 + $0x160] ss:$16 sps:$4 sm:$0xff]  }
  0x7c   :  { %v118_v46 = vld [vmem:[#allocation2 + $0x8] sm:$0xff]  ;;  %v6984_v50 = vld [vmem:[#allocation6 + $0x184] ss:$16 sps:$4 sm:$0xff]   ;;  %v6988_v53 = vld [vmem:[#allocation6 + $0x180] ss:$16 sps:$4 sm:$0xff]   ;;  %vm5837_vm0 = vcmask 7168  }
  0x7d   :  { %v6983_v48 = vld [vmem:[#allocation6 + $0x168] ss:$16 sps:$4 sm:$0xff]   ;;  %v6986_v52 = vld [vmem:[#allocation6 + $0x18c] ss:$16 sps:$4 sm:$0xff]   ;;  %v6990_v55 = vld [vmem:[#allocation6 + $0x1a4] ss:$16 sps:$4 sm:$0xff]  }
  0x7e   :  { %1108 = vmatpush1.bf16.msra.mxu0 %v6940_v18  ;;  %1334 = vmatpush1.bf16.msra.mxu1 %v6941_v19  ;;  %v122_v49 = vld [vmem:[#allocation2 + $0x28] sm:$0xff]  ;;  %v6994_v57 = vld [vmem:[#allocation6 + $0x1a0] ss:$16 sps:$4 sm:$0xff]   ;;  %v6996_v59 = vld [vmem:[#allocation6 + $0x1c4] ss:$16 sps:$4 sm:$0xff]  }
  0x7f   :  { %1109 = vmatprep.subr.bf16.mxu0 %v6942_v20  ;;  %1335 = vmatprep.subr.bf16.mxu1 %v6944_v21  ;;  %v182_v51 = vpack.c.bf16 %v122_v49, %v118_v46  ;;  %v6989_v54 = vld [vmem:[#allocation6 + $0x188] ss:$16 sps:$4 sm:$0xff]   ;;  %v6992_v56 = vld [vmem:[#allocation6 + $0x1ac] ss:$16 sps:$4 sm:$0xff]   ;;  %v7000_v61 = vld [vmem:[#allocation6 + $0x1c0] ss:$16 sps:$4 sm:$0xff]  }
  0x80   :  { %v6995_v58 = vld [vmem:[#allocation6 + $0x1a8] ss:$16 sps:$4 sm:$0xff]   ;;  %v6998_v60 = vld [vmem:[#allocation6 + $0x1cc] ss:$16 sps:$4 sm:$0xff]   ;;  %v7002_v63 = vld [vmem:[#allocation6 + $0x1e4] ss:$16 sps:$4 sm:$0xff]  }
  0x81   :  { %1131 = vmatprep.mubr.bf16.mxu0 %v182_v51  ;;  %1357 = vmatprep.mubr.bf16.mxu1 %v182_v51  ;;  %v7001_v62 = vld [vmem:[#allocation6 + $0x1c8] ss:$16 sps:$4 sm:$0xff]   ;;  %v7004_v0 = vld [vmem:[#allocation6 + $0x1ec] ss:$16 sps:$4 sm:$0xff]   ;;  %v7006_v1 = vld [vmem:[#allocation6 + $0x1e0] ss:$16 sps:$4 sm:$0xff]  }
  0x82   :  { %1110 = vmatpush1.bf16.msra.mxu0 %v6946_v22  ;;  %1336 = vmatpush1.bf16.msra.mxu1 %v6947_v23  ;;  %v7007_v2 = vld [vmem:[#allocation6 + $0x1e8] ss:$16 sps:$4 sm:$0xff]   ;;  %v117_v3 = vld [vmem:[#allocation2] sm:$0xff]  ;;  %v7013_v6 = vld [vmem:[#allocation6 + $0x20c] ss:$16 sps:$4 sm:$0xff]  }
  0x83   :  { %1111 = vmatprep.subr.bf16.mxu0 %v6948_v24  ;;  %1337 = vmatprep.subr.bf16.mxu1 %v6950_v25  ;;  %v121_v4 = vld [vmem:[#allocation2 + $0x20] sm:$0xff]  ;;  %v7011_v9 = vld [vmem:[#allocation6 + $0x208] ss:$16 sps:$4 sm:$0xff]   ;;  %v7019_v13 = vld [vmem:[#allocation6 + $0x22c] ss:$16 sps:$4 sm:$0xff]  }
  0x84   :  { %v7010_v5 = vld [vmem:[#allocation6 + $0x204] ss:$16 sps:$4 sm:$0xff]   ;;  %v7008_v7 = vld [vmem:[#allocation6 + $0x200] ss:$16 sps:$4 sm:$0xff]   ;;  %v181_v8 = vpack.c.bf16 %v121_v4, %v117_v3  ;;  %v126_v10 = vld [vmem:[#allocation2 + $0x48] sm:$0xff] }
  0x85   :  { %v130_v11 = vld [vmem:[#allocation2 + $0x68] sm:$0xff]  ;;  %v7016_v12 = vld [vmem:[#allocation6 + $0x224] ss:$16 sps:$4 sm:$0xff]   ;;  %v7014_v14 = vld [vmem:[#allocation6 + $0x220] ss:$16 sps:$4 sm:$0xff]  }
  0x86   :  { %1112 = vmatpush1.bf16.msra.mxu0 %v6952_v26  ;;  %1338 = vmatpush1.bf16.msra.mxu1 %v6953_v27  ;;  %v186_v15 = vpack.c.bf16 %v130_v11, %v126_v10  ;;  %v7017_v16 = vld [vmem:[#allocation6 + $0x228] ss:$16 sps:$4 sm:$0xff]   ;;  %v125_v17 = vld [vmem:[#allocation2 + $0x40] sm:$0xff]  ;;  %v7025_v20 = vld [vmem:[#allocation6 + $0x24c] ss:$16 sps:$4 sm:$0xff]  }
  0x87   :  { %1113 = vmatprep.subr.bf16.mxu0 %v6954_v28  ;;  %1339 = vmatprep.subr.bf16.mxu1 %v6956_v29  ;;  %v129_v18 = vld [vmem:[#allocation2 + $0x60] sm:$0xff]  ;;  %v7023_v22 = vld [vmem:[#allocation6 + $0x248] ss:$16 sps:$4 sm:$0xff]   ;;  %v7031_v27 = vld [vmem:[#allocation6 + $0x26c] ss:$16 sps:$4 sm:$0xff]  }
  0x88   :  { %v7022_v19 = vld [vmem:[#allocation6 + $0x244] ss:$16 sps:$4 sm:$0xff]   ;;  %v7020_v21 = vld [vmem:[#allocation6 + $0x240] ss:$16 sps:$4 sm:$0xff]   ;;  %v185_v23 = vpack.c.bf16 %v129_v18, %v125_v17  ;;  %v134_v24 = vld [vmem:[#allocation2 + $0x88] sm:$0xff] }
  0x89   :  { %v138_v25 = vld [vmem:[#allocation2 + $0xa8] sm:$0xff]  ;;  %v7028_v26 = vld [vmem:[#allocation6 + $0x264] ss:$16 sps:$4 sm:$0xff]   ;;  %v7026_v29 = vld [vmem:[#allocation6 + $0x260] ss:$16 sps:$4 sm:$0xff]  }
  0x8a   :  { %1114 = vmatpush1.bf16.msra.mxu0 %v6958_v30  ;;  %1340 = vmatpush1.bf16.msra.mxu1 %v6959_v31  ;;  %v190_v28 = vpack.c.bf16 %v138_v25, %v134_v24  ;;  %v7029_v30 = vld [vmem:[#allocation6 + $0x268] ss:$16 sps:$4 sm:$0xff]   ;;  %v133_v31 = vld [vmem:[#allocation2 + $0x80] sm:$0xff] }
  0x8b   :  { %1115 = vmatprep.subr.bf16.mxu0 %v6960_v32  ;;  %1341 = vmatprep.subr.bf16.mxu1 %v6962_v33  ;;  %v137_v32 = vld [vmem:[#allocation2 + $0xa0] sm:$0xff]  ;;  %v150_v51 = vld [vmem:[#allocation2 + $0x108] sm:$0xff] }
  0x8c   :  { %v7034_v33 = vld [vmem:[#allocation6 + $0x284] ss:$16 sps:$4 sm:$0xff]   ;;  %v7044_v49 = vld [vmem:[#allocation6 + $0x2c0] ss:$16 sps:$4 sm:$0xff]   ;;  %v7059_v3 = vld [vmem:[#allocation6 + $0x308] ss:$16 sps:$4 sm:$0xff]  }
  0x8d   :  { %v145_v46 = vld [vmem:[#allocation2 + $0xe0] sm:$0xff]  ;;  %v7071_v17 = vld [vmem:[#allocation6 + $0x348] ss:$16 sps:$4 sm:$0xff]  }
  0x8e   :  { %1116 = vmatpush1.bf16.msra.mxu0 %v6964_v34  ;;  %1342 = vmatpush1.bf16.msra.mxu1 %v6965_v35  ;;  %v7037_v34 = vld [vmem:[#allocation6 + $0x28c] ss:$16 sps:$4 sm:$0xff]   ;;  %v7032_v35 = vld [vmem:[#allocation6 + $0x280] ss:$16 sps:$4 sm:$0xff]   ;;  %v7064_v4 = vld [vmem:[#allocation6 + $0x324] ss:$16 sps:$4 sm:$0xff]  }
  0x8f   :  { %1117 = vmatprep.subr.bf16.mxu0 %v6966_v36  ;;  %1343 = vmatprep.subr.bf16.mxu1 %v6968_v37  ;;  %v7035_v36 = vld [vmem:[#allocation6 + $0x288] ss:$16 sps:$4 sm:$0xff]   ;;  %v189_v37 = vpack.c.bf16 %v137_v32, %v133_v31  ;;  %v161_v10 = vld [vmem:[#allocation2 + $0x160] sm:$0xff] }
  0x90   :  { %v7070_v11 = vld [vmem:[#allocation6 + $0x344] ss:$16 sps:$4 sm:$0xff]   ;;  %v178_v31 = vld [vmem:[#allocation2 + $0x1e8] sm:$0xff] }
  0x91   :  { %v7076_v18 = vld [vmem:[#allocation6 + $0x364] ss:$16 sps:$4 sm:$0xff]  }
  0x92   :  { %1118 = vmatpush1.bf16.msra.mxu0 %v6970_v38  ;;  %1344 = vmatpush1.bf16.msra.mxu1 %v6971_v39  ;;  %v142_v38 = vld [vmem:[#allocation2 + $0xc8] sm:$0xff]  ;;  %v169_v24 = vld [vmem:[#allocation2 + $0x1a0] sm:$0xff] }
  0x93   :  { %1119 = vmatprep.subr.bf16.mxu0 %v6972_v40  ;;  %1345 = vmatprep.subr.bf16.mxu1 %v6974_v41  ;;  %v146_v39 = vld [vmem:[#allocation2 + $0xe8] sm:$0xff]  ;;  %v7040_v40 = vld [vmem:[#allocation6 + $0x2a4] ss:$16 sps:$4 sm:$0xff]  }
  0x94   :  { %v7043_v41 = vld [vmem:[#allocation6 + $0x2ac] ss:$16 sps:$4 sm:$0xff]   ;;  %v7082_v25 = vld [vmem:[#allocation6 + $0x384] ss:$16 sps:$4 sm:$0xff]  }
  0x95   :  { %v7088_v32 = vld [vmem:[#allocation6 + $0x3a4] ss:$16 sps:$4 sm:$0xff]  }
  0x96   :  { %1120 = vmatpush1.bf16.msra.mxu0 %v6976_v42  ;;  %1346 = vmatpush1.bf16.msra.mxu1 %v6977_v43  ;;  %v7038_v42 = vld [vmem:[#allocation6 + $0x2a0] ss:$16 sps:$4 sm:$0xff]   ;;  %v194_v43 = vpack.c.bf16 %v146_v39, %v142_v38  ;;  %v7094_v39 = vld [vmem:[#allocation6 + $0x3c4] ss:$16 sps:$4 sm:$0xff]  }
  0x97   :  { %1121 = vmatprep.subr.bf16.mxu0 %v6978_v44  ;;  %1347 = vmatprep.subr.bf16.mxu1 %v6980_v45  ;;  %v7041_v44 = vld [vmem:[#allocation6 + $0x2a8] ss:$16 sps:$4 sm:$0xff]   ;;  %v141_v45 = vld [vmem:[#allocation2 + $0xc0] sm:$0xff] }
  0x98   :  { %v177_v38 = vld [vmem:[#allocation2 + $0x1e0] sm:$0xff] }
  0x9a   :  { %1122 = vmatpush1.bf16.msra.mxu0 %v6982_v47  ;;  %1348 = vmatpush1.bf16.msra.mxu1 %v6983_v48  ;;  %v7046_v47 = vld [vmem:[#allocation6 + $0x2c4] ss:$16 sps:$4 sm:$0xff]   ;;  %v7049_v48 = vld [vmem:[#allocation6 + $0x2cc] ss:$16 sps:$4 sm:$0xff]  }
  0x9b   :  { %1123 = vmatprep.subr.bf16.mxu0 %v6984_v50  ;;  %1349 = vmatprep.subr.bf16.mxu1 %v6986_v52  ;;  %v193_v50 = vpack.c.bf16 %v145_v46, %v141_v45  ;;  %v154_v52 = vld [vmem:[#allocation2 + $0x128] sm:$0xff]  ;;  %v124_v45 = vld [vmem:[#allocation2 + $0x38] sm:$0xff]  ;;  %v7100_v46 = vld [vmem:[#allocation6 + $0x3e4] ss:$16 sps:$4 sm:$0xff]  }
  0x9e   :  { %1124 = vmatpush1.bf16.msra.mxu0 %v6988_v53  ;;  %1350 = vmatpush1.bf16.msra.mxu1 %v6989_v54  ;;  %v7047_v53 = vld [vmem:[#allocation6 + $0x2c8] ss:$16 sps:$4 sm:$0xff]   ;;  %v7052_v54 = vld [vmem:[#allocation6 + $0x2e4] ss:$16 sps:$4 sm:$0xff]  }
  0x9f   :  { %1125 = vmatprep.subr.bf16.mxu0 %v6990_v55  ;;  %1351 = vmatprep.subr.bf16.mxu1 %v6992_v56  ;;  %v7055_v55 = vld [vmem:[#allocation6 + $0x2ec] ss:$16 sps:$4 sm:$0xff]   ;;  %v7050_v56 = vld [vmem:[#allocation6 + $0x2e0] ss:$16 sps:$4 sm:$0xff]  }
  0xa2   :  { %1126 = vmatpush1.bf16.msra.mxu0 %v6994_v57  ;;  %1352 = vmatpush1.bf16.msra.mxu1 %v6995_v58  ;;  %v7053_v57 = vld [vmem:[#allocation6 + $0x2e8] ss:$16 sps:$4 sm:$0xff]   ;;  %v198_v58 = vpack.c.bf16 %v154_v52, %v150_v51  ;;  %v119_v51 = vld [vmem:[#allocation2 + $0x10] sm:$0xff] }
  0xa3   :  { %1127 = vmatprep.subr.bf16.mxu0 %v6996_v59  ;;  %1353 = vmatprep.subr.bf16.mxu1 %v6998_v60  ;;  %v149_v59 = vld [vmem:[#allocation2 + $0x100] sm:$0xff]  ;;  %v123_v52 = vld [vmem:[#allocation2 + $0x30] sm:$0xff] }
  0xa4   :  { %v153_v60 = vld [vmem:[#allocation2 + $0x120] sm:$0xff] }
  0xa6   :  { %1128 = vmatpush1.bf16.msra.mxu0 %v7000_v61  ;;  %1354 = vmatpush1.bf16.msra.mxu1 %v7001_v62  ;;  %v7058_v61 = vld [vmem:[#allocation6 + $0x304] ss:$16 sps:$4 sm:$0xff]   ;;  %v7061_v62 = vld [vmem:[#allocation6 + $0x30c] ss:$16 sps:$4 sm:$0xff]  }
  0xa7   :  { %1129 = vmatprep.subr.bf16.mxu0 %v7002_v63  ;;  %1355 = vmatprep.subr.bf16.mxu1 %v7004_v0  ;;  %v197_v63 = vpack.c.bf16 %v153_v60, %v149_v59  ;;  %v158_v0 = vld [vmem:[#allocation2 + $0x148] sm:$0xff]  ;;  %v7104_v59 = vld [vmem:[#allocation7] ss:$16 sps:$4 sm:$0xff]  }
  0xa8   :  { %v7107_v60 = vld [vmem:[#allocation7 + $0x8] ss:$16 sps:$4 sm:$0xff]  }
  0xaa   :  { %1130 = vmatpush1.bf16.msra.mxu0 %v7006_v1  ;;  %1356 = vmatpush1.bf16.msra.mxu1 %v7007_v2  ;;  %v162_v1 = vld [vmem:[#allocation2 + $0x168] sm:$0xff]  ;;  %v7056_v2 = vld [vmem:[#allocation6 + $0x300] ss:$16 sps:$4 sm:$0xff]  }
  0xab   :  { %1212 = vmatprep.subr.bf16.mxu0 %v7010_v5  ;;  %1438 = vmatprep.subr.bf16.mxu1 %v7013_v6  ;;  %v7067_v5 = vld [vmem:[#allocation6 + $0x32c] ss:$16 sps:$4 sm:$0xff]   ;;  %v202_v6 = vpack.c.bf16 %v162_v1, %v158_v0 }
  0xac   :  { %v7115_v0 = vld [vmem:[#allocation7 + $0x2c] ss:$16 sps:$4 sm:$0xff]  }
  0xad   :  { %1132 = vmatmul.mubr.bf16.vlgmr.msra.gmra.mrb[0].mxu0 %v181_v8  ;;  %1358 = vmatmul.mubr.bf16.vlgmr.msra.gmra.mrb[0].mxu1 %v181_v8  ;;  %v7065_v8 = vld [vmem:[#allocation6 + $0x328] ss:$16 sps:$4 sm:$0xff]  }
  0xae   :  { %1213 = vmatpush1.bf16.msra.mxu0 %v7008_v7  ;;  %1439 = vmatpush1.bf16.msra.mxu1 %v7011_v9  ;;  %v7062_v7 = vld [vmem:[#allocation6 + $0x320] ss:$16 sps:$4 sm:$0xff]   ;;  %v136_v1 = vld [vmem:[#allocation2 + $0x98] sm:$0xff] }
  0xaf   :  { %1214 = vmatprep.subr.bf16.mxu0 %v7016_v12  ;;  %1440 = vmatprep.subr.bf16.mxu1 %v7019_v13  ;;  %v157_v9 = vld [vmem:[#allocation2 + $0x140] sm:$0xff]  ;;  %v7073_v12 = vld [vmem:[#allocation6 + $0x34c] ss:$16 sps:$4 sm:$0xff]  }
  0xb0   :  { %1141 = vmatprep.mubr.bf16.mxu0 %v186_v15  ;;  %1367 = vmatprep.mubr.bf16.mxu1 %v186_v15  ;;  %v201_v13 = vpack.c.bf16 %v161_v10, %v157_v9  ;;  %v170_v15 = vld [vmem:[#allocation2 + $0x1a8] sm:$0xff] }
  0xb1   :  { %v7119_v9 = vld [vmem:[#allocation7 + $0x48] ss:$16 sps:$4 sm:$0xff]  }
  0xb2   :  { %1215 = vmatpush1.bf16.msra.mxu0 %v7014_v14  ;;  %1441 = vmatpush1.bf16.msra.mxu1 %v7017_v16  ;;  %v166_v14 = vld [vmem:[#allocation2 + $0x188] sm:$0xff]  ;;  %v7068_v16 = vld [vmem:[#allocation6 + $0x340] ss:$16 sps:$4 sm:$0xff]  }
  0xb3   :  { %1216 = vmatprep.subr.bf16.mxu0 %v7022_v19  ;;  %1442 = vmatprep.subr.bf16.mxu1 %v7025_v20  ;;  %v7079_v19 = vld [vmem:[#allocation6 + $0x36c] ss:$16 sps:$4 sm:$0xff]   ;;  %v7074_v20 = vld [vmem:[#allocation6 + $0x360] ss:$16 sps:$4 sm:$0xff]  }
  0xb5   :  { %1142 = vmatmul.mubr.bf16.gmra.mrb[4].mxu0 %v185_v23  ;;  %1368 = vmatmul.mubr.bf16.gmra.mrb[4].mxu1 %v185_v23  ;;  %v165_v23 = vld [vmem:[#allocation2 + $0x180] sm:$0xff] }
  0xb6   :  { %1217 = vmatpush1.bf16.msra.mxu0 %v7020_v21  ;;  %1443 = vmatpush1.bf16.msra.mxu1 %v7023_v22  ;;  %v7077_v21 = vld [vmem:[#allocation6 + $0x368] ss:$16 sps:$4 sm:$0xff]   ;;  %v206_v22 = vpack.c.bf16 %v170_v15, %v166_v14  ;;  %v139_v14 = vld [vmem:[#allocation2 + $0xb0] sm:$0xff] }
  0xb7   :  { %1218 = vmatprep.subr.bf16.mxu0 %v7028_v26  ;;  %1444 = vmatprep.subr.bf16.mxu1 %v7031_v27  ;;  %v7085_v26 = vld [vmem:[#allocation6 + $0x38c] ss:$16 sps:$4 sm:$0xff]   ;;  %v7080_v27 = vld [vmem:[#allocation6 + $0x380] ss:$16 sps:$4 sm:$0xff]  }
  0xb8   :  { %1151 = vmatprep.mubr.bf16.mxu0 %v190_v28  ;;  %1377 = vmatprep.mubr.bf16.mxu1 %v190_v28  ;;  %v7083_v28 = vld [vmem:[#allocation6 + $0x388] ss:$16 sps:$4 sm:$0xff]  }
  0xb9   :  { %v144_v15 = vld [vmem:[#allocation2 + $0xd8] sm:$0xff] }
  0xba   :  { %1219 = vmatpush1.bf16.msra.mxu0 %v7026_v29  ;;  %1445 = vmatpush1.bf16.msra.mxu1 %v7029_v30  ;;  %v205_v29 = vpack.c.bf16 %v169_v24, %v165_v23  ;;  %v174_v30 = vld [vmem:[#allocation2 + $0x1c8] sm:$0xff] }
  0xbb   :  { %1220 = vmatprep.subr.bf16.mxu0 %v7034_v33  ;;  %1446 = vmatprep.subr.bf16.mxu1 %v7037_v34  ;;  %v7091_v33 = vld [vmem:[#allocation6 + $0x3ac] ss:$16 sps:$4 sm:$0xff]   ;;  %v7086_v34 = vld [vmem:[#allocation6 + $0x3a0] ss:$16 sps:$4 sm:$0xff]   ;;  %v7131_v23 = vld [vmem:[#allocation7 + $0x88] ss:$16 sps:$4 sm:$0xff]  }
  0xbd   :  { %1152 = vmatmul.mubr.bf16.gmra.mrb[8].mxu0 %v189_v37  ;;  %1378 = vmatmul.mubr.bf16.gmra.mrb[8].mxu1 %v189_v37  ;;  %v173_v37 = vld [vmem:[#allocation2 + $0x1c0] sm:$0xff] }
  0xbe   :  { %1221 = vmatpush1.bf16.msra.mxu0 %v7032_v35  ;;  %1447 = vmatpush1.bf16.msra.mxu1 %v7035_v36  ;;  %v7089_v35 = vld [vmem:[#allocation6 + $0x3a8] ss:$16 sps:$4 sm:$0xff]   ;;  %v210_v36 = vpack.c.bf16 %v178_v31, %v174_v30  ;;  %v7134_v31 = vld [vmem:[#allocation7 + $0xa0] ss:$16 sps:$4 sm:$0xff]  }
  0xbf   :  { %1222 = vmatprep.subr.bf16.mxu0 %v7040_v40  ;;  %1448 = vmatprep.subr.bf16.mxu1 %v7043_v41  ;;  %v7097_v40 = vld [vmem:[#allocation6 + $0x3cc] ss:$16 sps:$4 sm:$0xff]   ;;  %v7092_v41 = vld [vmem:[#allocation6 + $0x3c0] ss:$16 sps:$4 sm:$0xff]  }
  0xc0   :  { %1161 = vmatprep.mubr.bf16.mxu0 %v194_v43  ;;  %1387 = vmatprep.mubr.bf16.mxu1 %v194_v43  ;;  %v209_v43 = vpack.c.bf16 %v177_v38, %v173_v37  ;;  %v156_v30 = vld [vmem:[#allocation2 + $0x138] sm:$0xff] }
  0xc1   :  { %v7143_v37 = vld [vmem:[#allocation7 + $0xc8] ss:$16 sps:$4 sm:$0xff]  }
  0xc2   :  { %1223 = vmatpush1.bf16.msra.mxu0 %v7038_v42  ;;  %1449 = vmatpush1.bf16.msra.mxu1 %v7041_v44  ;;  %v7095_v42 = vld [vmem:[#allocation6 + $0x3c8] ss:$16 sps:$4 sm:$0xff]  }
  0xc3   :  { %1224 = vmatprep.subr.bf16.mxu0 %v7046_v47  ;;  %1450 = vmatprep.subr.bf16.mxu1 %v7049_v48  ;;  %v120_v44 = vld [vmem:[#allocation2 + $0x18] sm:$0xff]  ;;  %v7098_v48 = vld [vmem:[#allocation6 + $0x3e0] ss:$16 sps:$4 sm:$0xff]  }
  0xc4   :  { %v7103_v47 = vld [vmem:[#allocation6 + $0x3ec] ss:$16 sps:$4 sm:$0xff]  }
  0xc5   :  { %1162 = vmatmul.mubr.bf16.gmra.mrb[12].mxu0 %v193_v50  ;;  %1388 = vmatmul.mubr.bf16.gmra.mrb[12].mxu1 %v193_v50  ;;  %v184_v50 = vpack.c.bf16 %v124_v45, %v120_v44  ;;  %v164_v44 = vld [vmem:[#allocation2 + $0x178] sm:$0xff]  ;;  %v7146_v45 = vld [vmem:[#allocation7 + $0xe0] ss:$16 sps:$4 sm:$0xff]  }
  0xc6   :  { %1225 = vmatpush1.bf16.msra.mxu0 %v7044_v49  ;;  %1451 = vmatpush1.bf16.msra.mxu1 %v7047_v53  ;;  %v7101_v49 = vld [vmem:[#allocation6 + $0x3e8] ss:$16 sps:$4 sm:$0xff]  }
  0xc7   :  { %1226 = vmatprep.subr.bf16.mxu0 %v7052_v54  ;;  %1452 = vmatprep.subr.bf16.mxu1 %v7055_v55  ;;  %v128_v53 = vld [vmem:[#allocation2 + $0x58] sm:$0xff]  ;;  %v7106_v55 = vld [vmem:[#allocation7 + $0x4] ss:$16 sps:$4 sm:$0xff]  }
  0xc8   :  { %1171 = vmatprep.mubr.bf16.mxu0 %v198_v58  ;;  %1397 = vmatprep.mubr.bf16.mxu1 %v198_v58  ;;  %v132_v54 = vld [vmem:[#allocation2 + $0x78] sm:$0xff] }
  0xc9   :  { %v188_v58 = vpack.c.bf16 %v132_v54, %v128_v53  ;;  %v7160_v53 = vld [vmem:[#allocation7 + $0x124] ss:$16 sps:$4 sm:$0xff]   ;;  %v7163_v54 = vld [vmem:[#allocation7 + $0x12c] ss:$16 sps:$4 sm:$0xff]  }
  0xca   :  { %1227 = vmatpush1.bf16.msra.mxu0 %v7050_v56  ;;  %1453 = vmatpush1.bf16.msra.mxu1 %v7053_v57  ;;  %v7109_v56 = vld [vmem:[#allocation7 + $0xc] ss:$16 sps:$4 sm:$0xff]   ;;  %v183_v57 = vpack.c.bf16 %v123_v52, %v119_v51  ;;  %v7155_v51 = vld [vmem:[#allocation7 + $0x108] ss:$16 sps:$4 sm:$0xff]  }
  0xcb   :  { %1228 = vmatprep.subr.bf16.mxu0 %v7058_v61  ;;  %1454 = vmatprep.subr.bf16.mxu1 %v7061_v62  ;;  %v127_v61 = vld [vmem:[#allocation2 + $0x50] sm:$0xff] }
  0xcc   :  { %v131_v62 = vld [vmem:[#allocation2 + $0x70] sm:$0xff] }
  0xcd   :  { %1172 = vmatmul.mubr.bf16.gmra.mrb[16].mxu0 %v197_v63  ;;  %1398 = vmatmul.mubr.bf16.gmra.mrb[16].mxu1 %v197_v63  ;;  %v7112_v63 = vld [vmem:[#allocation7 + $0x24] ss:$16 sps:$4 sm:$0xff]  }
  0xce   :  { %1229 = vmatpush1.bf16.msra.mxu0 %v7056_v2  ;;  %1455 = vmatpush1.bf16.msra.mxu1 %v7059_v3  ;;  %v140_v2 = vld [vmem:[#allocation2 + $0xb8] sm:$0xff]  ;;  %v7110_v3 = vld [vmem:[#allocation7 + $0x20] ss:$16 sps:$4 sm:$0xff]  }
  0xcf   :  { %1230 = vmatprep.subr.bf16.mxu0 %v7064_v4  ;;  %1456 = vmatprep.subr.bf16.mxu1 %v7067_v5  ;;  %v7113_v4 = vld [vmem:[#allocation7 + $0x28] ss:$16 sps:$4 sm:$0xff]   ;;  %v7118_v5 = vld [vmem:[#allocation7 + $0x44] ss:$16 sps:$4 sm:$0xff]   ;;  %v192_v10 = vpack.c.bf16 %v140_v2, %v136_v1 }
  0xd0   :  { %1181 = vmatprep.mubr.bf16.mxu0 %v202_v6  ;;  %1407 = vmatprep.mubr.bf16.mxu1 %v202_v6  ;;  %v7121_v6 = vld [vmem:[#allocation7 + $0x4c] ss:$16 sps:$4 sm:$0xff]   ;;  %v7167_v1 = vld [vmem:[#allocation7 + $0x148] ss:$16 sps:$4 sm:$0xff]  }
  0xd2   :  { %1231 = vmatpush1.bf16.msra.mxu0 %v7062_v7  ;;  %1457 = vmatpush1.bf16.msra.mxu1 %v7065_v8  ;;  %v187_v7 = vpack.c.bf16 %v131_v62, %v127_v61  ;;  %v7116_v8 = vld [vmem:[#allocation7 + $0x40] ss:$16 sps:$4 sm:$0xff]   ;;  %v7166_v61 = vld [vmem:[#allocation7 + $0x144] ss:$16 sps:$4 sm:$0xff]   ;;  %v7169_v62 = vld [vmem:[#allocation7 + $0x14c] ss:$16 sps:$4 sm:$0xff]  }
  0xd3   :  { %1232 = vmatprep.subr.bf16.mxu0 %v7070_v11  ;;  %1458 = vmatprep.subr.bf16.mxu1 %v7073_v12  ;;  %v7124_v11 = vld [vmem:[#allocation7 + $0x64] ss:$16 sps:$4 sm:$0xff]   ;;  %v7127_v12 = vld [vmem:[#allocation7 + $0x6c] ss:$16 sps:$4 sm:$0xff]  }
  0xd5   :  { %1182 = vmatmul.mubr.bf16.gmra.mrb[20].mxu0 %v201_v13  ;;  %1408 = vmatmul.mubr.bf16.gmra.mrb[20].mxu1 %v201_v13  ;;  %v135_v13 = vld [vmem:[#allocation2 + $0x90] sm:$0xff] }
  0xd6   :  { %1233 = vmatpush1.bf16.msra.mxu0 %v7068_v16  ;;  %1459 = vmatpush1.bf16.msra.mxu1 %v7071_v17  ;;  %v148_v16 = vld [vmem:[#allocation2 + $0xf8] sm:$0xff]  ;;  %v7122_v17 = vld [vmem:[#allocation7 + $0x60] ss:$16 sps:$4 sm:$0xff]  }
  0xd7   :  { %1234 = vmatprep.subr.bf16.mxu0 %v7076_v18  ;;  %1460 = vmatprep.subr.bf16.mxu1 %v7079_v19  ;;  %v7125_v18 = vld [vmem:[#allocation7 + $0x68] ss:$16 sps:$4 sm:$0xff]   ;;  %v7130_v19 = vld [vmem:[#allocation7 + $0x84] ss:$16 sps:$4 sm:$0xff]   ;;  %v196_v24 = vpack.c.bf16 %v148_v16, %v144_v15 }
  0xd8   :  { %1191 = vmatprep.mubr.bf16.mxu0 %v206_v22  ;;  %1417 = vmatprep.mubr.bf16.mxu1 %v206_v22  ;;  %v7128_v22 = vld [vmem:[#allocation7 + $0x80] ss:$16 sps:$4 sm:$0xff]   ;;  %v7173_v15 = vld [vmem:[#allocation7 + $0x168] ss:$16 sps:$4 sm:$0xff]   ;;  %v7178_v16 = vld [vmem:[#allocation7 + $0x184] ss:$16 sps:$4 sm:$0xff]  }
  0xda   :  { %1235 = vmatpush1.bf16.msra.mxu0 %v7074_v20  ;;  %1461 = vmatpush1.bf16.msra.mxu1 %v7077_v21  ;;  %v7133_v20 = vld [vmem:[#allocation7 + $0x8c] ss:$16 sps:$4 sm:$0xff]   ;;  %v191_v21 = vpack.c.bf16 %v139_v14, %v135_v13  ;;  %v7170_v14 = vld [vmem:[#allocation7 + $0x160] ss:$16 sps:$4 sm:$0xff]  }
  0xdb   :  { %1236 = vmatprep.subr.bf16.mxu0 %v7082_v25  ;;  %1462 = vmatprep.subr.bf16.mxu1 %v7085_v26  ;;  %v7136_v25 = vld [vmem:[#allocation7 + $0xa4] ss:$16 sps:$4 sm:$0xff]   ;;  %v7139_v26 = vld [vmem:[#allocation7 + $0xac] ss:$16 sps:$4 sm:$0xff]  }
  0xdc   :  { %v7175_v13 = vld [vmem:[#allocation7 + $0x16c] ss:$16 sps:$4 sm:$0xff]  }
  0xdd   :  { %1192 = vmatmul.mubr.bf16.gmra.mrb[24].mxu0 %v205_v29  ;;  %1418 = vmatmul.mubr.bf16.gmra.mrb[24].mxu1 %v205_v29  ;;  %v152_v29 = vld [vmem:[#allocation2 + $0x118] sm:$0xff] }
  0xde   :  { %1237 = vmatpush1.bf16.msra.mxu0 %v7080_v27  ;;  %1463 = vmatpush1.bf16.msra.mxu1 %v7083_v28  ;;  %v143_v27 = vld [vmem:[#allocation2 + $0xd0] sm:$0xff]  ;;  %v200_v38 = vpack.c.bf16 %v156_v30, %v152_v29  ;;  %v7199_v29 = vld [vmem:[#allocation7 + $0x1ec] ss:$16 sps:$4 sm:$0xff]  }
  0xdf   :  { %1238 = vmatprep.subr.bf16.mxu0 %v7088_v32  ;;  %1464 = vmatprep.subr.bf16.mxu1 %v7091_v33  ;;  %v147_v28 = vld [vmem:[#allocation2 + $0xf0] sm:$0xff]  ;;  %v7137_v32 = vld [vmem:[#allocation7 + $0xa8] ss:$16 sps:$4 sm:$0xff]  }
  0xe0   :  { %1201 = vmatprep.mubr.bf16.mxu0 %v210_v36  ;;  %1427 = vmatprep.mubr.bf16.mxu1 %v210_v36  ;;  %v7142_v33 = vld [vmem:[#allocation7 + $0xc4] ss:$16 sps:$4 sm:$0xff]   ;;  %v7140_v36 = vld [vmem:[#allocation7 + $0xc0] ss:$16 sps:$4 sm:$0xff]  }
  0xe1   :  { %v7194_v30 = vld [vmem:[#allocation7 + $0x1e0] ss:$16 sps:$4 sm:$0xff]  }
  0xe2   :  { %1239 = vmatpush1.bf16.msra.mxu0 %v7086_v34  ;;  %1465 = vmatpush1.bf16.msra.mxu1 %v7089_v35  ;;  %v7145_v34 = vld [vmem:[#allocation7 + $0xcc] ss:$16 sps:$4 sm:$0xff]   ;;  %v195_v35 = vpack.c.bf16 %v147_v28, %v143_v27  ;;  %v7191_v27 = vld [vmem:[#allocation7 + $0x1c8] ss:$16 sps:$4 sm:$0xff]   ;;  %v7196_v28 = vld [vmem:[#allocation7 + $0x1e4] ss:$16 sps:$4 sm:$0xff]  }
  0xe3   :  { %1240 = vmatprep.subr.bf16.mxu0 %v7094_v39  ;;  %1466 = vmatprep.subr.bf16.mxu1 %v7097_v40  ;;  %v7148_v39 = vld [vmem:[#allocation7 + $0xe4] ss:$16 sps:$4 sm:$0xff]   ;;  %v7151_v40 = vld [vmem:[#allocation7 + $0xec] ss:$16 sps:$4 sm:$0xff]  }
  0xe5   :  { %1202 = vmatmul.mubr.bf16.gmra.mrb[28].mxu0 %v209_v43  ;;  %1428 = vmatmul.mubr.bf16.gmra.mrb[28].mxu1 %v209_v43  ;;  %v160_v43 = vld [vmem:[#allocation2 + $0x158] sm:$0xff] }
  0xe6   :  { %1241 = vmatpush1.bf16.msra.mxu0 %v7092_v41  ;;  %1467 = vmatpush1.bf16.msra.mxu1 %v7095_v42  ;;  %v151_v41 = vld [vmem:[#allocation2 + $0x110] sm:$0xff]  ;;  %v204_v52 = vpack.c.bf16 %v164_v44, %v160_v43 }
  0xe7   :  { %1242 = vmatprep.subr.bf16.mxu0 %v7100_v46  ;;  %1468 = vmatprep.subr.bf16.mxu1 %v7103_v47  ;;  %v155_v42 = vld [vmem:[#allocation2 + $0x130] sm:$0xff]  ;;  %v7149_v46 = vld [vmem:[#allocation7 + $0xe8] ss:$16 sps:$4 sm:$0xff]  }
  0xe8   :  { %1244 = vmatprep.mubr.bf16.mxu0 %v184_v50  ;;  %1470 = vmatprep.mubr.bf16.mxu1 %v184_v50  ;;  %v7154_v47 = vld [vmem:[#allocation7 + $0x104] ss:$16 sps:$4 sm:$0xff]   ;;  %v7152_v50 = vld [vmem:[#allocation7 + $0x100] ss:$16 sps:$4 sm:$0xff]  }
  0xea   :  { %1243 = vmatpush1.bf16.msra.mxu0 %v7098_v48  ;;  %1469 = vmatpush1.bf16.msra.mxu1 %v7101_v49  ;;  %v7157_v48 = vld [vmem:[#allocation7 + $0x10c] ss:$16 sps:$4 sm:$0xff]   ;;  %v199_v49 = vpack.c.bf16 %v155_v42, %v151_v41 }
  0xeb   :  { %2437 = vmatprep.subr.bf16.mxu0 %v7106_v55  ;;  %2663 = vmatprep.subr.bf16.mxu1 %v7109_v56  ;;  %v159_v55 = vld [vmem:[#allocation2 + $0x150] sm:$0xff] }
  0xec   :  { %v163_v56 = vld [vmem:[#allocation2 + $0x170] sm:$0xff] }
  0xed   :  { %1245 = vmatmul.mubr.bf16.vlgmr.msra.gmra.mrb[0].mxu0 %v183_v57  ;;  %1471 = vmatmul.mubr.bf16.vlgmr.msra.gmra.mrb[0].mxu1 %v183_v57  ;;  %v168_v57 = vld [vmem:[#allocation2 + $0x198] sm:$0xff] }
  0xee   :  { %1254 = vmatprep.mubr.bf16.mxu0 %v188_v58  ;;  %1480 = vmatprep.mubr.bf16.mxu1 %v188_v58  ;;  %v172_v58 = vld [vmem:[#allocation2 + $0x1b8] sm:$0xff] }
  0xef   :  { %2438 = vmatpush1.bf16.msra.mxu0 %v7104_v59  ;;  %2664 = vmatpush1.bf16.msra.mxu1 %v7107_v60  ;;  %v7158_v59 = vld [vmem:[#allocation7 + $0x120] ss:$16 sps:$4 sm:$0xff]   ;;  %v7161_v60 = vld [vmem:[#allocation7 + $0x128] ss:$16 sps:$4 sm:$0xff]   ;;  %v208_v2 = vpack.c.bf16 %v172_v58, %v168_v57 }
  0xf0   :  { %2439 = vmatprep.subr.bf16.mxu0 %v7112_v63  ;;  %2665 = vmatprep.subr.bf16.mxu1 %v7115_v0  ;;  %v203_v63 = vpack.c.bf16 %v163_v56, %v159_v55  ;;  %v7164_v0 = vld [vmem:[#allocation7 + $0x140] ss:$16 sps:$4 sm:$0xff]  }
  0xf3   :  { %2440 = vmatpush1.bf16.msra.mxu0 %v7110_v3  ;;  %2666 = vmatpush1.bf16.msra.mxu1 %v7113_v4  ;;  %v167_v3 = vld [vmem:[#allocation2 + $0x190] sm:$0xff] }
  0xf4   :  { %2441 = vmatprep.subr.bf16.mxu0 %v7118_v5  ;;  %2667 = vmatprep.subr.bf16.mxu1 %v7121_v6  ;;  %v171_v4 = vld [vmem:[#allocation2 + $0x1b0] sm:$0xff]  ;;  %v176_v5 = vld [vmem:[#allocation2 + $0x1d8] sm:$0xff] }
  0xf5   :  { %1255 = vmatmul.mubr.bf16.gmra.mrb[4].mxu0 %v187_v7  ;;  %1481 = vmatmul.mubr.bf16.gmra.mrb[4].mxu1 %v187_v7  ;;  %v180_v6 = vld [vmem:[#allocation2 + $0x1f8] sm:$0xff]  ;;  %v207_v7 = vpack.c.bf16 %v171_v4, %v167_v3 }
  0xf6   :  { %1264 = vmatprep.mubr.bf16.mxu0 %v192_v10  ;;  %1490 = vmatprep.mubr.bf16.mxu1 %v192_v10  ;;  %v179_v10 = vld [vmem:[#allocation2 + $0x1f0] sm:$0xff] }
  0xf7   :  { %2442 = vmatpush1.bf16.msra.mxu0 %v7116_v8  ;;  %2668 = vmatpush1.bf16.msra.mxu1 %v7119_v9  ;;  %v212_v8 = vpack.c.bf16 %v180_v6, %v176_v5  ;;  %v175_v9 = vld [vmem:[#allocation2 + $0x1d0] sm:$0xff] }
  0xf8   :  { %2443 = vmatprep.subr.bf16.mxu0 %v7124_v11  ;;  %2669 = vmatprep.subr.bf16.mxu1 %v7127_v12  ;;  %v211_v11 = vpack.c.bf16 %v179_v10, %v175_v9  ;;  %v7172_v12 = vld [vmem:[#allocation7 + $0x164] ss:$16 sps:$4 sm:$0xff]  }
  0xfb   :  { %2444 = vmatpush1.bf16.msra.mxu0 %v7122_v17  ;;  %2670 = vmatpush1.bf16.msra.mxu1 %v7125_v18  ;;  %v7181_v17 = vld [vmem:[#allocation7 + $0x18c] ss:$16 sps:$4 sm:$0xff]   ;;  %v7176_v18 = vld [vmem:[#allocation7 + $0x180] ss:$16 sps:$4 sm:$0xff]  }
  0xfc   :  { %2445 = vmatprep.subr.bf16.mxu0 %v7130_v19  ;;  %2671 = vmatprep.subr.bf16.mxu1 %v7133_v20  ;;  %v7179_v19 = vld [vmem:[#allocation7 + $0x188] ss:$16 sps:$4 sm:$0xff]   ;;  %v7184_v20 = vld [vmem:[#allocation7 + $0x1a4] ss:$16 sps:$4 sm:$0xff]  }
  0xfd   :  { %1265 = vmatmul.mubr.bf16.gmra.mrb[8].mxu0 %v191_v21  ;;  %1491 = vmatmul.mubr.bf16.gmra.mrb[8].mxu1 %v191_v21  ;;  %v7187_v21 = vld [vmem:[#allocation7 + $0x1ac] ss:$16 sps:$4 sm:$0xff]  }
  0xfe   :  { %1274 = vmatprep.mubr.bf16.mxu0 %v196_v24  ;;  %1500 = vmatprep.mubr.bf16.mxu1 %v196_v24  ;;  %v7190_v24 = vld [vmem:[#allocation7 + $0x1c4] ss:$16 sps:$4 sm:$0xff]  }
  0xff   :  { %2446 = vmatpush1.bf16.msra.mxu0 %v7128_v22  ;;  %2672 = vmatpush1.bf16.msra.mxu1 %v7131_v23  ;;  %v7182_v22 = vld [vmem:[#allocation7 + $0x1a0] ss:$16 sps:$4 sm:$0xff]   ;;  %v7185_v23 = vld [vmem:[#allocation7 + $0x1a8] ss:$16 sps:$4 sm:$0xff]  }
 0x100   :  { %2447 = vmatprep.subr.bf16.mxu0 %v7136_v25  ;;  %2673 = vmatprep.subr.bf16.mxu1 %v7139_v26  ;;  %v7193_v25 = vld [vmem:[#allocation7 + $0x1cc] ss:$16 sps:$4 sm:$0xff]   ;;  %v7188_v26 = vld [vmem:[#allocation7 + $0x1c0] ss:$16 sps:$4 sm:$0xff]  }
 0x103   :  { %2448 = vmatpush1.bf16.msra.mxu0 %v7134_v31  ;;  %2674 = vmatpush1.bf16.msra.mxu1 %v7137_v32  ;;  %v7197_v31 = vld [vmem:[#allocation7 + $0x1e8] ss:$16 sps:$4 sm:$0xff]   ;;  %v7202_v32 = vld [vmem:[#allocation7 + $0x204] ss:$16 sps:$4 sm:$0xff]  }
 0x104   :  { %2449 = vmatprep.subr.bf16.mxu0 %v7142_v33  ;;  %2675 = vmatprep.subr.bf16.mxu1 %v7145_v34  ;;  %v7205_v33 = vld [vmem:[#allocation7 + $0x20c] ss:$16 sps:$4 sm:$0xff]   ;;  %v439_v34 = vlaneseq }
 0x105   :  { %1275 = vmatmul.mubr.bf16.gmra.mrb[12].mxu0 %v195_v35  ;;  %1501 = vmatmul.mubr.bf16.gmra.mrb[12].mxu1 %v195_v35 }
 0x106   :  { %1284 = vmatprep.mubr.bf16.mxu0 %v200_v38  ;;  %1510 = vmatprep.mubr.bf16.mxu1 %v200_v38  ;;  %v440_v35 = vshrl.u32 %v439_v34, 7  ;;  %v437_v38 = vld [vmem:[%s9446_s3] sm:$0xf] }
 0x107   :  { %2450 = vmatpush1.bf16.msra.mxu0 %v7140_v36  ;;  %2676 = vmatpush1.bf16.msra.mxu1 %v7143_v37 }
 0x108   :  { %2451 = vmatprep.subr.bf16.mxu0 %v7148_v39  ;;  %2677 = vmatprep.subr.bf16.mxu1 %v7151_v40  ;;  %v8551_v36 = vsub.s32 0, %v440_v35  ;;  %v8553_v37 = vsub.s32 2, %v440_v35  ;;  %v8558_v39 = vsub.s32 1, %v440_v35  ;;  %v8560_v40 = vsub.s32 3, %v440_v35 }
 0x10a   :  { %v8563_v41 = vrot.slane %v437_v38, %v8551_v36  ;;  %v8566_v42 = vrot.slane %v437_v38, %v8553_v37  ;;  %v8569_v43 = vrot.slane %v437_v38, %v8558_v39  ;;  %v8572_v44 = vrot.slane %v437_v38, %v8560_v40 }
 0x10b   :  { %2452 = vmatpush1.bf16.msra.mxu0 %v7146_v45  ;;  %2678 = vmatpush1.bf16.msra.mxu1 %v7149_v46 }
 0x10c   :  { %2453 = vmatprep.subr.bf16.mxu0 %v7154_v47  ;;  %2679 = vmatprep.subr.bf16.mxu1 %v7157_v48 }
 0x10d   :  { %1285 = vmatmul.mubr.bf16.gmra.mrb[16].mxu0 %v199_v49  ;;  %1511 = vmatmul.mubr.bf16.gmra.mrb[16].mxu1 %v199_v49 }
 0x10e   :  { %1294 = vmatprep.mubr.bf16.mxu0 %v204_v52  ;;  %1520 = vmatprep.mubr.bf16.mxu1 %v204_v52 }
 0x10f   :  { %2454 = vmatpush1.bf16.msra.mxu0 %v7152_v50  ;;  %2680 = vmatpush1.bf16.msra.mxu1 %v7155_v51 }
 0x110   :  { %2455 = vmatprep.subr.bf16.mxu0 %v7160_v53  ;;  %2681 = vmatprep.subr.bf16.mxu1 %v7163_v54 }
 0x113   :  { %2456 = vmatpush1.bf16.msra.mxu0 %v7158_v59  ;;  %2682 = vmatpush1.bf16.msra.mxu1 %v7161_v60 }
 0x114   :  { %2457 = vmatprep.subr.bf16.mxu0 %v7166_v61  ;;  %2683 = vmatprep.subr.bf16.mxu1 %v7169_v62 }
 0x115   :  { %1295 = vmatmul.mubr.bf16.gmra.mrb[20].mxu0 %v203_v63  ;;  %1521 = vmatmul.mubr.bf16.gmra.mrb[20].mxu1 %v203_v63 }
 0x116   :  { %1304 = vmatprep.mubr.bf16.mxu0 %v208_v2  ;;  %1530 = vmatprep.mubr.bf16.mxu1 %v208_v2 }
 0x117   :  { %2458 = vmatpush1.bf16.msra.mxu0 %v7164_v0  ;;  %2684 = vmatpush1.bf16.msra.mxu1 %v7167_v1 }
 0x118   :  { %2459 = vmatprep.subr.bf16.mxu0 %v7172_v12  ;;  %2685 = vmatprep.subr.bf16.mxu1 %v7175_v13 }
 0x11b   :  { %2460 = vmatpush1.bf16.msra.mxu0 %v7170_v14  ;;  %2686 = vmatpush1.bf16.msra.mxu1 %v7173_v15 }
 0x11c   :  { %2461 = vmatprep.subr.bf16.mxu0 %v7178_v16  ;;  %2687 = vmatprep.subr.bf16.mxu1 %v7181_v17 }
 0x11d   :  { %1305 = vmatmul.mubr.bf16.gmra.mrb[24].mxu0 %v207_v7  ;;  %1531 = vmatmul.mubr.bf16.gmra.mrb[24].mxu1 %v207_v7 }
 0x11e   :  { %1314 = vmatprep.mubr.bf16.mxu0 %v212_v8  ;;  %1540 = vmatprep.mubr.bf16.mxu1 %v212_v8 }
 0x11f   :  { %2462 = vmatpush1.bf16.msra.mxu0 %v7176_v18  ;;  %2688 = vmatpush1.bf16.msra.mxu1 %v7179_v19 }
 0x120   :  { %2463 = vmatprep.subr.bf16.mxu0 %v7184_v20  ;;  %2689 = vmatprep.subr.bf16.mxu1 %v7187_v21 }
 0x123   :  { %2464 = vmatpush1.bf16.msra.mxu0 %v7182_v22  ;;  %2690 = vmatpush1.bf16.msra.mxu1 %v7185_v23 }
 0x124   :  { %2465 = vmatprep.subr.bf16.mxu0 %v7190_v24  ;;  %2691 = vmatprep.subr.bf16.mxu1 %v7193_v25 }
 0x125   :  { %1315 = vmatmul.mubr.bf16.gmra.mrb[28].mxu0 %v211_v11  ;;  %1541 = vmatmul.mubr.bf16.gmra.mrb[28].mxu1 %v211_v11 }
 0x127   :  { %2466 = vmatpush1.bf16.msra.mxu0 %v7188_v26  ;;  %2692 = vmatpush1.bf16.msra.mxu1 %v7191_v27 }
 0x128   :  { %2467 = vmatprep.subr.bf16.mxu0 %v7196_v28  ;;  %2693 = vmatprep.subr.bf16.mxu1 %v7199_v29 }
 0x12b   :  { %2468 = vmatpush1.bf16.msra.mxu0 %v7194_v30  ;;  %2694 = vmatpush1.bf16.msra.mxu1 %v7197_v31 }
 0x12c   :  { %2550 = vmatprep.subr.bf16.mxu0 %v7202_v32  ;;  %2776 = vmatprep.subr.bf16.mxu1 %v7205_v33 }
 0x1c0   :  { %v1246_v45 = vpop.f32.mrb[0].mxu0  ;;  %v1472_v46 = vpop.f32.mrb[0].mxu1 }
 0x1c1   :  { %v6390_v47 = vadd.f32 %v1246_v45, %v8563_v41  ;;  %v6422_v48 = vadd.f32 %v1472_v46, %v8566_v42  ;;  %v1248_v49 = vpop.f32.mrb[1].mxu0  ;;  %v1474_v50 = vpop.f32.mrb[1].mxu1  ;;  %v7200_v46 = vld [vmem:[#allocation7 + $0x200] ss:$16 sps:$4 sm:$0xff]  }
 0x1c2   :  { %v6391_v51 = vadd.f32 %v1248_v49, %v8569_v43  ;;  %v6423_v52 = vadd.f32 %v1474_v50, %v8572_v44  ;;  %v1250_v53 = vpop.f32.mrb[2].mxu0  ;;  %v1476_v54 = vpop.f32.mrb[2].mxu1  ;;  %v7208_v50 = vld [vmem:[#allocation7 + $0x224] ss:$16 sps:$4 sm:$0xff]  }
 0x1c3   :  { %7680 = vtanh.f32 %v6390_v47  ;;  %v6392_v55 = vadd.f32 %v1250_v53, %v8563_v41  ;;  %v1252_v56 = vpop.f32.mrb[3].mxu0  ;;  %v1478_v57 = vpop.f32.mrb[3].mxu1  ;;  %v6424_v58 = vadd.f32 %v1476_v54, %v8566_v42  ;;  %v7203_v47 = vld [vmem:[#allocation7 + $0x208] ss:$16 sps:$4 sm:$0xff]  }
 0x1c4   :  { %7682 = vtanh.f32 %v6422_v48  ;;  %v6393_v59 = vadd.f32 %v1252_v56, %v8569_v43  ;;  %v6425_v60 = vadd.f32 %v1478_v57, %v8572_v44 }
 0x1c5   :  { %7684 = vtanh.f32 %v6391_v51  ;;  %v7211_v51 = vld [vmem:[#allocation7 + $0x22c] ss:$16 sps:$4 sm:$0xff]  }
 0x1c6   :  { %7686 = vtanh.f32 %v6423_v52 }
 0x1c7   :  { %7688 = vtanh.f32 %v6392_v55 }
 0x1c8   :  { %7690 = vtanh.f32 %v6424_v58  ;;  %v1256_v61 = vpop.f32.mrb[4].mxu0  ;;  %v1482_v62 = vpop.f32.mrb[4].mxu1 }
 0x1c9   :  { %7692 = vtanh.f32 %v6393_v59  ;;  %v6394_v63 = vadd.f32 %v1256_v61, %v8563_v41  ;;  %v6426_v0 = vadd.f32 %v1482_v62, %v8566_v42  ;;  %v1258_v1 = vpop.f32.mrb[5].mxu0  ;;  %v1484_v2 = vpop.f32.mrb[5].mxu1  ;;  %v7206_v59 = vld [vmem:[#allocation7 + $0x220] ss:$16 sps:$4 sm:$0xff]  }
 0x1ca   :  { %7694 = vtanh.f32 %v6425_v60  ;;  %v6395_v3 = vadd.f32 %v1258_v1, %v8569_v43  ;;  %v6427_v4 = vadd.f32 %v1484_v2, %v8572_v44  ;;  %v1260_v5 = vpop.f32.mrb[6].mxu0  ;;  %v1486_v6 = vpop.f32.mrb[6].mxu1  ;;  %v7209_v60 = vld [vmem:[#allocation7 + $0x228] ss:$16 sps:$4 sm:$0xff]   ;;  %v7214_v2 = vld [vmem:[#allocation7 + $0x244] ss:$16 sps:$4 sm:$0xff]  }
 0x1cb   :  { %7696 = vtanh.f32 %v6394_v63  ;;  %v6396_v7 = vadd.f32 %v1260_v5, %v8563_v41  ;;  %v1262_v8 = vpop.f32.mrb[7].mxu0  ;;  %v1488_v9 = vpop.f32.mrb[7].mxu1  ;;  %v6428_v10 = vadd.f32 %v1486_v6, %v8566_v42 }
 0x1cc   :  { %7698 = vtanh.f32 %v6426_v0  ;;  %v6397_v12 = vadd.f32 %v1262_v8, %v8569_v43  ;;  %v6429_v14 = vadd.f32 %v1488_v9, %v8572_v44 }
 0x1cd   :  { %v7681_v11 = vpop.eup %7680  ;;  %7700 = vtanh.f32 %v6395_v3  ;;  %v7217_v3 = vld [vmem:[#allocation7 + $0x24c] ss:$16 sps:$4 sm:$0xff]  }
 0x1ce   :  { %v7683_v13 = vpop.eup %7682  ;;  %7702 = vtanh.f32 %v6427_v4 }
 0x1cf   :  { %v7685_v15 = vpop.eup %7684  ;;  %7704 = vtanh.f32 %v6396_v7 }
 0x1d0   :  { %v7687_v16 = vpop.eup %7686  ;;  %7706 = vtanh.f32 %v6428_v10  ;;  %v1266_v17 = vpop.f32.mrb[8].mxu0 }
 0x1d1   :  { %v1492_v18 = vpop.f32.mrb[8].mxu1  ;;  %v7689_v19 = vpop.eup %7688  ;;  %7708 = vtanh.f32 %v6397_v12  ;;  %v6398_v20 = vadd.f32 %v1266_v17, %v8563_v41 }
 0x1d2   :  { %v6430_v21 = vadd.f32 %v1492_v18, %v8566_v42  ;;  %v1268_v22 = vpop.f32.mrb[9].mxu0  ;;  %v1494_v23 = vpop.f32.mrb[9].mxu1  ;;  %7710 = vtanh.f32 %v6429_v14  ;;  %v1615_v29 = vpack.c.bf16 %v7689_v19, %v7681_v11  ;;  %v7212_v18 = vld [vmem:[#allocation7 + $0x240] ss:$16 sps:$4 sm:$0xff]   ;;  %v7215_v19 = vld [vmem:[#allocation7 + $0x248] ss:$16 sps:$4 sm:$0xff]  }
 0x1d3   :  { %v7691_v24 = vpop.eup %7690  ;;  %v6399_v25 = vadd.f32 %v1268_v22, %v8569_v43  ;;  %v6431_v26 = vadd.f32 %v1494_v23, %v8572_v44  ;;  %v1270_v27 = vpop.f32.mrb[10].mxu0  ;;  %7712 = vtanh.f32 %v6398_v20  ;;  %v7220_v22 = vld [vmem:[#allocation7 + $0x264] ss:$16 sps:$4 sm:$0xff]   ;;  %v7223_v23 = vld [vmem:[#allocation7 + $0x26c] ss:$16 sps:$4 sm:$0xff]  }
 0x1d4   :  { %v1496_v28 = vpop.f32.mrb[10].mxu1  ;;  %v7693_v30 = vpop.eup %7692  ;;  %v6400_v31 = vadd.f32 %v1270_v27, %v8563_v41  ;;  %v8595_v34 = vpack.c.bf16 %v7691_v24, %v7683_v13  ;;  %7714 = vtanh.f32 %v6430_v21 }
 0x1d5   :  { %v1272_v32 = vpop.f32.mrb[11].mxu0  ;;  %v1498_v33 = vpop.f32.mrb[11].mxu1  ;;  %v6432_v38 = vadd.f32 %v1496_v28, %v8566_v42  ;;  %v1616_v45 = vpack.c.bf16 %v7693_v30, %v7685_v15  ;;  %7716 = vtanh.f32 %v6399_v25 }
 0x1d6   :  { %v7695_v35 = vpop.eup %7694  ;;  %v6401_v49 = vadd.f32 %v1272_v32, %v8569_v43  ;;  %7718 = vtanh.f32 %v6431_v26  ;;  %v6433_v54 = vadd.f32 %v1498_v33, %v8572_v44  ;;  %v7221_v32 = vld [vmem:[#allocation7 + $0x268] ss:$16 sps:$4 sm:$0xff]  }
 0x1d7   :  { %v7697_v48 = vpop.eup %7696  ;;  %v8599_v52 = vpack.c.bf16 %v7695_v35, %v7687_v16  ;;  %2469 = vmatprep.mubr.bf16.mxu0 %v1616_v45  ;;  %2695 = vmatprep.mubr.bf16.mxu1 %v1616_v45  ;;  %7720 = vtanh.f32 %v6400_v31  ;;  %v7218_v31 = vld [vmem:[#allocation7 + $0x260] ss:$16 sps:$4 sm:$0xff]  }
 0x1d8   :  { %v7699_v53 = vpop.eup %7698  ;;  %2470 = vmatmul.mubr.bf16.vlgmr.msra.gmra.mrb[32].mxu0 %v1615_v29  ;;  %2696 = vmatmul.mubr.bf16.vlgmr.msra.gmra.mrb[32].mxu1 %v1615_v29  ;;  %7722 = vtanh.f32 %v6432_v38  ;;  %v1276_v57 = vpop.f32.mrb[12].mxu0 }
 0x1d9   :  { %v7701_v55 = vpop.eup %7700  ;;  %2551 = vmatpush1.bf16.msra.mxu0 %v7200_v46  ;;  %2777 = vmatpush1.bf16.msra.mxu1 %v7203_v47  ;;  %v1502_v58 = vpop.f32.mrb[12].mxu1  ;;  %7724 = vtanh.f32 %v6401_v49  ;;  %v6402_v62 = vadd.f32 %v1276_v57, %v8563_v41  ;;  %v7226_v47 = vld [vmem:[#allocation7 + $0x284] ss:$16 sps:$4 sm:$0xff]  }
 0x1da   :  { %v7703_v56 = vpop.eup %7702  ;;  %v6434_v63 = vadd.f32 %v1502_v58, %v8566_v42  ;;  %2552 = vmatprep.subr.bf16.mxu0 %v7208_v50  ;;  %2778 = vmatprep.subr.bf16.mxu1 %v7211_v51  ;;  %v1278_v0 = vpop.f32.mrb[13].mxu0  ;;  %7726 = vtanh.f32 %v6433_v54 }
 0x1db   :  { %v7705_v61 = vpop.eup %7704  ;;  %v1504_v1 = vpop.f32.mrb[13].mxu1  ;;  %v6403_v5 = vadd.f32 %v1278_v0, %v8569_v43  ;;  %7728 = vtanh.f32 %v6402_v62  ;;  %v7224_v0 = vld [vmem:[#allocation7 + $0x280] ss:$16 sps:$4 sm:$0xff]  }
 0x1dc   :  { %v7707_v4 = vpop.eup %7706  ;;  %v6435_v6 = vadd.f32 %v1504_v1, %v8572_v44  ;;  %v1280_v7 = vpop.f32.mrb[14].mxu0  ;;  %v1619_v9 = vpack.c.bf16 %v7705_v61, %v7697_v48  ;;  %7730 = vtanh.f32 %v6434_v63  ;;  %v7229_v48 = vld [vmem:[#allocation7 + $0x28c] ss:$16 sps:$4 sm:$0xff]   ;;  %v7227_v1 = vld [vmem:[#allocation7 + $0x288] ss:$16 sps:$4 sm:$0xff]  }
 0x1dd   :  { %v1506_v8 = vpop.f32.mrb[14].mxu1  ;;  %v7709_v10 = vpop.eup %7708  ;;  %v6404_v11 = vadd.f32 %v1280_v7, %v8563_v41  ;;  %v8607_v14 = vpack.c.bf16 %v7707_v4, %v7699_v53  ;;  %2553 = vmatpush1.bf16.msra.mxu0 %v7206_v59  ;;  %2779 = vmatpush1.bf16.msra.mxu1 %v7209_v60  ;;  %7732 = vtanh.f32 %v6403_v5  ;;  %v7232_v4 = vld [vmem:[#allocation7 + $0x2a4] ss:$16 sps:$4 sm:$0xff]   ;;  %v7235_v5 = vld [vmem:[#allocation7 + $0x2ac] ss:$16 sps:$4 sm:$0xff]  }
 0x1de   :  { %v1282_v12 = vpop.f32.mrb[15].mxu0  ;;  %v1508_v13 = vpop.f32.mrb[15].mxu1  ;;  %v6436_v16 = vadd.f32 %v1506_v8, %v8566_v42  ;;  %v1620_v17 = vpack.c.bf16 %v7709_v10, %v7701_v55  ;;  %2554 = vmatprep.subr.bf16.mxu0 %v7214_v2  ;;  %2780 = vmatprep.subr.bf16.mxu1 %v7217_v3  ;;  %7734 = vtanh.f32 %v6435_v6 }
 0x1df   :  { %v7711_v15 = vpop.eup %7710  ;;  %v6405_v21 = vadd.f32 %v1282_v12, %v8569_v43  ;;  %v6437_v26 = vadd.f32 %v1508_v13, %v8572_v44  ;;  %7736 = vtanh.f32 %v6404_v11  ;;  %v7230_v13 = vld [vmem:[#allocation7 + $0x2a0] ss:$16 sps:$4 sm:$0xff]  }
 0x1e0   :  { %v7713_v20 = vpop.eup %7712  ;;  %v8611_v24 = vpack.c.bf16 %v7711_v15, %v7703_v56  ;;  %2479 = vmatprep.mubr.bf16.mxu0 %v1620_v17  ;;  %2705 = vmatprep.mubr.bf16.mxu1 %v1620_v17  ;;  %7738 = vtanh.f32 %v6436_v16  ;;  %v1286_v29 = vpop.f32.mrb[16].mxu0  ;;  %v7233_v15 = vld [vmem:[#allocation7 + $0x2a8] ss:$16 sps:$4 sm:$0xff]  }
 0x1e1   :  { %v7715_v25 = vpop.eup %7714  ;;  %2480 = vmatmul.mubr.bf16.gmra.mrb[36].mxu0 %v1619_v9  ;;  %2706 = vmatmul.mubr.bf16.gmra.mrb[36].mxu1 %v1619_v9  ;;  %v1512_v30 = vpop.f32.mrb[16].mxu1  ;;  %7740 = vtanh.f32 %v6405_v21  ;;  %v6406_v35 = vadd.f32 %v1286_v29, %v8563_v41  ;;  %v7238_v21 = vld [vmem:[#allocation7 + $0x2c4] ss:$16 sps:$4 sm:$0xff]  }
 0x1e2   :  { %v7717_v27 = vpop.eup %7716  ;;  %2555 = vmatpush1.bf16.msra.mxu0 %v7212_v18  ;;  %2781 = vmatpush1.bf16.msra.mxu1 %v7215_v19  ;;  %v6438_v38 = vadd.f32 %v1512_v30, %v8566_v42  ;;  %v1288_v45 = vpop.f32.mrb[17].mxu0  ;;  %7742 = vtanh.f32 %v6437_v26 }
 0x1e3   :  { %v7719_v28 = vpop.eup %7718  ;;  %2556 = vmatprep.subr.bf16.mxu0 %v7220_v22  ;;  %2782 = vmatprep.subr.bf16.mxu1 %v7223_v23  ;;  %v1514_v46 = vpop.f32.mrb[17].mxu1  ;;  %v6407_v50 = vadd.f32 %v1288_v45, %v8569_v43  ;;  %7744 = vtanh.f32 %v6406_v35  ;;  %v7241_v22 = vld [vmem:[#allocation7 + $0x2cc] ss:$16 sps:$4 sm:$0xff]  }
 0x1e4   :  { %v7721_v33 = vpop.eup %7720  ;;  %v6439_v51 = vadd.f32 %v1514_v46, %v8572_v44  ;;  %v1290_v53 = vpop.f32.mrb[18].mxu0  ;;  %7746 = vtanh.f32 %v6438_v38 }
 0x1e5   :  { %v7723_v49 = vpop.eup %7722  ;;  %v1516_v54 = vpop.f32.mrb[18].mxu1  ;;  %v1623_v55 = vpack.c.bf16 %v7721_v33, %v7713_v20  ;;  %v6408_v57 = vadd.f32 %v1290_v53, %v8563_v41  ;;  %7748 = vtanh.f32 %v6407_v50  ;;  %v7247_v53 = vld [vmem:[#allocation7 + $0x2ec] ss:$16 sps:$4 sm:$0xff]  }
 0x1e6   :  { %v7725_v56 = vpop.eup %7724  ;;  %v1292_v58 = vpop.f32.mrb[19].mxu0  ;;  %v8619_v60 = vpack.c.bf16 %v7723_v49, %v7715_v25  ;;  %2557 = vmatpush1.bf16.msra.mxu0 %v7218_v31  ;;  %2783 = vmatpush1.bf16.msra.mxu1 %v7221_v32  ;;  %v6440_v62 = vadd.f32 %v1516_v54, %v8566_v42  ;;  %7750 = vtanh.f32 %v6439_v51  ;;  %v7244_v51 = vld [vmem:[#allocation7 + $0x2e4] ss:$16 sps:$4 sm:$0xff]  }
 0x1e7   :  { %v1518_v59 = vpop.f32.mrb[19].mxu1  ;;  %v7727_v61 = vpop.eup %7726  ;;  %v1624_v63 = vpack.c.bf16 %v7725_v56, %v7717_v27  ;;  %v6409_v3 = vadd.f32 %v1292_v58, %v8569_v43  ;;  %2558 = vmatprep.subr.bf16.mxu0 %v7226_v47  ;;  %2784 = vmatprep.subr.bf16.mxu1 %v7229_v48  ;;  %7752 = vtanh.f32 %v6408_v57  ;;  %v7236_v47 = vld [vmem:[#allocation7 + $0x2c0] ss:$16 sps:$4 sm:$0xff]   ;;  %v7239_v48 = vld [vmem:[#allocation7 + $0x2c8] ss:$16 sps:$4 sm:$0xff]  }
 0x1e8   :  { %v7729_v2 = vpop.eup %7728  ;;  %v8623_v6 = vpack.c.bf16 %v7727_v61, %v7719_v28  ;;  %v6441_v8 = vadd.f32 %v1518_v59, %v8572_v44  ;;  %7754 = vtanh.f32 %v6440_v62  ;;  %v1296_v11 = vpop.f32.mrb[20].mxu0  ;;  %v7242_v62 = vld [vmem:[#allocation7 + $0x2e0] ss:$16 sps:$4 sm:$0xff]  }
 0x1e9   :  { %v7731_v7 = vpop.eup %7730  ;;  %2489 = vmatprep.mubr.bf16.mxu0 %v1624_v63  ;;  %2715 = vmatprep.mubr.bf16.mxu1 %v1624_v63  ;;  %v1522_v12 = vpop.f32.mrb[20].mxu1  ;;  %7756 = vtanh.f32 %v6409_v3  ;;  %v6410_v17 = vadd.f32 %v1296_v11, %v8563_v41  ;;  %v7245_v63 = vld [vmem:[#allocation7 + $0x2e8] ss:$16 sps:$4 sm:$0xff]  }
 0x1ea   :  { %v7733_v9 = vpop.eup %7732  ;;  %2490 = vmatmul.mubr.bf16.gmra.mrb[40].mxu0 %v1623_v55  ;;  %2716 = vmatmul.mubr.bf16.gmra.mrb[40].mxu1 %v1623_v55  ;;  %v6442_v18 = vadd.f32 %v1522_v12, %v8566_v42  ;;  %v1298_v19 = vpop.f32.mrb[21].mxu0  ;;  %7758 = vtanh.f32 %v6441_v8 }
 0x1eb   :  { %v7735_v10 = vpop.eup %7734  ;;  %2559 = vmatpush1.bf16.msra.mxu0 %v7224_v0  ;;  %2785 = vmatpush1.bf16.msra.mxu1 %v7227_v1  ;;  %v1524_v20 = vpop.f32.mrb[21].mxu1  ;;  %v6411_v25 = vadd.f32 %v1298_v19, %v8569_v43  ;;  %7760 = vtanh.f32 %v6410_v17 }
 0x1ec   :  { %v7737_v16 = vpop.eup %7736  ;;  %2560 = vmatprep.subr.bf16.mxu0 %v7232_v4  ;;  %2786 = vmatprep.subr.bf16.mxu1 %v7235_v5  ;;  %v6443_v26 = vadd.f32 %v1524_v20, %v8572_v44  ;;  %v1300_v27 = vpop.f32.mrb[22].mxu0  ;;  %7762 = vtanh.f32 %v6442_v18  ;;  %v7250_v5 = vld [vmem:[#allocation7 + $0x304] ss:$16 sps:$4 sm:$0xff]  }
 0x1ed   :  { %v7739_v23 = vpop.eup %7738  ;;  %v1526_v28 = vpop.f32.mrb[22].mxu1  ;;  %v1627_v29 = vpack.c.bf16 %v7737_v16, %v7729_v2  ;;  %v6412_v31 = vadd.f32 %v1300_v27, %v8563_v41  ;;  %7764 = vtanh.f32 %v6411_v25  ;;  %v7251_v25 = vld [vmem:[#allocation7 + $0x308] ss:$16 sps:$4 sm:$0xff]  }
 0x1ee   :  { %v7741_v30 = vpop.eup %7740  ;;  %v1302_v32 = vpop.f32.mrb[23].mxu0  ;;  %v8631_v35 = vpack.c.bf16 %v7739_v23, %v7731_v7  ;;  %v6444_v45 = vadd.f32 %v1526_v28, %v8566_v42  ;;  %7766 = vtanh.f32 %v6443_v26  ;;  %v7253_v7 = vld [vmem:[#allocation7 + $0x30c] ss:$16 sps:$4 sm:$0xff]   ;;  %v7248_v23 = vld [vmem:[#allocation7 + $0x300] ss:$16 sps:$4 sm:$0xff]  }
 0x1ef   :  { %v1528_v33 = vpop.f32.mrb[23].mxu1  ;;  %v7743_v38 = vpop.eup %7742  ;;  %2561 = vmatpush1.bf16.msra.mxu0 %v7230_v13  ;;  %2787 = vmatpush1.bf16.msra.mxu1 %v7233_v15  ;;  %v1628_v46 = vpack.c.bf16 %v7741_v30, %v7733_v9  ;;  %v6413_v50 = vadd.f32 %v1302_v32, %v8569_v43  ;;  %7768 = vtanh.f32 %v6412_v31  ;;  %v7256_v28 = vld [vmem:[#allocation7 + $0x324] ss:$16 sps:$4 sm:$0xff]  }
 0x1f0   :  { %v7745_v49 = vpop.eup %7744  ;;  %2562 = vmatprep.subr.bf16.mxu0 %v7238_v21  ;;  %2788 = vmatprep.subr.bf16.mxu1 %v7241_v22  ;;  %v8635_v54 = vpack.c.bf16 %v7743_v38, %v7735_v10  ;;  %v6445_v56 = vadd.f32 %v1528_v33, %v8572_v44  ;;  %7770 = vtanh.f32 %v6444_v45  ;;  %v1306_v59 = vpop.f32.mrb[24].mxu0 }
 0x1f1   :  { %v7747_v55 = vpop.eup %7746  ;;  %2499 = vmatprep.mubr.bf16.mxu0 %v1628_v46  ;;  %2725 = vmatprep.mubr.bf16.mxu1 %v1628_v46  ;;  %v1532_v61 = vpop.f32.mrb[24].mxu1  ;;  %7772 = vtanh.f32 %v6413_v50  ;;  %v6414_v1 = vadd.f32 %v1306_v59, %v8563_v41 }
 0x1f2   :  { %v7749_v57 = vpop.eup %7748  ;;  %2500 = vmatmul.mubr.bf16.gmra.mrb[44].mxu0 %v1627_v29  ;;  %2726 = vmatmul.mubr.bf16.gmra.mrb[44].mxu1 %v1627_v29  ;;  %v6446_v2 = vadd.f32 %v1532_v61, %v8566_v42  ;;  %v1308_v3 = vpop.f32.mrb[25].mxu0  ;;  %7774 = vtanh.f32 %v6445_v56  ;;  %v7259_v29 = vld [vmem:[#allocation7 + $0x32c] ss:$16 sps:$4 sm:$0xff]   ;;  %v7262_v56 = vld [vmem:[#allocation7 + $0x344] ss:$16 sps:$4 sm:$0xff]  }
 0x1f3   :  { %v7751_v58 = vpop.eup %7750  ;;  %2563 = vmatpush1.bf16.msra.mxu0 %v7236_v47  ;;  %2789 = vmatpush1.bf16.msra.mxu1 %v7239_v48  ;;  %v1534_v4 = vpop.f32.mrb[25].mxu1  ;;  %v6415_v9 = vadd.f32 %v1308_v3, %v8569_v43  ;;  %7776 = vtanh.f32 %v6414_v1  ;;  %v7254_v47 = vld [vmem:[#allocation7 + $0x320] ss:$16 sps:$4 sm:$0xff]   ;;  %v7257_v48 = vld [vmem:[#allocation7 + $0x328] ss:$16 sps:$4 sm:$0xff]  }
 0x1f4   :  { %v7753_v0 = vpop.eup %7752  ;;  %2564 = vmatprep.subr.bf16.mxu0 %v7244_v51  ;;  %2790 = vmatprep.subr.bf16.mxu1 %v7247_v53  ;;  %v6447_v10 = vadd.f32 %v1534_v4, %v8572_v44  ;;  %v1310_v11 = vpop.f32.mrb[26].mxu0  ;;  %7778 = vtanh.f32 %v6446_v2 }
 0x1f5   :  { %v7755_v8 = vpop.eup %7754  ;;  %v1536_v12 = vpop.f32.mrb[26].mxu1  ;;  %v1631_v13 = vpack.c.bf16 %v7753_v0, %v7745_v49  ;;  %v6416_v16 = vadd.f32 %v1310_v11, %v8563_v41  ;;  %7780 = vtanh.f32 %v6415_v9  ;;  %v7263_v11 = vld [vmem:[#allocation7 + $0x348] ss:$16 sps:$4 sm:$0xff]  }
 0x1f6   :  { %v7757_v15 = vpop.eup %7756  ;;  %v1312_v17 = vpop.f32.mrb[27].mxu0  ;;  %v8643_v19 = vpack.c.bf16 %v7755_v8, %v7747_v55  ;;  %v6448_v21 = vadd.f32 %v1536_v12, %v8566_v42  ;;  %7782 = vtanh.f32 %v6447_v10  ;;  %v7260_v10 = vld [vmem:[#allocation7 + $0x340] ss:$16 sps:$4 sm:$0xff]  }
 0x1f7   :  { %v1538_v18 = vpop.f32.mrb[27].mxu1  ;;  %v7759_v20 = vpop.eup %7758  ;;  %2565 = vmatpush1.bf16.msra.mxu0 %v7242_v62  ;;  %2791 = vmatpush1.bf16.msra.mxu1 %v7245_v63  ;;  %v1632_v22 = vpack.c.bf16 %v7757_v15, %v7749_v57  ;;  %v6417_v27 = vadd.f32 %v1312_v17, %v8569_v43  ;;  %7784 = vtanh.f32 %v6416_v16  ;;  %v7265_v57 = vld [vmem:[#allocation7 + $0x34c] ss:$16 sps:$4 sm:$0xff]  }
 0x1f8   :  { %v7761_v26 = vpop.eup %7760  ;;  %2566 = vmatprep.subr.bf16.mxu0 %v7250_v5  ;;  %2792 = vmatprep.subr.bf16.mxu1 %v7253_v7  ;;  %v8647_v30 = vpack.c.bf16 %v7759_v20, %v7751_v58  ;;  %v6449_v32 = vadd.f32 %v1538_v18, %v8572_v44  ;;  %7786 = vtanh.f32 %v6448_v21  ;;  %v1316_v45 = vpop.f32.mrb[28].mxu0  ;;  %v7271_v15 = vld [vmem:[#allocation7 + $0x36c] ss:$16 sps:$4 sm:$0xff]   ;;  %v7269_v21 = vld [vmem:[#allocation7 + $0x368] ss:$16 sps:$4 sm:$0xff]  }
 0x1f9   :  { %v7763_v31 = vpop.eup %7762  ;;  %2509 = vmatprep.mubr.bf16.mxu0 %v1632_v22  ;;  %2735 = vmatprep.mubr.bf16.mxu1 %v1632_v22  ;;  %v1542_v46 = vpop.f32.mrb[28].mxu1  ;;  %7788 = vtanh.f32 %v6417_v27  ;;  %v6418_v50 = vadd.f32 %v1316_v45, %v8563_v41  ;;  %v7280_v45 = vld [vmem:[#allocation7 + $0x3a4] ss:$16 sps:$4 sm:$0xff]  }
 0x1fa   :  { %v7765_v33 = vpop.eup %7764  ;;  %2510 = vmatmul.mubr.bf16.gmra.mrb[48].mxu0 %v1631_v13  ;;  %2736 = vmatmul.mubr.bf16.gmra.mrb[48].mxu1 %v1631_v13  ;;  %v6450_v51 = vadd.f32 %v1542_v46, %v8566_v42  ;;  %v1318_v53 = vpop.f32.mrb[29].mxu0  ;;  %7790 = vtanh.f32 %v6449_v32  ;;  %v7272_v32 = vld [vmem:[#allocation7 + $0x380] ss:$16 sps:$4 sm:$0xff]   ;;  %v7283_v46 = vld [vmem:[#allocation7 + $0x3ac] ss:$16 sps:$4 sm:$0xff]  }
 0x1fb   :  { %v7767_v38 = vpop.eup %7766  ;;  %2567 = vmatpush1.bf16.msra.mxu0 %v7248_v23  ;;  %2793 = vmatpush1.bf16.msra.mxu1 %v7251_v25  ;;  %v1544_v55 = vpop.f32.mrb[29].mxu1  ;;  %v6419_v59 = vadd.f32 %v1318_v53, %v8569_v43  ;;  %7792 = vtanh.f32 %v6418_v50  ;;  %v7274_v23 = vld [vmem:[#allocation7 + $0x384] ss:$16 sps:$4 sm:$0xff]   ;;  %v7277_v25 = vld [vmem:[#allocation7 + $0x38c] ss:$16 sps:$4 sm:$0xff]  }
 0x1fc   :  { %v7769_v49 = vpop.eup %7768  ;;  %2568 = vmatprep.subr.bf16.mxu0 %v7256_v28  ;;  %2794 = vmatprep.subr.bf16.mxu1 %v7259_v29  ;;  %v6451_v61 = vadd.f32 %v1544_v55, %v8572_v44  ;;  %v1320_v62 = vpop.f32.mrb[30].mxu0  ;;  %7794 = vtanh.f32 %v6450_v51  ;;  %v7278_v51 = vld [vmem:[#allocation7 + $0x3a0] ss:$16 sps:$4 sm:$0xff]   ;;  %v7281_v53 = vld [vmem:[#allocation7 + $0x3a8] ss:$16 sps:$4 sm:$0xff]  }
 0x1fd   :  { %v7771_v58 = vpop.eup %7770  ;;  %v1546_v63 = vpop.f32.mrb[30].mxu1  ;;  %v1635_v0 = vpack.c.bf16 %v7769_v49, %v7761_v26  ;;  %v6420_v2 = vadd.f32 %v1320_v62, %v8563_v41  ;;  %7796 = vtanh.f32 %v6419_v59  ;;  %v7268_v41 = vld [vmem:[#allocation7 + $0x364] ss:$16 sps:$4 sm:$0xff]  }
 0x1fe   :  { %v7773_v1 = vpop.eup %7772  ;;  %v1322_v3 = vpop.f32.mrb[31].mxu0  ;;  %v8655_v5 = vpack.c.bf16 %v7771_v58, %v7763_v31  ;;  %v6452_v8 = vadd.f32 %v1546_v63, %v8566_v42  ;;  %7798 = vtanh.f32 %v6451_v61 }
 0x1ff   :  { %v1548_v4 = vpop.f32.mrb[31].mxu1  ;;  %v7775_v7 = vpop.eup %7774  ;;  %2569 = vmatpush1.bf16.msra.mxu0 %v7254_v47  ;;  %2795 = vmatpush1.bf16.msra.mxu1 %v7257_v48  ;;  %v1636_v9 = vpack.c.bf16 %v7773_v1, %v7765_v33  ;;  %v6421_v13 = vadd.f32 %v1322_v3, %v8569_v43  ;;  %7800 = vtanh.f32 %v6420_v2  ;;  %v7266_v43 = vld [vmem:[#allocation7 + $0x360] ss:$16 sps:$4 sm:$0xff]   ;;  %v7275_v33 = vld [vmem:[#allocation7 + $0x388] ss:$16 sps:$4 sm:$0xff]  }
 0x200   :  { %v7777_v12 = vpop.eup %7776  ;;  %2570 = vmatprep.subr.bf16.mxu0 %v7262_v56  ;;  %2796 = vmatprep.subr.bf16.mxu1 %v7265_v57  ;;  %v8659_v16 = vpack.c.bf16 %v7775_v7, %v7767_v38  ;;  %v6453_v18 = vadd.f32 %v1548_v4, %v8572_v44  ;;  %7802 = vtanh.f32 %v6452_v8  ;;  %v7286_v56 = vld [vmem:[#allocation7 + $0x3c4] ss:$16 sps:$4 sm:$0xff]   ;;  %v7289_v57 = vld [vmem:[#allocation7 + $0x3cc] ss:$16 sps:$4 sm:$0xff]   ;;  %v7284_v1 = vld [vmem:[#allocation7 + $0x3c0] ss:$16 sps:$4 sm:$0xff]  }
 0x201   :  { %v7779_v17 = vpop.eup %7778  ;;  %2519 = vmatprep.mubr.bf16.mxu0 %v1636_v9  ;;  %2745 = vmatprep.mubr.bf16.mxu1 %v1636_v9  ;;  %7804 = vtanh.f32 %v6421_v13  ;;  %v7287_v2 = vld [vmem:[#allocation7 + $0x3c8] ss:$16 sps:$4 sm:$0xff]   ;;  %v7292_v4 = vld [vmem:[#allocation7 + $0x3e4] ss:$16 sps:$4 sm:$0xff]   ;;  %v7295_v7 = vld [vmem:[#allocation7 + $0x3ec] ss:$16 sps:$4 sm:$0xff]  }
 0x202   :  { %v7781_v42 = vpop.eup %7780  ;;  %2520 = vmatmul.mubr.bf16.gmra.mrb[52].mxu0 %v1635_v0  ;;  %2746 = vmatmul.mubr.bf16.gmra.mrb[52].mxu1 %v1635_v0  ;;  %7806 = vtanh.f32 %v6453_v18  ;;  %v7290_v8 = vld [vmem:[#allocation7 + $0x3e0] ss:$16 sps:$4 sm:$0xff]   ;;  %v7293_v9 = vld [vmem:[#allocation7 + $0x3e8] ss:$16 sps:$4 sm:$0xff]   ;;  %v7310_v18 = vld [vmem:[#allocation9 + $0x44] ss:$16 sps:$4 sm:$0xff]  }
 0x203   :  { %v7783_v20 = vpop.eup %7782  ;;  %2571 = vmatpush1.bf16.msra.mxu0 %v7260_v10  ;;  %2797 = vmatpush1.bf16.msra.mxu1 %v7263_v11  ;;  %v7298_v10 = vld [vmem:[#allocation9 + $0x4] ss:$16 sps:$4 sm:$0xff]   ;;  %v7301_v11 = vld [vmem:[#allocation9 + $0xc] ss:$16 sps:$4 sm:$0xff]   ;;  %v7299_v13 = vld [vmem:[#allocation9 + $0x8] ss:$16 sps:$4 sm:$0xff]  }
 0x204   :  { %v7785_v22 = vpop.eup %7784  ;;  %2572 = vmatprep.subr.bf16.mxu0 %v7268_v41  ;;  %2798 = vmatprep.subr.bf16.mxu1 %v7271_v15  ;;  %v7304_v41 = vld [vmem:[#allocation9 + $0x24] ss:$16 sps:$4 sm:$0xff]   ;;  %v7307_v15 = vld [vmem:[#allocation9 + $0x2c] ss:$16 sps:$4 sm:$0xff]  }
 0x205   :  { %v7787_v26 = vpop.eup %7786  ;;  %v1639_v44 = vpack.c.bf16 %v7785_v22, %v7777_v12  ;;  %v7296_v12 = vld [vmem:[#allocation9] ss:$16 sps:$4 sm:$0xff]   ;;  %v7317_v22 = vld [vmem:[#allocation9 + $0x68] ss:$16 sps:$4 sm:$0xff]  }
 0x206   :  { %v7789_v27 = vpop.eup %7788  ;;  %v8662_v28 = vpack.c.bf16 %v7787_v26, %v7779_v17  ;;  %v7305_v17 = vld [vmem:[#allocation9 + $0x28] ss:$16 sps:$4 sm:$0xff]   ;;  %v7320_v26 = vld [vmem:[#allocation9 + $0x80] ss:$16 sps:$4 sm:$0xff]  }
 0x207   :  { %v7791_v29 = vpop.eup %7790  ;;  %2573 = vmatpush1.bf16.msra.mxu0 %v7266_v43  ;;  %2799 = vmatpush1.bf16.msra.mxu1 %v7269_v21  ;;  %v1640_v31 = vpack.c.bf16 %v7789_v27, %v7781_v42  ;;  %v7313_v42 = vld [vmem:[#allocation9 + $0x4c] ss:$16 sps:$4 sm:$0xff]   ;;  %v7311_v43 = vld [vmem:[#allocation9 + $0x48] ss:$16 sps:$4 sm:$0xff]   ;;  %v7316_v21 = vld [vmem:[#allocation9 + $0x64] ss:$16 sps:$4 sm:$0xff]  }
 0x208   :  { %v7793_v38 = vpop.eup %7792  ;;  %2574 = vmatprep.subr.bf16.mxu0 %v7274_v23  ;;  %2800 = vmatprep.subr.bf16.mxu1 %v7277_v25  ;;  %v8664_v47 = vpack.c.bf16 %v7791_v29, %v7783_v20  ;;  %v7308_v20 = vld [vmem:[#allocation9 + $0x40] ss:$16 sps:$4 sm:$0xff]   ;;  %v7322_v23 = vld [vmem:[#allocation9 + $0x84] ss:$16 sps:$4 sm:$0xff]   ;;  %v7325_v25 = vld [vmem:[#allocation9 + $0x8c] ss:$16 sps:$4 sm:$0xff]  }
 0x209   :  { %v7795_v48 = vpop.eup %7794  ;;  %2529 = vmatprep.mubr.bf16.mxu0 %v1640_v31  ;;  %2755 = vmatprep.mubr.bf16.mxu1 %v1640_v31  ;;  %v7328_v27 = vld [vmem:[#allocation9 + $0xa4] ss:$16 sps:$4 sm:$0xff]   ;;  %v7329_v29 = vld [vmem:[#allocation9 + $0xa8] ss:$16 sps:$4 sm:$0xff]  }
 0x20a   :  { %v7797_v49 = vpop.eup %7796  ;;  %2530 = vmatmul.mubr.bf16.gmra.mrb[56].mxu0 %v1639_v44  ;;  %2756 = vmatmul.mubr.bf16.gmra.mrb[56].mxu1 %v1639_v44  ;;  %v7323_v44 = vld [vmem:[#allocation9 + $0x88] ss:$16 sps:$4 sm:$0xff]   ;;  %v7334_v31 = vld [vmem:[#allocation9 + $0xc4] ss:$16 sps:$4 sm:$0xff]  }
 0x20b   :  { %v7799_v50 = vpop.eup %7798  ;;  %2575 = vmatpush1.bf16.msra.mxu0 %v7272_v32  ;;  %2801 = vmatpush1.bf16.msra.mxu1 %v7275_v33  ;;  %v7337_v32 = vld [vmem:[#allocation9 + $0xcc] ss:$16 sps:$4 sm:$0xff]   ;;  %v7332_v33 = vld [vmem:[#allocation9 + $0xc0] ss:$16 sps:$4 sm:$0xff]  }
 0x20c   :  { %v7801_v55 = vpop.eup %7800  ;;  %2576 = vmatprep.subr.bf16.mxu0 %v7280_v45  ;;  %2802 = vmatprep.subr.bf16.mxu1 %v7283_v46  ;;  %v7340_v45 = vld [vmem:[#allocation9 + $0xe4] ss:$16 sps:$4 sm:$0xff]   ;;  %v7341_v46 = vld [vmem:[#allocation9 + $0xe8] ss:$16 sps:$4 sm:$0xff]  }
 0x20d   :  { %v7803_v58 = vpop.eup %7802  ;;  %v1643_v59 = vpack.c.bf16 %v7801_v55, %v7793_v38  ;;  %v7335_v38 = vld [vmem:[#allocation9 + $0xc8] ss:$16 sps:$4 sm:$0xff]  }
 0x20e   :  { %v7805_v61 = vpop.eup %7804  ;;  %v8666_v62 = vpack.c.bf16 %v7803_v58, %v7795_v48  ;;  %v7346_v48 = vld [vmem:[#allocation9 + $0x104] ss:$16 sps:$4 sm:$0xff]   ;;  %v7353_v55 = vld [vmem:[#allocation9 + $0x128] ss:$16 sps:$4 sm:$0xff]   ;;  %v7356_v58 = vld [vmem:[#allocation9 + $0x140] ss:$16 sps:$4 sm:$0xff]  }
 0x20f   :  { %v7807_v63 = vpop.eup %7806  ;;  %2577 = vmatpush1.bf16.msra.mxu0 %v7278_v51  ;;  %2803 = vmatpush1.bf16.msra.mxu1 %v7281_v53  ;;  %v1644_v0 = vpack.c.bf16 %v7805_v61, %v7797_v49  ;;  %v7349_v49 = vld [vmem:[#allocation9 + $0x10c] ss:$16 sps:$4 sm:$0xff]   ;;  %v7347_v51 = vld [vmem:[#allocation9 + $0x108] ss:$16 sps:$4 sm:$0xff]   ;;  %v7352_v53 = vld [vmem:[#allocation9 + $0x124] ss:$16 sps:$4 sm:$0xff]  }
 0x210   :  { %2578 = vmatprep.subr.bf16.mxu0 %v7286_v56  ;;  %2804 = vmatprep.subr.bf16.mxu1 %v7289_v57  ;;  %v8668_v3 = vpack.c.bf16 %v7807_v63, %v7799_v50  ;;  %v7344_v50 = vld [vmem:[#allocation9 + $0x100] ss:$16 sps:$4 sm:$0xff]   ;;  %v7358_v56 = vld [vmem:[#allocation9 + $0x144] ss:$16 sps:$4 sm:$0xff]   ;;  %v7361_v57 = vld [vmem:[#allocation9 + $0x14c] ss:$16 sps:$4 sm:$0xff]  }
 0x211   :  { %2539 = vmatprep.mubr.bf16.mxu0 %v1644_v0  ;;  %2765 = vmatprep.mubr.bf16.mxu1 %v1644_v0  ;;  %v7364_v61 = vld [vmem:[#allocation9 + $0x164] ss:$16 sps:$4 sm:$0xff]   ;;  %v7365_v63 = vld [vmem:[#allocation9 + $0x168] ss:$16 sps:$4 sm:$0xff]  }
 0x212   :  { %2540 = vmatmul.mubr.bf16.gmra.mrb[60].mxu0 %v1643_v59  ;;  %2766 = vmatmul.mubr.bf16.gmra.mrb[60].mxu1 %v1643_v59  ;;  %v7359_v59 = vld [vmem:[#allocation9 + $0x148] ss:$16 sps:$4 sm:$0xff]   ;;  %v7370_v0 = vld [vmem:[#allocation9 + $0x184] ss:$16 sps:$4 sm:$0xff]  }
 0x213   :  { %2579 = vmatpush1.bf16.msra.mxu0 %v7284_v1  ;;  %2582 = vmatprep.mubr.bf16.mxu0 %v8599_v52  ;;  %v7373_v1 = vld [vmem:[#allocation9 + $0x18c] ss:$16 sps:$4 sm:$0xff]  }
 0x214   :  { %2805 = vmatpush1.bf16.msra.mxu1 %v7287_v2  ;;  %2808 = vmatprep.mubr.bf16.mxu1 %v8599_v52  ;;  %v7302_v52 = vld [vmem:[#allocation9 + $0x20] ss:$16 sps:$4 sm:$0xff]  }
 0x215   :  { %2580 = vmatprep.subr.bf16.mxu0 %v7292_v4  ;;  %2806 = vmatprep.subr.bf16.mxu1 %v7295_v7  ;;  %v7368_v2 = vld [vmem:[#allocation9 + $0x180] ss:$16 sps:$4 sm:$0xff]   ;;  %v7371_v4 = vld [vmem:[#allocation9 + $0x188] ss:$16 sps:$4 sm:$0xff]   ;;  %v7376_v7 = vld [vmem:[#allocation9 + $0x1a4] ss:$16 sps:$4 sm:$0xff]  }
 0x217   :  { %2581 = vmatpush1.bf16.msra.mxu0 %v7290_v8  ;;  %v214_v8 = vld [vmem:[#allocation4 + $0x8] sm:$0xff] }
 0x218   :  { %2807 = vmatpush1.bf16.msra.mxu1 %v7293_v9  ;;  %3743 = vmatprep.subr.bf16.mxu0 %v7298_v10  ;;  %v218_v9 = vld [vmem:[#allocation4 + $0x28] sm:$0xff] }
 0x219   :  { %3969 = vmatprep.subr.bf16.mxu1 %v7301_v11  ;;  %v7377_v10 = vld [vmem:[#allocation9 + $0x1a8] ss:$16 sps:$4 sm:$0xff]   ;;  %v7382_v11 = vld [vmem:[#allocation9 + $0x1c4] ss:$16 sps:$4 sm:$0xff]  }
 0x21a   :  { %2583 = vmatmul.mubr.bf16.vlgmr.msra.gmra.mrb[32].mxu0 %v8595_v34 }
 0x21b   :  { %2809 = vmatmul.mubr.bf16.vlgmr.msra.gmra.mrb[32].mxu1 %v8595_v34  ;;  %2592 = vmatprep.mubr.bf16.mxu0 %v8611_v24  ;;  %v7319_v34 = vld [vmem:[#allocation9 + $0x6c] ss:$16 sps:$4 sm:$0xff]  }
 0x21c   :  { %2818 = vmatprep.mubr.bf16.mxu1 %v8611_v24  ;;  %3744 = vmatpush1.bf16.msra.mxu0 %v7296_v12  ;;  %v7314_v24 = vld [vmem:[#allocation9 + $0x60] ss:$16 sps:$4 sm:$0xff]   ;;  %v7385_v12 = vld [vmem:[#allocation9 + $0x1cc] ss:$16 sps:$4 sm:$0xff]  }
 0x21d   :  { %3970 = vmatpush1.bf16.msra.mxu1 %v7299_v13  ;;  %3745 = vmatprep.subr.bf16.mxu0 %v7304_v41  ;;  %v278_v13 = vpack.c.bf16 %v218_v9, %v214_v8  ;;  %v7380_v41 = vld [vmem:[#allocation9 + $0x1c0] ss:$16 sps:$4 sm:$0xff]   ;;  %v250_v8 = vld [vmem:[#allocation4 + $0x128] sm:$0xff] }
 0x21e   :  { %3971 = vmatprep.subr.bf16.mxu1 %v7307_v15  ;;  %v7388_v15 = vld [vmem:[#allocation9 + $0x1e4] ss:$16 sps:$4 sm:$0xff]   ;;  %v7428_v9 = vld [vmem:[#allocation9 + $0x2c0] ss:$16 sps:$4 sm:$0xff]  }
 0x220   :  { %3746 = vmatpush1.bf16.msra.mxu0 %v7302_v52  ;;  %v7386_v52 = vld [vmem:[#allocation9 + $0x1e0] ss:$16 sps:$4 sm:$0xff]  }
 0x221   :  { %3972 = vmatpush1.bf16.msra.mxu1 %v7305_v17  ;;  %3747 = vmatprep.subr.bf16.mxu0 %v7310_v18  ;;  %v213_v17 = vld [vmem:[#allocation4] sm:$0xff] }
 0x222   :  { %2593 = vmatmul.mubr.bf16.gmra.mrb[36].mxu0 %v8607_v14  ;;  %3973 = vmatprep.subr.bf16.mxu1 %v7313_v42  ;;  %v217_v18 = vld [vmem:[#allocation4 + $0x20] sm:$0xff]  ;;  %v7389_v42 = vld [vmem:[#allocation9 + $0x1e8] ss:$16 sps:$4 sm:$0xff]  }
 0x223   :  { %2819 = vmatmul.mubr.bf16.gmra.mrb[36].mxu1 %v8607_v14  ;;  %2602 = vmatprep.mubr.bf16.mxu0 %v8623_v6  ;;  %v7331_v14 = vld [vmem:[#allocation9 + $0xac] ss:$16 sps:$4 sm:$0xff]  }
 0x224   :  { %2828 = vmatprep.mubr.bf16.mxu1 %v8623_v6  ;;  %3748 = vmatpush1.bf16.msra.mxu0 %v7308_v20  ;;  %v7326_v6 = vld [vmem:[#allocation9 + $0xa0] ss:$16 sps:$4 sm:$0xff]   ;;  %v7394_v20 = vld [vmem:[#allocation9 + $0x204] ss:$16 sps:$4 sm:$0xff]  }
 0x225   :  { %3974 = vmatpush1.bf16.msra.mxu1 %v7311_v43  ;;  %3749 = vmatprep.subr.bf16.mxu0 %v7316_v21  ;;  %v7397_v43 = vld [vmem:[#allocation9 + $0x20c] ss:$16 sps:$4 sm:$0xff]   ;;  %v277_v21 = vpack.c.bf16 %v217_v18, %v213_v17 }
 0x226   :  { %3975 = vmatprep.subr.bf16.mxu1 %v7319_v34  ;;  %v222_v34 = vld [vmem:[#allocation4 + $0x48] sm:$0xff] }
 0x227   :  { %v7445_v17 = vld [vmem:[#allocation9 + $0x30c] ss:$16 sps:$4 sm:$0xff]  }
 0x228   :  { %3750 = vmatpush1.bf16.msra.mxu0 %v7314_v24  ;;  %v226_v24 = vld [vmem:[#allocation4 + $0x68] sm:$0xff] }
 0x229   :  { %3976 = vmatpush1.bf16.msra.mxu1 %v7317_v22  ;;  %3751 = vmatprep.subr.bf16.mxu0 %v7322_v23  ;;  %v7392_v22 = vld [vmem:[#allocation9 + $0x200] ss:$16 sps:$4 sm:$0xff]   ;;  %v7400_v23 = vld [vmem:[#allocation9 + $0x224] ss:$16 sps:$4 sm:$0xff]  }
 0x22a   :  { %2603 = vmatmul.mubr.bf16.gmra.mrb[40].mxu0 %v8619_v60  ;;  %3977 = vmatprep.subr.bf16.mxu1 %v7325_v25  ;;  %v7403_v25 = vld [vmem:[#allocation9 + $0x22c] ss:$16 sps:$4 sm:$0xff]  }
 0x22b   :  { %2829 = vmatmul.mubr.bf16.gmra.mrb[40].mxu1 %v8619_v60  ;;  %2612 = vmatprep.mubr.bf16.mxu0 %v8635_v54  ;;  %v7343_v60 = vld [vmem:[#allocation9 + $0xec] ss:$16 sps:$4 sm:$0xff]  }
 0x22c   :  { %2838 = vmatprep.mubr.bf16.mxu1 %v8635_v54  ;;  %3752 = vmatpush1.bf16.msra.mxu0 %v7320_v26  ;;  %v7338_v54 = vld [vmem:[#allocation9 + $0xe0] ss:$16 sps:$4 sm:$0xff]   ;;  %v282_v26 = vpack.c.bf16 %v226_v24, %v222_v34  ;;  %v7448_v34 = vld [vmem:[#allocation9 + $0x324] ss:$16 sps:$4 sm:$0xff]   ;;  %v7451_v24 = vld [vmem:[#allocation9 + $0x32c] ss:$16 sps:$4 sm:$0xff]  }
 0x22d   :  { %3978 = vmatpush1.bf16.msra.mxu1 %v7323_v44  ;;  %3753 = vmatprep.subr.bf16.mxu0 %v7328_v27  ;;  %v7398_v44 = vld [vmem:[#allocation9 + $0x220] ss:$16 sps:$4 sm:$0xff]  }
 0x22e   :  { %3979 = vmatprep.subr.bf16.mxu1 %v7331_v14  ;;  %v221_v27 = vld [vmem:[#allocation4 + $0x40] sm:$0xff] }
 0x22f   :  { %v225_v14 = vld [vmem:[#allocation4 + $0x60] sm:$0xff] }
 0x230   :  { %3754 = vmatpush1.bf16.msra.mxu0 %v7326_v6  ;;  %v7401_v6 = vld [vmem:[#allocation9 + $0x228] ss:$16 sps:$4 sm:$0xff]  }
 0x231   :  { %3980 = vmatpush1.bf16.msra.mxu1 %v7329_v29  ;;  %3755 = vmatprep.subr.bf16.mxu0 %v7334_v31  ;;  %v7406_v29 = vld [vmem:[#allocation9 + $0x244] ss:$16 sps:$4 sm:$0xff]   ;;  %v7409_v31 = vld [vmem:[#allocation9 + $0x24c] ss:$16 sps:$4 sm:$0xff]  }
 0x232   :  { %2613 = vmatmul.mubr.bf16.gmra.mrb[44].mxu0 %v8631_v35  ;;  %3981 = vmatprep.subr.bf16.mxu1 %v7337_v32  ;;  %v281_v32 = vpack.c.bf16 %v225_v14, %v221_v27  ;;  %v7457_v27 = vld [vmem:[#allocation9 + $0x34c] ss:$16 sps:$4 sm:$0xff]  }
 0x233   :  { %2839 = vmatmul.mubr.bf16.gmra.mrb[44].mxu1 %v8631_v35  ;;  %2622 = vmatprep.mubr.bf16.mxu0 %v8647_v30  ;;  %v7355_v35 = vld [vmem:[#allocation9 + $0x12c] ss:$16 sps:$4 sm:$0xff]  }
 0x234   :  { %2848 = vmatprep.mubr.bf16.mxu1 %v8647_v30  ;;  %3756 = vmatpush1.bf16.msra.mxu0 %v7332_v33  ;;  %v7350_v30 = vld [vmem:[#allocation9 + $0x120] ss:$16 sps:$4 sm:$0xff]   ;;  %v230_v33 = vld [vmem:[#allocation4 + $0x88] sm:$0xff] }
 0x235   :  { %3982 = vmatpush1.bf16.msra.mxu1 %v7335_v38  ;;  %3757 = vmatprep.subr.bf16.mxu0 %v7340_v45  ;;  %v234_v38 = vld [vmem:[#allocation4 + $0xa8] sm:$0xff]  ;;  %v7404_v45 = vld [vmem:[#allocation9 + $0x240] ss:$16 sps:$4 sm:$0xff]  }
 0x236   :  { %3983 = vmatprep.subr.bf16.mxu1 %v7343_v60  ;;  %v7407_v60 = vld [vmem:[#allocation9 + $0x248] ss:$16 sps:$4 sm:$0xff]  }
 0x238   :  { %3758 = vmatpush1.bf16.msra.mxu0 %v7338_v54  ;;  %v7412_v54 = vld [vmem:[#allocation9 + $0x264] ss:$16 sps:$4 sm:$0xff]  }
 0x239   :  { %3984 = vmatpush1.bf16.msra.mxu1 %v7341_v46  ;;  %3759 = vmatprep.subr.bf16.mxu0 %v7346_v48  ;;  %v7415_v46 = vld [vmem:[#allocation9 + $0x26c] ss:$16 sps:$4 sm:$0xff]   ;;  %v286_v48 = vpack.c.bf16 %v234_v38, %v230_v33  ;;  %v7460_v33 = vld [vmem:[#allocation9 + $0x364] ss:$16 sps:$4 sm:$0xff]  }
 0x23a   :  { %2623 = vmatmul.mubr.bf16.gmra.mrb[48].mxu0 %v8643_v19  ;;  %3985 = vmatprep.subr.bf16.mxu1 %v7349_v49  ;;  %v7410_v49 = vld [vmem:[#allocation9 + $0x260] ss:$16 sps:$4 sm:$0xff]   ;;  %v7463_v38 = vld [vmem:[#allocation9 + $0x36c] ss:$16 sps:$4 sm:$0xff]  }
 0x23b   :  { %2849 = vmatmul.mubr.bf16.gmra.mrb[48].mxu1 %v8643_v19  ;;  %2632 = vmatprep.mubr.bf16.mxu0 %v8659_v16  ;;  %v7367_v19 = vld [vmem:[#allocation9 + $0x16c] ss:$16 sps:$4 sm:$0xff]  }
 0x23c   :  { %2858 = vmatprep.mubr.bf16.mxu1 %v8659_v16  ;;  %3760 = vmatpush1.bf16.msra.mxu0 %v7344_v50  ;;  %v7362_v16 = vld [vmem:[#allocation9 + $0x160] ss:$16 sps:$4 sm:$0xff]  }
 0x23d   :  { %3986 = vmatpush1.bf16.msra.mxu1 %v7347_v51  ;;  %3761 = vmatprep.subr.bf16.mxu0 %v7352_v53  ;;  %v229_v50 = vld [vmem:[#allocation4 + $0x80] sm:$0xff]  ;;  %v7413_v53 = vld [vmem:[#allocation9 + $0x268] ss:$16 sps:$4 sm:$0xff]  }
 0x23e   :  { %3987 = vmatprep.subr.bf16.mxu1 %v7355_v35  ;;  %v233_v51 = vld [vmem:[#allocation4 + $0xa0] sm:$0xff] }
 0x23f   :  { %v7418_v35 = vld [vmem:[#allocation9 + $0x284] ss:$16 sps:$4 sm:$0xff]  }
 0x240   :  { %3762 = vmatpush1.bf16.msra.mxu0 %v7350_v30  ;;  %v7421_v30 = vld [vmem:[#allocation9 + $0x28c] ss:$16 sps:$4 sm:$0xff]  }
 0x241   :  { %3988 = vmatpush1.bf16.msra.mxu1 %v7353_v55  ;;  %3763 = vmatprep.subr.bf16.mxu0 %v7358_v56  ;;  %v285_v55 = vpack.c.bf16 %v233_v51, %v229_v50  ;;  %v238_v56 = vld [vmem:[#allocation4 + $0xc8] sm:$0xff] }
 0x242   :  { %2633 = vmatmul.mubr.bf16.gmra.mrb[52].mxu0 %v8655_v5  ;;  %3989 = vmatprep.subr.bf16.mxu1 %v7361_v57  ;;  %v242_v57 = vld [vmem:[#allocation4 + $0xe8] sm:$0xff] }
 0x243   :  { %2859 = vmatmul.mubr.bf16.gmra.mrb[52].mxu1 %v8655_v5  ;;  %2642 = vmatprep.mubr.bf16.mxu0 %v8664_v47  ;;  %v7379_v5 = vld [vmem:[#allocation9 + $0x1ac] ss:$16 sps:$4 sm:$0xff]  }
 0x244   :  { %2868 = vmatprep.mubr.bf16.mxu1 %v8664_v47  ;;  %3764 = vmatpush1.bf16.msra.mxu0 %v7356_v58  ;;  %v7374_v47 = vld [vmem:[#allocation9 + $0x1a0] ss:$16 sps:$4 sm:$0xff]   ;;  %v7469_v50 = vld [vmem:[#allocation9 + $0x38c] ss:$16 sps:$4 sm:$0xff]  }
 0x245   :  { %3990 = vmatpush1.bf16.msra.mxu1 %v7359_v59  ;;  %3765 = vmatprep.subr.bf16.mxu0 %v7364_v61  ;;  %v7416_v58 = vld [vmem:[#allocation9 + $0x280] ss:$16 sps:$4 sm:$0xff]   ;;  %v7419_v59 = vld [vmem:[#allocation9 + $0x288] ss:$16 sps:$4 sm:$0xff]   ;;  %v7424_v61 = vld [vmem:[#allocation9 + $0x2a4] ss:$16 sps:$4 sm:$0xff]  }
 0x246   :  { %3991 = vmatprep.subr.bf16.mxu1 %v7367_v19  ;;  %v7427_v19 = vld [vmem:[#allocation9 + $0x2ac] ss:$16 sps:$4 sm:$0xff]  }
 0x248   :  { %3766 = vmatpush1.bf16.msra.mxu0 %v7362_v16  ;;  %v290_v16 = vpack.c.bf16 %v242_v57, %v238_v56  ;;  %v7472_v56 = vld [vmem:[#allocation9 + $0x3a4] ss:$16 sps:$4 sm:$0xff]   ;;  %v7475_v57 = vld [vmem:[#allocation9 + $0x3ac] ss:$16 sps:$4 sm:$0xff]  }
 0x249   :  { %3992 = vmatpush1.bf16.msra.mxu1 %v7365_v63  ;;  %3767 = vmatprep.subr.bf16.mxu0 %v7370_v0  ;;  %v7422_v63 = vld [vmem:[#allocation9 + $0x2a0] ss:$16 sps:$4 sm:$0xff]  }
 0x24a   :  { %2643 = vmatmul.mubr.bf16.gmra.mrb[56].mxu0 %v8662_v28  ;;  %3993 = vmatprep.subr.bf16.mxu1 %v7373_v1  ;;  %v237_v0 = vld [vmem:[#allocation4 + $0xc0] sm:$0xff] }
 0x24b   :  { %2869 = vmatmul.mubr.bf16.gmra.mrb[56].mxu1 %v8662_v28  ;;  %2652 = vmatprep.mubr.bf16.mxu0 %v8668_v3  ;;  %v7383_v28 = vld [vmem:[#allocation9 + $0x1c8] ss:$16 sps:$4 sm:$0xff]   ;;  %v241_v1 = vld [vmem:[#allocation4 + $0xe0] sm:$0xff] }
 0x24c   :  { %2878 = vmatprep.mubr.bf16.mxu1 %v8668_v3  ;;  %3768 = vmatpush1.bf16.msra.mxu0 %v7368_v2  ;;  %v7391_v3 = vld [vmem:[#allocation9 + $0x1ec] ss:$16 sps:$4 sm:$0xff]   ;;  %v7425_v2 = vld [vmem:[#allocation9 + $0x2a8] ss:$16 sps:$4 sm:$0xff]  }
 0x24d   :  { %3994 = vmatpush1.bf16.msra.mxu1 %v7371_v4  ;;  %3769 = vmatprep.subr.bf16.mxu0 %v7376_v7  ;;  %v7430_v4 = vld [vmem:[#allocation9 + $0x2c4] ss:$16 sps:$4 sm:$0xff]   ;;  %v7433_v7 = vld [vmem:[#allocation9 + $0x2cc] ss:$16 sps:$4 sm:$0xff]  }
 0x24e   :  { %3995 = vmatprep.subr.bf16.mxu1 %v7379_v5  ;;  %v289_v5 = vpack.c.bf16 %v241_v1, %v237_v0  ;;  %v7481_v0 = vld [vmem:[#allocation9 + $0x3cc] ss:$16 sps:$4 sm:$0xff]  }
 0x250   :  { %3770 = vmatpush1.bf16.msra.mxu0 %v7374_v47  ;;  %v246_v47 = vld [vmem:[#allocation4 + $0x108] sm:$0xff] }
 0x251   :  { %3996 = vmatpush1.bf16.msra.mxu1 %v7377_v10  ;;  %3771 = vmatprep.subr.bf16.mxu0 %v7382_v11  ;;  %v7431_v10 = vld [vmem:[#allocation9 + $0x2c8] ss:$16 sps:$4 sm:$0xff]   ;;  %v7436_v11 = vld [vmem:[#allocation9 + $0x2e4] ss:$16 sps:$4 sm:$0xff]  }
 0x252   :  { %2653 = vmatmul.mubr.bf16.gmra.mrb[60].mxu0 %v8666_v62  ;;  %3997 = vmatprep.subr.bf16.mxu1 %v7385_v12  ;;  %v7439_v12 = vld [vmem:[#allocation9 + $0x2ec] ss:$16 sps:$4 sm:$0xff]  }
 0x253   :  { %2879 = vmatmul.mubr.bf16.gmra.mrb[60].mxu1 %v8666_v62  ;;  %3775 = vmatprep.mubr.bf16.mxu0 %v278_v13  ;;  %v7395_v62 = vld [vmem:[#allocation9 + $0x208] ss:$16 sps:$4 sm:$0xff]  }
 0x254   :  { %3772 = vmatpush1.bf16.msra.mxu0 %v7380_v41  ;;  %4001 = vmatprep.mubr.bf16.mxu1 %v278_v13  ;;  %v294_v13 = vpack.c.bf16 %v250_v8, %v246_v47  ;;  %v7434_v41 = vld [vmem:[#allocation9 + $0x2e0] ss:$16 sps:$4 sm:$0xff]   ;;  %v7484_v47 = vld [vmem:[#allocation9 + $0x3e4] ss:$16 sps:$4 sm:$0xff]   ;;  %v7487_v8 = vld [vmem:[#allocation9 + $0x3ec] ss:$16 sps:$4 sm:$0xff]  }
 0x255   :  { %3998 = vmatpush1.bf16.msra.mxu1 %v7383_v28  ;;  %3773 = vmatprep.subr.bf16.mxu0 %v7388_v15  ;;  %v245_v28 = vld [vmem:[#allocation4 + $0x100] sm:$0xff] }
 0x256   :  { %3999 = vmatprep.subr.bf16.mxu1 %v7391_v3  ;;  %v249_v15 = vld [vmem:[#allocation4 + $0x120] sm:$0xff]  ;;  %v7437_v3 = vld [vmem:[#allocation9 + $0x2e8] ss:$16 sps:$4 sm:$0xff]  }
 0x257   :  { %v293_v18 = vpack.c.bf16 %v249_v15, %v245_v28  ;;  %v228_v28 = vld [vmem:[#allocation4 + $0x78] sm:$0xff] }
 0x258   :  { %3774 = vmatpush1.bf16.msra.mxu0 %v7386_v52  ;;  %v7442_v52 = vld [vmem:[#allocation9 + $0x304] ss:$16 sps:$4 sm:$0xff]  }
 0x259   :  { %4000 = vmatpush1.bf16.msra.mxu1 %v7389_v42  ;;  %3856 = vmatprep.subr.bf16.mxu0 %v7394_v20  ;;  %v254_v42 = vld [vmem:[#allocation4 + $0x148] sm:$0xff] }
 0x25a   :  { %4082 = vmatprep.subr.bf16.mxu1 %v7397_v43  ;;  %v258_v20 = vld [vmem:[#allocation4 + $0x168] sm:$0xff]  ;;  %v7440_v43 = vld [vmem:[#allocation9 + $0x300] ss:$16 sps:$4 sm:$0xff]  }
 0x25b   :  { %3776 = vmatmul.mubr.bf16.vlgmr.msra.gmra.mrb[64].mxu0 %v277_v21 }
 0x25c   :  { %4002 = vmatmul.mubr.bf16.vlgmr.msra.gmra.mrb[64].mxu1 %v277_v21  ;;  %3857 = vmatpush1.bf16.msra.mxu0 %v7392_v22  ;;  %v7443_v21 = vld [vmem:[#allocation9 + $0x308] ss:$16 sps:$4 sm:$0xff]   ;;  %v298_v22 = vpack.c.bf16 %v258_v20, %v254_v42 }
 0x25d   :  { %4083 = vmatpush1.bf16.msra.mxu1 %v7395_v62  ;;  %3858 = vmatprep.subr.bf16.mxu0 %v7400_v23  ;;  %v7446_v62 = vld [vmem:[#allocation9 + $0x320] ss:$16 sps:$4 sm:$0xff]   ;;  %v236_v42 = vld [vmem:[#allocation4 + $0xb8] sm:$0xff] }
 0x25e   :  { %4084 = vmatprep.subr.bf16.mxu1 %v7403_v25  ;;  %3785 = vmatprep.mubr.bf16.mxu0 %v282_v26  ;;  %v253_v23 = vld [vmem:[#allocation4 + $0x140] sm:$0xff] }
 0x25f   :  { %4011 = vmatprep.mubr.bf16.mxu1 %v282_v26  ;;  %v257_v25 = vld [vmem:[#allocation4 + $0x160] sm:$0xff]  ;;  %v7449_v26 = vld [vmem:[#allocation9 + $0x328] ss:$16 sps:$4 sm:$0xff]  }
 0x260   :  { %3859 = vmatpush1.bf16.msra.mxu0 %v7398_v44  ;;  %v7454_v44 = vld [vmem:[#allocation9 + $0x344] ss:$16 sps:$4 sm:$0xff]   ;;  %v297_v14 = vpack.c.bf16 %v257_v25, %v253_v23 }
 0x261   :  { %4085 = vmatpush1.bf16.msra.mxu1 %v7401_v6  ;;  %3860 = vmatprep.subr.bf16.mxu0 %v7406_v29  ;;  %v262_v6 = vld [vmem:[#allocation4 + $0x188] sm:$0xff]  ;;  %v239_v25 = vld [vmem:[#allocation4 + $0xd0] sm:$0xff] }
 0x262   :  { %4086 = vmatprep.subr.bf16.mxu1 %v7409_v31  ;;  %v266_v29 = vld [vmem:[#allocation4 + $0x1a8] sm:$0xff]  ;;  %v7452_v31 = vld [vmem:[#allocation9 + $0x340] ss:$16 sps:$4 sm:$0xff]  }
 0x263   :  { %3786 = vmatmul.mubr.bf16.gmra.mrb[68].mxu0 %v281_v32 }
 0x264   :  { %4012 = vmatmul.mubr.bf16.gmra.mrb[68].mxu1 %v281_v32  ;;  %3861 = vmatpush1.bf16.msra.mxu0 %v7404_v45  ;;  %v7455_v32 = vld [vmem:[#allocation9 + $0x348] ss:$16 sps:$4 sm:$0xff]   ;;  %v302_v45 = vpack.c.bf16 %v266_v29, %v262_v6  ;;  %v7488_v6 = vld [vmem:[#allocation10] ss:$16 sps:$4 sm:$0xff]   ;;  %v7490_v29 = vld [vmem:[#allocation10 + $0x4] ss:$16 sps:$4 sm:$0xff]  }
 0x265   :  { %4087 = vmatpush1.bf16.msra.mxu1 %v7407_v60  ;;  %3862 = vmatprep.subr.bf16.mxu0 %v7412_v54  ;;  %v7458_v60 = vld [vmem:[#allocation9 + $0x360] ss:$16 sps:$4 sm:$0xff]  }
 0x266   :  { %4088 = vmatprep.subr.bf16.mxu1 %v7415_v46  ;;  %3795 = vmatprep.mubr.bf16.mxu0 %v286_v48  ;;  %v261_v54 = vld [vmem:[#allocation4 + $0x180] sm:$0xff] }
 0x267   :  { %4021 = vmatprep.mubr.bf16.mxu1 %v286_v48  ;;  %v265_v46 = vld [vmem:[#allocation4 + $0x1a0] sm:$0xff]  ;;  %v7461_v48 = vld [vmem:[#allocation9 + $0x368] ss:$16 sps:$4 sm:$0xff]  }
 0x268   :  { %3863 = vmatpush1.bf16.msra.mxu0 %v7410_v49  ;;  %v7466_v49 = vld [vmem:[#allocation9 + $0x384] ss:$16 sps:$4 sm:$0xff]   ;;  %v301_v51 = vpack.c.bf16 %v265_v46, %v261_v54  ;;  %v7497_v54 = vld [vmem:[#allocation10 + $0x28] ss:$16 sps:$4 sm:$0xff]  }
 0x269   :  { %4089 = vmatpush1.bf16.msra.mxu1 %v7413_v53  ;;  %3864 = vmatprep.subr.bf16.mxu0 %v7418_v35  ;;  %v270_v53 = vld [vmem:[#allocation4 + $0x1c8] sm:$0xff]  ;;  %v7502_v46 = vld [vmem:[#allocation10 + $0x44] ss:$16 sps:$4 sm:$0xff]  }
 0x26a   :  { %4090 = vmatprep.subr.bf16.mxu1 %v7421_v30  ;;  %v274_v35 = vld [vmem:[#allocation4 + $0x1e8] sm:$0xff]  ;;  %v7464_v30 = vld [vmem:[#allocation9 + $0x380] ss:$16 sps:$4 sm:$0xff]  }
 0x26b   :  { %3796 = vmatmul.mubr.bf16.gmra.mrb[72].mxu0 %v285_v55 }
 0x26c   :  { %4022 = vmatmul.mubr.bf16.gmra.mrb[72].mxu1 %v285_v55  ;;  %3865 = vmatpush1.bf16.msra.mxu0 %v7416_v58  ;;  %v7467_v55 = vld [vmem:[#allocation9 + $0x388] ss:$16 sps:$4 sm:$0xff]   ;;  %v306_v58 = vpack.c.bf16 %v274_v35, %v270_v53  ;;  %v7500_v35 = vld [vmem:[#allocation10 + $0x40] ss:$16 sps:$4 sm:$0xff]  }
 0x26d   :  { %4091 = vmatpush1.bf16.msra.mxu1 %v7419_v59  ;;  %3866 = vmatprep.subr.bf16.mxu0 %v7424_v61  ;;  %v7470_v59 = vld [vmem:[#allocation9 + $0x3a0] ss:$16 sps:$4 sm:$0xff]   ;;  %v260_v53 = vld [vmem:[#allocation4 + $0x178] sm:$0xff] }
 0x26e   :  { %4092 = vmatprep.subr.bf16.mxu1 %v7427_v19  ;;  %3805 = vmatprep.mubr.bf16.mxu0 %v290_v16  ;;  %v269_v61 = vld [vmem:[#allocation4 + $0x1c0] sm:$0xff] }
 0x26f   :  { %4031 = vmatprep.mubr.bf16.mxu1 %v290_v16  ;;  %v273_v19 = vld [vmem:[#allocation4 + $0x1e0] sm:$0xff]  ;;  %v7473_v16 = vld [vmem:[#allocation9 + $0x3a8] ss:$16 sps:$4 sm:$0xff]  }
 0x270   :  { %3867 = vmatpush1.bf16.msra.mxu0 %v7422_v63  ;;  %v7478_v63 = vld [vmem:[#allocation9 + $0x3c4] ss:$16 sps:$4 sm:$0xff]   ;;  %v305_v1 = vpack.c.bf16 %v273_v19, %v269_v61  ;;  %v7509_v61 = vld [vmem:[#allocation10 + $0x68] ss:$16 sps:$4 sm:$0xff]  }
 0x271   :  { %4093 = vmatpush1.bf16.msra.mxu1 %v7425_v2  ;;  %3868 = vmatprep.subr.bf16.mxu0 %v7430_v4  ;;  %v216_v2 = vld [vmem:[#allocation4 + $0x18] sm:$0xff]  ;;  %v7514_v19 = vld [vmem:[#allocation10 + $0x84] ss:$16 sps:$4 sm:$0xff]  }
 0x272   :  { %4094 = vmatprep.subr.bf16.mxu1 %v7433_v7  ;;  %v220_v4 = vld [vmem:[#allocation4 + $0x38] sm:$0xff]  ;;  %v7476_v7 = vld [vmem:[#allocation9 + $0x3c0] ss:$16 sps:$4 sm:$0xff]  }
 0x273   :  { %3806 = vmatmul.mubr.bf16.gmra.mrb[76].mxu0 %v289_v5 }
 0x274   :  { %4032 = vmatmul.mubr.bf16.gmra.mrb[76].mxu1 %v289_v5  ;;  %3869 = vmatpush1.bf16.msra.mxu0 %v7428_v9  ;;  %v7479_v5 = vld [vmem:[#allocation9 + $0x3c8] ss:$16 sps:$4 sm:$0xff]   ;;  %v280_v9 = vpack.c.bf16 %v220_v4, %v216_v2  ;;  %v7512_v4 = vld [vmem:[#allocation10 + $0x80] ss:$16 sps:$4 sm:$0xff]  }
 0x275   :  { %4095 = vmatpush1.bf16.msra.mxu1 %v7431_v10  ;;  %3870 = vmatprep.subr.bf16.mxu0 %v7436_v11  ;;  %v7482_v10 = vld [vmem:[#allocation9 + $0x3e0] ss:$16 sps:$4 sm:$0xff]   ;;  %v268_v2 = vld [vmem:[#allocation4 + $0x1b8] sm:$0xff] }
 0x276   :  { %4096 = vmatprep.subr.bf16.mxu1 %v7439_v12  ;;  %3815 = vmatprep.mubr.bf16.mxu0 %v294_v13  ;;  %v215_v11 = vld [vmem:[#allocation4 + $0x10] sm:$0xff] }
 0x277   :  { %4041 = vmatprep.mubr.bf16.mxu1 %v294_v13  ;;  %v219_v12 = vld [vmem:[#allocation4 + $0x30] sm:$0xff]  ;;  %v7485_v13 = vld [vmem:[#allocation9 + $0x3e8] ss:$16 sps:$4 sm:$0xff]  }
 0x278   :  { %3871 = vmatpush1.bf16.msra.mxu0 %v7434_v41  ;;  %v224_v41 = vld [vmem:[#allocation4 + $0x58] sm:$0xff]  ;;  %v279_v15 = vpack.c.bf16 %v219_v12, %v215_v11  ;;  %v7526_v12 = vld [vmem:[#allocation10 + $0xc4] ss:$16 sps:$4 sm:$0xff]  }
 0x279   :  { %4097 = vmatpush1.bf16.msra.mxu1 %v7437_v3  ;;  %3872 = vmatprep.subr.bf16.mxu0 %v7442_v52  ;;  %v284_v3 = vpack.c.bf16 %v228_v28, %v224_v41  ;;  %v223_v52 = vld [vmem:[#allocation4 + $0x50] sm:$0xff]  ;;  %v7521_v11 = vld [vmem:[#allocation10 + $0xa8] ss:$16 sps:$4 sm:$0xff]   ;;  %v7529_v28 = vld [vmem:[#allocation10 + $0xcc] ss:$16 sps:$4 sm:$0xff]  }
 0x27a   :  { %4098 = vmatprep.subr.bf16.mxu1 %v7445_v17  ;;  %v227_v17 = vld [vmem:[#allocation4 + $0x70] sm:$0xff] }
 0x27b   :  { %3816 = vmatmul.mubr.bf16.gmra.mrb[80].mxu0 %v293_v18  ;;  %v283_v20 = vpack.c.bf16 %v227_v17, %v223_v52  ;;  %v267_v41 = vld [vmem:[#allocation4 + $0x1b0] sm:$0xff] }
 0x27c   :  { %4042 = vmatmul.mubr.bf16.gmra.mrb[80].mxu1 %v293_v18  ;;  %3873 = vmatpush1.bf16.msra.mxu0 %v7440_v43  ;;  %v232_v18 = vld [vmem:[#allocation4 + $0x98] sm:$0xff]  ;;  %v7524_v52 = vld [vmem:[#allocation10 + $0xc0] ss:$16 sps:$4 sm:$0xff]  }
 0x27d   :  { %4099 = vmatpush1.bf16.msra.mxu1 %v7443_v21  ;;  %3874 = vmatprep.subr.bf16.mxu0 %v7448_v34  ;;  %v288_v43 = vpack.c.bf16 %v236_v42, %v232_v18  ;;  %v231_v21 = vld [vmem:[#allocation4 + $0x90] sm:$0xff]  ;;  %v7527_v18 = vld [vmem:[#allocation10 + $0xc8] ss:$16 sps:$4 sm:$0xff]  }
 0x27e   :  { %4100 = vmatprep.subr.bf16.mxu1 %v7451_v24  ;;  %3825 = vmatprep.mubr.bf16.mxu0 %v298_v22  ;;  %v235_v34 = vld [vmem:[#allocation4 + $0xb0] sm:$0xff]  ;;  %v240_v24 = vld [vmem:[#allocation4 + $0xd8] sm:$0xff] }
 0x27f   :  { %4051 = vmatprep.mubr.bf16.mxu1 %v298_v22  ;;  %v244_v22 = vld [vmem:[#allocation4 + $0xf8] sm:$0xff] }
 0x280   :  { %3875 = vmatpush1.bf16.msra.mxu0 %v7446_v62  ;;  %v287_v62 = vpack.c.bf16 %v235_v34, %v231_v21  ;;  %v292_v23 = vpack.c.bf16 %v244_v22, %v240_v24  ;;  %v7535_v21 = vld [vmem:[#allocation10 + $0xec] ss:$16 sps:$4 sm:$0xff]   ;;  %v7533_v34 = vld [vmem:[#allocation10 + $0xe8] ss:$16 sps:$4 sm:$0xff]   ;;  %v7538_v24 = vld [vmem:[#allocation10 + $0x104] ss:$16 sps:$4 sm:$0xff]  }
 0x281   :  { %4101 = vmatpush1.bf16.msra.mxu1 %v7449_v26  ;;  %3876 = vmatprep.subr.bf16.mxu0 %v7454_v44  ;;  %v243_v26 = vld [vmem:[#allocation4 + $0xf0] sm:$0xff]  ;;  %v248_v44 = vld [vmem:[#allocation4 + $0x118] sm:$0xff] }
 0x282   :  { %4102 = vmatprep.subr.bf16.mxu1 %v7457_v27  ;;  %v252_v27 = vld [vmem:[#allocation4 + $0x138] sm:$0xff]  ;;  %v271_v22 = vld [vmem:[#allocation4 + $0x1d0] sm:$0xff] }
 0x283   :  { %3826 = vmatmul.mubr.bf16.gmra.mrb[84].mxu0 %v297_v14 }
 0x284   :  { %4052 = vmatmul.mubr.bf16.gmra.mrb[84].mxu1 %v297_v14  ;;  %3877 = vmatpush1.bf16.msra.mxu0 %v7452_v31  ;;  %v291_v14 = vpack.c.bf16 %v243_v26, %v239_v25  ;;  %v7491_v31 = vld [vmem:[#allocation10 + $0x8] ss:$16 sps:$4 sm:$0xff]   ;;  %v7536_v25 = vld [vmem:[#allocation10 + $0x100] ss:$16 sps:$4 sm:$0xff]  }
 0x285   :  { %4103 = vmatpush1.bf16.msra.mxu1 %v7455_v32  ;;  %3878 = vmatprep.subr.bf16.mxu0 %v7460_v33  ;;  %v296_v32 = vpack.c.bf16 %v252_v27, %v248_v44  ;;  %v7493_v33 = vld [vmem:[#allocation10 + $0xc] ss:$16 sps:$4 sm:$0xff]   ;;  %v7539_v44 = vld [vmem:[#allocation10 + $0x108] ss:$16 sps:$4 sm:$0xff]   ;;  %v7544_v27 = vld [vmem:[#allocation10 + $0x124] ss:$16 sps:$4 sm:$0xff]  }
 0x286   :  { %4104 = vmatprep.subr.bf16.mxu1 %v7463_v38  ;;  %3835 = vmatprep.mubr.bf16.mxu0 %v302_v45  ;;  %v7496_v38 = vld [vmem:[#allocation10 + $0x24] ss:$16 sps:$4 sm:$0xff]  }
 0x287   :  { %4061 = vmatprep.mubr.bf16.mxu1 %v302_v45  ;;  %v7494_v45 = vld [vmem:[#allocation10 + $0x20] ss:$16 sps:$4 sm:$0xff]  }
 0x288   :  { %3879 = vmatpush1.bf16.msra.mxu0 %v7458_v60  ;;  %v7499_v60 = vld [vmem:[#allocation10 + $0x2c] ss:$16 sps:$4 sm:$0xff]  }
 0x289   :  { %4105 = vmatpush1.bf16.msra.mxu1 %v7461_v48  ;;  %3880 = vmatprep.subr.bf16.mxu0 %v7466_v49  ;;  %v247_v48 = vld [vmem:[#allocation4 + $0x110] sm:$0xff] }
 0x28a   :  { %4106 = vmatprep.subr.bf16.mxu1 %v7469_v50  ;;  %v251_v49 = vld [vmem:[#allocation4 + $0x130] sm:$0xff]  ;;  %v7505_v50 = vld [vmem:[#allocation10 + $0x4c] ss:$16 sps:$4 sm:$0xff]  }
 0x28b   :  { %3836 = vmatmul.mubr.bf16.gmra.mrb[88].mxu0 %v301_v51 }
 0x28c   :  { %4062 = vmatmul.mubr.bf16.gmra.mrb[88].mxu1 %v301_v51  ;;  %3881 = vmatpush1.bf16.msra.mxu0 %v7464_v30  ;;  %v256_v51 = vld [vmem:[#allocation4 + $0x158] sm:$0xff]  ;;  %v295_v30 = vpack.c.bf16 %v251_v49, %v247_v48  ;;  %v7556_v49 = vld [vmem:[#allocation10 + $0x164] ss:$16 sps:$4 sm:$0xff]  }
 0x28d   :  { %4107 = vmatpush1.bf16.msra.mxu1 %v7467_v55  ;;  %3882 = vmatprep.subr.bf16.mxu0 %v7472_v56  ;;  %v7503_v55 = vld [vmem:[#allocation10 + $0x48] ss:$16 sps:$4 sm:$0xff]   ;;  %v300_v56 = vpack.c.bf16 %v260_v53, %v256_v51 }
 0x28e   :  { %4108 = vmatprep.subr.bf16.mxu1 %v7475_v57  ;;  %3845 = vmatprep.mubr.bf16.mxu0 %v306_v58  ;;  %v7508_v57 = vld [vmem:[#allocation10 + $0x64] ss:$16 sps:$4 sm:$0xff]  }
 0x28f   :  { %4071 = vmatprep.mubr.bf16.mxu1 %v306_v58  ;;  %v7506_v58 = vld [vmem:[#allocation10 + $0x60] ss:$16 sps:$4 sm:$0xff]  }
 0x290   :  { %3883 = vmatpush1.bf16.msra.mxu0 %v7470_v59  ;;  %v7511_v59 = vld [vmem:[#allocation10 + $0x6c] ss:$16 sps:$4 sm:$0xff]  }
 0x291   :  { %4109 = vmatpush1.bf16.msra.mxu1 %v7473_v16  ;;  %3884 = vmatprep.subr.bf16.mxu0 %v7478_v63  ;;  %v255_v16 = vld [vmem:[#allocation4 + $0x150] sm:$0xff] }
 0x292   :  { %4110 = vmatprep.subr.bf16.mxu1 %v7481_v0  ;;  %v259_v63 = vld [vmem:[#allocation4 + $0x170] sm:$0xff]  ;;  %v7517_v0 = vld [vmem:[#allocation10 + $0x8c] ss:$16 sps:$4 sm:$0xff]  }
 0x293   :  { %3846 = vmatmul.mubr.bf16.gmra.mrb[92].mxu0 %v305_v1 }
 0x294   :  { %4072 = vmatmul.mubr.bf16.gmra.mrb[92].mxu1 %v305_v1  ;;  %3885 = vmatpush1.bf16.msra.mxu0 %v7476_v7  ;;  %v264_v1 = vld [vmem:[#allocation4 + $0x198] sm:$0xff]  ;;  %v299_v7 = vpack.c.bf16 %v259_v63, %v255_v16 }
 0x295   :  { %4111 = vmatpush1.bf16.msra.mxu1 %v7479_v5  ;;  %3886 = vmatprep.subr.bf16.mxu0 %v7484_v47  ;;  %v7515_v5 = vld [vmem:[#allocation10 + $0x88] ss:$16 sps:$4 sm:$0xff]   ;;  %v304_v47 = vpack.c.bf16 %v268_v2, %v264_v1 }
 0x296   :  { %4112 = vmatprep.subr.bf16.mxu1 %v7487_v8  ;;  %3888 = vmatprep.mubr.bf16.mxu0 %v280_v9  ;;  %v7520_v8 = vld [vmem:[#allocation10 + $0xa4] ss:$16 sps:$4 sm:$0xff]  }
 0x297   :  { %4114 = vmatprep.mubr.bf16.mxu1 %v280_v9  ;;  %v7518_v9 = vld [vmem:[#allocation10 + $0xa0] ss:$16 sps:$4 sm:$0xff]  }
 0x298   :  { %3887 = vmatpush1.bf16.msra.mxu0 %v7482_v10  ;;  %v7523_v10 = vld [vmem:[#allocation10 + $0xac] ss:$16 sps:$4 sm:$0xff]  }
 0x299   :  { %4113 = vmatpush1.bf16.msra.mxu1 %v7485_v13  ;;  %5081 = vmatprep.subr.bf16.mxu0 %v7490_v29  ;;  %v263_v13 = vld [vmem:[#allocation4 + $0x190] sm:$0xff]  ;;  %v7545_v29 = vld [vmem:[#allocation10 + $0x128] ss:$16 sps:$4 sm:$0xff]  }
 0x29a   :  { %5307 = vmatprep.subr.bf16.mxu1 %v7493_v33  ;;  %v303_v17 = vpack.c.bf16 %v267_v41, %v263_v13  ;;  %v7548_v33 = vld [vmem:[#allocation10 + $0x140] ss:$16 sps:$4 sm:$0xff]   ;;  %v7575_v13 = vld [vmem:[#allocation10 + $0x1c8] ss:$16 sps:$4 sm:$0xff]  }
 0x29b   :  { %3889 = vmatmul.mubr.bf16.vlgmr.msra.gmra.mrb[64].mxu0 %v279_v15 }
 0x29c   :  { %4115 = vmatmul.mubr.bf16.vlgmr.msra.gmra.mrb[64].mxu1 %v279_v15  ;;  %3898 = vmatprep.mubr.bf16.mxu0 %v284_v3  ;;  %v272_v15 = vld [vmem:[#allocation4 + $0x1d8] sm:$0xff] }
 0x29d   :  { %4124 = vmatprep.mubr.bf16.mxu1 %v284_v3  ;;  %5082 = vmatpush1.bf16.msra.mxu0 %v7488_v6  ;;  %v276_v3 = vld [vmem:[#allocation4 + $0x1f8] sm:$0xff]  ;;  %v7542_v6 = vld [vmem:[#allocation10 + $0x120] ss:$16 sps:$4 sm:$0xff]  }
 0x29e   :  { %5308 = vmatpush1.bf16.msra.mxu1 %v7491_v31  ;;  %5083 = vmatprep.subr.bf16.mxu0 %v7496_v38  ;;  %v308_v42 = vpack.c.bf16 %v276_v3, %v272_v15  ;;  %v7550_v31 = vld [vmem:[#allocation10 + $0x144] ss:$16 sps:$4 sm:$0xff]   ;;  %v7551_v38 = vld [vmem:[#allocation10 + $0x148] ss:$16 sps:$4 sm:$0xff]  }
 0x29f   :  { %5309 = vmatprep.subr.bf16.mxu1 %v7499_v60 }
 0x2a1   :  { %5084 = vmatpush1.bf16.msra.mxu0 %v7494_v45 }
 0x2a2   :  { %5310 = vmatpush1.bf16.msra.mxu1 %v7497_v54  ;;  %5085 = vmatprep.subr.bf16.mxu0 %v7502_v46 }
 0x2a3   :  { %3899 = vmatmul.mubr.bf16.gmra.mrb[68].mxu0 %v283_v20  ;;  %5311 = vmatprep.subr.bf16.mxu1 %v7505_v50  ;;  %v7559_v50 = vld [vmem:[#allocation10 + $0x16c] ss:$16 sps:$4 sm:$0xff]  }
 0x2a4   :  { %4125 = vmatmul.mubr.bf16.gmra.mrb[68].mxu1 %v283_v20  ;;  %3908 = vmatprep.mubr.bf16.mxu0 %v288_v43  ;;  %v7532_v20 = vld [vmem:[#allocation10 + $0xe4] ss:$16 sps:$4 sm:$0xff]  }
 0x2a5   :  { %4134 = vmatprep.mubr.bf16.mxu1 %v288_v43  ;;  %5086 = vmatpush1.bf16.msra.mxu0 %v7500_v35  ;;  %v7530_v43 = vld [vmem:[#allocation10 + $0xe0] ss:$16 sps:$4 sm:$0xff]  }
 0x2a6   :  { %5312 = vmatpush1.bf16.msra.mxu1 %v7503_v55  ;;  %5087 = vmatprep.subr.bf16.mxu0 %v7508_v57  ;;  %v7554_v35 = vld [vmem:[#allocation10 + $0x160] ss:$16 sps:$4 sm:$0xff]   ;;  %v7565_v57 = vld [vmem:[#allocation10 + $0x18c] ss:$16 sps:$4 sm:$0xff]  }
 0x2a7   :  { %5313 = vmatprep.subr.bf16.mxu1 %v7511_v59  ;;  %v7560_v59 = vld [vmem:[#allocation10 + $0x180] ss:$16 sps:$4 sm:$0xff]  }
 0x2a9   :  { %5088 = vmatpush1.bf16.msra.mxu0 %v7506_v58 }
 0x2aa   :  { %5314 = vmatpush1.bf16.msra.mxu1 %v7509_v61  ;;  %5089 = vmatprep.subr.bf16.mxu0 %v7514_v19  ;;  %v7563_v61 = vld [vmem:[#allocation10 + $0x188] ss:$16 sps:$4 sm:$0xff]  }
 0x2ab   :  { %3909 = vmatmul.mubr.bf16.gmra.mrb[72].mxu0 %v287_v62  ;;  %5315 = vmatprep.subr.bf16.mxu1 %v7517_v0 }
 0x2ac   :  { %4135 = vmatmul.mubr.bf16.gmra.mrb[72].mxu1 %v287_v62  ;;  %3918 = vmatprep.mubr.bf16.mxu0 %v292_v23  ;;  %v275_v62 = vld [vmem:[#allocation4 + $0x1f0] sm:$0xff] }
 0x2ad   :  { %4144 = vmatprep.mubr.bf16.mxu1 %v292_v23  ;;  %5090 = vmatpush1.bf16.msra.mxu0 %v7512_v4  ;;  %v7541_v23 = vld [vmem:[#allocation10 + $0x10c] ss:$16 sps:$4 sm:$0xff]   ;;  %v307_v26 = vpack.c.bf16 %v275_v62, %v271_v22  ;;  %v7568_v4 = vld [vmem:[#allocation10 + $0x1a4] ss:$16 sps:$4 sm:$0xff]  }
 0x2ae   :  { %5316 = vmatpush1.bf16.msra.mxu1 %v7515_v5  ;;  %5091 = vmatprep.subr.bf16.mxu0 %v7520_v8  ;;  %v7569_v8 = vld [vmem:[#allocation10 + $0x1a8] ss:$16 sps:$4 sm:$0xff]  }
 0x2af   :  { %5317 = vmatprep.subr.bf16.mxu1 %v7523_v10  ;;  %v7577_v10 = vld [vmem:[#allocation10 + $0x1cc] ss:$16 sps:$4 sm:$0xff]  }
 0x2b1   :  { %5092 = vmatpush1.bf16.msra.mxu0 %v7518_v9  ;;  %v7574_v9 = vld [vmem:[#allocation10 + $0x1c4] ss:$16 sps:$4 sm:$0xff]  }
 0x2b2   :  { %5318 = vmatpush1.bf16.msra.mxu1 %v7521_v11  ;;  %5093 = vmatprep.subr.bf16.mxu0 %v7526_v12  ;;  %v7572_v12 = vld [vmem:[#allocation10 + $0x1c0] ss:$16 sps:$4 sm:$0xff]  }
 0x2b3   :  { %3919 = vmatmul.mubr.bf16.gmra.mrb[76].mxu0 %v291_v14  ;;  %5319 = vmatprep.subr.bf16.mxu1 %v7529_v28 }
 0x2b4   :  { %4145 = vmatmul.mubr.bf16.gmra.mrb[76].mxu1 %v291_v14  ;;  %3928 = vmatprep.mubr.bf16.mxu0 %v296_v32  ;;  %v7547_v14 = vld [vmem:[#allocation10 + $0x12c] ss:$16 sps:$4 sm:$0xff]  }
 0x2b5   :  { %4154 = vmatprep.mubr.bf16.mxu1 %v296_v32  ;;  %5094 = vmatpush1.bf16.msra.mxu0 %v7524_v52  ;;  %v7553_v32 = vld [vmem:[#allocation10 + $0x14c] ss:$16 sps:$4 sm:$0xff]  }
 0x2b6   :  { %5320 = vmatpush1.bf16.msra.mxu1 %v7527_v18  ;;  %5095 = vmatprep.subr.bf16.mxu0 %v7532_v20  ;;  %v7580_v18 = vld [vmem:[#allocation10 + $0x1e4] ss:$16 sps:$4 sm:$0xff]  }
 0x2b7   :  { %5321 = vmatprep.subr.bf16.mxu1 %v7535_v21  ;;  %v7581_v21 = vld [vmem:[#allocation10 + $0x1e8] ss:$16 sps:$4 sm:$0xff]  }
 0x2b9   :  { %5096 = vmatpush1.bf16.msra.mxu0 %v7530_v43  ;;  %v7578_v43 = vld [vmem:[#allocation10 + $0x1e0] ss:$16 sps:$4 sm:$0xff]  }
 0x2ba   :  { %5322 = vmatpush1.bf16.msra.mxu1 %v7533_v34  ;;  %5097 = vmatprep.subr.bf16.mxu0 %v7538_v24  ;;  %v7586_v34 = vld [vmem:[#allocation10 + $0x204] ss:$16 sps:$4 sm:$0xff]   ;;  %v7589_v24 = vld [vmem:[#allocation10 + $0x20c] ss:$16 sps:$4 sm:$0xff]  }
 0x2bb   :  { %3929 = vmatmul.mubr.bf16.gmra.mrb[80].mxu0 %v295_v30  ;;  %5323 = vmatprep.subr.bf16.mxu1 %v7541_v23 }
 0x2bc   :  { %4155 = vmatmul.mubr.bf16.gmra.mrb[80].mxu1 %v295_v30  ;;  %3938 = vmatprep.mubr.bf16.mxu0 %v300_v56  ;;  %v7557_v30 = vld [vmem:[#allocation10 + $0x168] ss:$16 sps:$4 sm:$0xff]  }
 0x2bd   :  { %4164 = vmatprep.mubr.bf16.mxu1 %v300_v56  ;;  %5098 = vmatpush1.bf16.msra.mxu0 %v7536_v25  ;;  %v7562_v56 = vld [vmem:[#allocation10 + $0x184] ss:$16 sps:$4 sm:$0xff]  }
 0x2be   :  { %5324 = vmatpush1.bf16.msra.mxu1 %v7539_v44  ;;  %5099 = vmatprep.subr.bf16.mxu0 %v7544_v27 }
 0x2bf   :  { %5325 = vmatprep.subr.bf16.mxu1 %v7547_v14 }
 0x2c1   :  { %5100 = vmatpush1.bf16.msra.mxu0 %v7542_v6 }
 0x2c2   :  { %5326 = vmatpush1.bf16.msra.mxu1 %v7545_v29  ;;  %5101 = vmatprep.subr.bf16.mxu0 %v7550_v31 }
 0x2c3   :  { %3939 = vmatmul.mubr.bf16.gmra.mrb[84].mxu0 %v299_v7  ;;  %5327 = vmatprep.subr.bf16.mxu1 %v7553_v32 }
 0x2c4   :  { %4165 = vmatmul.mubr.bf16.gmra.mrb[84].mxu1 %v299_v7  ;;  %3948 = vmatprep.mubr.bf16.mxu0 %v304_v47  ;;  %v7571_v7 = vld [vmem:[#allocation10 + $0x1ac] ss:$16 sps:$4 sm:$0xff]  }
 0x2c5   :  { %4174 = vmatprep.mubr.bf16.mxu1 %v304_v47  ;;  %5102 = vmatpush1.bf16.msra.mxu0 %v7548_v33  ;;  %v7566_v47 = vld [vmem:[#allocation10 + $0x1a0] ss:$16 sps:$4 sm:$0xff]  }
 0x2c6   :  { %5328 = vmatpush1.bf16.msra.mxu1 %v7551_v38  ;;  %5103 = vmatprep.subr.bf16.mxu0 %v7556_v49 }
 0x2c7   :  { %5329 = vmatprep.subr.bf16.mxu1 %v7559_v50 }
 0x2c9   :  { %5104 = vmatpush1.bf16.msra.mxu0 %v7554_v35 }
 0x2ca   :  { %5330 = vmatpush1.bf16.msra.mxu1 %v7557_v30  ;;  %5105 = vmatprep.subr.bf16.mxu0 %v7562_v56 }
 0x2cb   :  { %3949 = vmatmul.mubr.bf16.gmra.mrb[88].mxu0 %v303_v17  ;;  %5331 = vmatprep.subr.bf16.mxu1 %v7565_v57 }
 0x2cc   :  { %4175 = vmatmul.mubr.bf16.gmra.mrb[88].mxu1 %v303_v17  ;;  %3958 = vmatprep.mubr.bf16.mxu0 %v308_v42 }
 0x2cd   :  { %4184 = vmatprep.mubr.bf16.mxu1 %v308_v42  ;;  %5106 = vmatpush1.bf16.msra.mxu0 %v7560_v59  ;;  %v7583_v42 = vld [vmem:[#allocation10 + $0x1ec] ss:$16 sps:$4 sm:$0xff]  }
 0x2ce   :  { %5332 = vmatpush1.bf16.msra.mxu1 %v7563_v61  ;;  %5107 = vmatprep.subr.bf16.mxu0 %v7568_v4 }
 0x2cf   :  { %5333 = vmatprep.subr.bf16.mxu1 %v7571_v7 }
 0x2d1   :  { %5108 = vmatpush1.bf16.msra.mxu0 %v7566_v47 }
 0x2d2   :  { %5334 = vmatpush1.bf16.msra.mxu1 %v7569_v8  ;;  %5109 = vmatprep.subr.bf16.mxu0 %v7574_v9 }
 0x2d3   :  { %3959 = vmatmul.mubr.bf16.gmra.mrb[92].mxu0 %v307_v26  ;;  %5335 = vmatprep.subr.bf16.mxu1 %v7577_v10 }
 0x2d4   :  { %4185 = vmatmul.mubr.bf16.gmra.mrb[92].mxu1 %v307_v26 }
 0x2d5   :  { %5110 = vmatpush1.bf16.msra.mxu0 %v7572_v12 }
 0x2d6   :  { %5336 = vmatpush1.bf16.msra.mxu1 %v7575_v13  ;;  %5111 = vmatprep.subr.bf16.mxu0 %v7580_v18 }
 0x2d7   :  { %5337 = vmatprep.subr.bf16.mxu1 %v7583_v42 }
 0x2d9   :  { %5112 = vmatpush1.bf16.msra.mxu0 %v7578_v43 }
 0x2da   :  { %5338 = vmatpush1.bf16.msra.mxu1 %v7581_v21  ;;  %5194 = vmatprep.subr.bf16.mxu0 %v7586_v34 }
 0x2db   :  { %5420 = vmatprep.subr.bf16.mxu1 %v7589_v24 }
 0x2ed   :  { %v8702_v45 = vpop.f32.mrb[32].mxu0 }
 0x2ee   :  { %v8704_v60 = vpop.f32.mrb[32].mxu1  ;;  %v8706_v54 = vpop.f32.mrb[33].mxu0 }
 0x2ef   :  { %v8708_v46 = vpop.f32.mrb[33].mxu1  ;;  %v8710_v48 = vpop.f32.mrb[34].mxu0 }
 0x2f0   :  { %v8712_v51 = vpop.f32.mrb[34].mxu1  ;;  %v8714_v53 = vpop.f32.mrb[35].mxu0 }
 0x2f1   :  { %v8716_v55 = vpop.f32.mrb[35].mxu1 }
 0x2f5   :  { %v8718_v58 = vpop.f32.mrb[36].mxu0 }
 0x2f6   :  { %v8720_v19 = vpop.f32.mrb[36].mxu1  ;;  %v8722_v16 = vpop.f32.mrb[37].mxu0 }
 0x2f7   :  { %v8724_v63 = vpop.f32.mrb[37].mxu1  ;;  %v8726_v0 = vpop.f32.mrb[38].mxu0 }
 0x2f8   :  { %v8728_v1 = vpop.f32.mrb[38].mxu1  ;;  %v8730_v2 = vpop.f32.mrb[39].mxu0 }
 0x2f9   :  { %v8732_v5 = vpop.f32.mrb[39].mxu1 }
 0x2fd   :  { %v8734_v11 = vpop.f32.mrb[40].mxu0 }
 0x2fe   :  { %v8736_v41 = vpop.f32.mrb[40].mxu1  ;;  %v8738_v28 = vpop.f32.mrb[41].mxu0 }
 0x2ff   :  { %v8740_v15 = vpop.f32.mrb[41].mxu1  ;;  %v8742_v3 = vpop.f32.mrb[42].mxu0 }
 0x300   :  { %9454 = vst [vmem:[#allocation16_spill] sm:$0xff] %v8740_v15  ;;  %9455 = vst [vmem:[#allocation17_spill] sm:$0xff] %v8742_v3  ;;  %v8744_v52 = vpop.f32.mrb[42].mxu1  ;;  %v8746_v17 = vpop.f32.mrb[43].mxu0  ;;  %v7644_v15 = vld [vmem:[#allocation10 + $0x340] ss:$16 sps:$4 sm:$0xff]  }
 0x301   :  { %9456 = vst [vmem:[#allocation18_spill] sm:$0xff] %v8744_v52  ;;  %9457 = vst [vmem:[#allocation19_spill] sm:$0xff] %v8746_v17  ;;  %v8748_v20 = vpop.f32.mrb[43].mxu1  ;;  %v7632_v52 = vld [vmem:[#allocation10 + $0x300] ss:$16 sps:$4 sm:$0xff]  }
 0x302   :  { %9458 = vst [vmem:[#allocation20_spill] sm:$0xff] %v8748_v20  ;;  %v7620_v20 = vld [vmem:[#allocation10 + $0x2c0] ss:$16 sps:$4 sm:$0xff]  }
 0x305   :  { %v8750_v22 = vpop.f32.mrb[44].mxu0 }
 0x306   :  { %9459 = vst [vmem:[#allocation21_spill] sm:$0xff] %v8750_v22  ;;  %v8752_v62 = vpop.f32.mrb[44].mxu1  ;;  %v8754_v23 = vpop.f32.mrb[45].mxu0 }
 0x307   :  { %9460 = vst [vmem:[#allocation22_spill] sm:$0xff] %v8752_v62  ;;  %9461 = vst [vmem:[#allocation23_spill] sm:$0xff] %v8754_v23  ;;  %v8756_v25 = vpop.f32.mrb[45].mxu1  ;;  %v8758_v26 = vpop.f32.mrb[46].mxu0  ;;  %v7608_v62 = vld [vmem:[#allocation10 + $0x280] ss:$16 sps:$4 sm:$0xff]  }
 0x308   :  { %9462 = vst [vmem:[#allocation24_spill] sm:$0xff] %v8756_v25  ;;  %9463 = vst [vmem:[#allocation25_spill] sm:$0xff] %v8758_v26  ;;  %v8760_v44 = vpop.f32.mrb[46].mxu1  ;;  %v8762_v27 = vpop.f32.mrb[47].mxu0  ;;  %v7596_v25 = vld [vmem:[#allocation10 + $0x240] ss:$16 sps:$4 sm:$0xff]  }
 0x309   :  { %9464 = vst [vmem:[#allocation26_spill] sm:$0xff] %v8760_v44  ;;  %9465 = vst [vmem:[#allocation27_spill] sm:$0xff] %v8762_v27  ;;  %v8764_v14 = vpop.f32.mrb[47].mxu1 }
 0x30a   :  { %9466 = vst [vmem:[#allocation28_spill] sm:$0xff] %v8764_v14 }
 0x30d   :  { %v8766_v6 = vpop.f32.mrb[48].mxu0 }
 0x30e   :  { %9467 = vst [vmem:[#allocation29_spill] sm:$0xff] %v8766_v6  ;;  %v8768_v29 = vpop.f32.mrb[48].mxu1  ;;  %v8770_v31 = vpop.f32.mrb[49].mxu0  ;;  %v7587_v6 = vld [vmem:[#allocation10 + $0x208] ss:$16 sps:$4 sm:$0xff]  }
 0x30f   :  { %9468 = vst [vmem:[#allocation30_spill] sm:$0xff] %v8768_v29  ;;  %9469 = vst [vmem:[#allocation31_spill] sm:$0xff] %v8770_v31  ;;  %v8772_v32 = vpop.f32.mrb[49].mxu1  ;;  %v8774_v33 = vpop.f32.mrb[50].mxu0 }
 0x310   :  { %9470 = vst [vmem:[#allocation32_spill] sm:$0xff] %v8772_v32  ;;  %9471 = vst [vmem:[#allocation33_spill] sm:$0xff] %v8774_v33  ;;  %v8776_v38 = vpop.f32.mrb[50].mxu1  ;;  %v8778_v49 = vpop.f32.mrb[51].mxu0 }
 0x311   :  { %9472 = vst [vmem:[#allocation34_spill] sm:$0xff] %v8776_v38  ;;  %9473 = vst [vmem:[#allocation35_spill] sm:$0xff] %v8778_v49  ;;  %v8780_v50 = vpop.f32.mrb[51].mxu1 }
 0x312   :  { %9474 = vst [vmem:[#allocation36_spill] sm:$0xff] %v8780_v50 }
 0x315   :  { %v8782_v35 = vpop.f32.mrb[52].mxu0 }
 0x316   :  { %9475 = vst [vmem:[#allocation37_spill] sm:$0xff] %v8782_v35  ;;  %v8784_v30 = vpop.f32.mrb[52].mxu1  ;;  %v8786_v56 = vpop.f32.mrb[53].mxu0 }
 0x317   :  { %9476 = vst [vmem:[#allocation38_spill] sm:$0xff] %v8784_v30  ;;  %9477 = vst [vmem:[#allocation39_spill] sm:$0xff] %v8786_v56  ;;  %v8788_v57 = vpop.f32.mrb[53].mxu1  ;;  %v8790_v59 = vpop.f32.mrb[54].mxu0 }
 0x318   :  { %9478 = vst [vmem:[#allocation40_spill] sm:$0xff] %v8788_v57  ;;  %9479 = vst [vmem:[#allocation41_spill] sm:$0xff] %v8790_v59  ;;  %v8792_v61 = vpop.f32.mrb[54].mxu1  ;;  %v8794_v4 = vpop.f32.mrb[55].mxu0 }
 0x319   :  { %9480 = vst [vmem:[#allocation42_spill] sm:$0xff] %v8792_v61  ;;  %9481 = vst [vmem:[#allocation43_spill] sm:$0xff] %v8794_v4  ;;  %v8796_v7 = vpop.f32.mrb[55].mxu1 }
 0x31a   :  { %9482 = vst [vmem:[#allocation44_spill] sm:$0xff] %v8796_v7 }
 0x31d   :  { %v8798_v47 = vpop.f32.mrb[56].mxu0 }
 0x31e   :  { %9483 = vst [vmem:[#allocation45_spill] sm:$0xff] %v8798_v47  ;;  %v8800_v8 = vpop.f32.mrb[56].mxu1  ;;  %v8802_v9 = vpop.f32.mrb[57].mxu0 }
 0x31f   :  { %9484 = vst [vmem:[#allocation46_spill] sm:$0xff] %v8800_v8  ;;  %9485 = vst [vmem:[#allocation47_spill] sm:$0xff] %v8802_v9  ;;  %v8804_v10 = vpop.f32.mrb[57].mxu1  ;;  %v8806_v12 = vpop.f32.mrb[58].mxu0 }
 0x320   :  { %9486 = vst [vmem:[#allocation48_spill] sm:$0xff] %v8804_v10  ;;  %9487 = vst [vmem:[#allocation49_spill] sm:$0xff] %v8806_v12  ;;  %v8808_v13 = vpop.f32.mrb[58].mxu1  ;;  %v8810_v18 = vpop.f32.mrb[59].mxu0 }
 0x321   :  { %9488 = vst [vmem:[#allocation50_spill] sm:$0xff] %v8808_v13  ;;  %9489 = vst [vmem:[#allocation51_spill] sm:$0xff] %v8810_v18  ;;  %v8812_v42 = vpop.f32.mrb[59].mxu1 }
 0x322   :  { %9490 = vst [vmem:[#allocation52_spill] sm:$0xff] %v8812_v42  ;;  %v3081_v42 = vld [vmem:[%s9450_s7] sm:$0xf] }
 0x325   :  { %v8814_v43 = vpop.f32.mrb[60].mxu0 }
 0x326   :  { %9491 = vst [vmem:[#allocation53_spill] sm:$0xff] %v8814_v43  ;;  %v8816_v21 = vpop.f32.mrb[60].mxu1  ;;  %v8818_v34 = vpop.f32.mrb[61].mxu0  ;;  %v8834_v43 = vrot.slane %v3081_v42, %v8551_v36 }
 0x327   :  { %9492 = vst [vmem:[#allocation54_spill] sm:$0xff] %v8816_v21  ;;  %9493 = vst [vmem:[#allocation55_spill] sm:$0xff] %v8818_v34  ;;  %v8820_v24 = vpop.f32.mrb[61].mxu1  ;;  %v8822_v8 = vpop.f32.mrb[62].mxu0  ;;  %v8837_v21 = vrot.slane %v3081_v42, %v8553_v37 }
 0x328   :  { %9494 = vst [vmem:[#allocation56_spill] sm:$0xff] %v8820_v24  ;;  %9495 = vst [vmem:[#allocation57_spill] sm:$0xff] %v8822_v8  ;;  %v8824_v9 = vpop.f32.mrb[62].mxu1  ;;  %v8826_v10 = vpop.f32.mrb[63].mxu0  ;;  %v8840_v24 = vrot.slane %v3081_v42, %v8558_v39  ;;  %v8843_v8 = vrot.slane %v3081_v42, %v8560_v40 }
 0x329   :  { %9496 = vst [vmem:[#allocation58_spill] sm:$0xff] %v8824_v9  ;;  %9497 = vst [vmem:[#allocation59_spill] sm:$0xff] %v8826_v10  ;;  %v8828_v12 = vpop.f32.mrb[63].mxu1 }
 0x32a   :  { %9498 = vst [vmem:[#allocation60_spill] sm:$0xff] %v8828_v12 }
 0x36e   :  { %v3890_v9 = vpop.f32.mrb[64].mxu0 }
 0x36f   :  { %v6518_v10 = vadd.f32 %v3890_v9, %v8834_v43  ;;  %v4116_v12 = vpop.f32.mrb[64].mxu1  ;;  %v3892_v34 = vpop.f32.mrb[65].mxu0 }
 0x370   :  { %v6550_v18 = vadd.f32 %v4116_v12, %v8837_v21  ;;  %v6519_v13 = vadd.f32 %v3892_v34, %v8840_v24  ;;  %v4118_v47 = vpop.f32.mrb[65].mxu1  ;;  %v3894_v7 = vpop.f32.mrb[66].mxu0 }
 0x371   :  { %7808 = vtanh.f32 %v6518_v10  ;;  %v6551_v4 = vadd.f32 %v4118_v47, %v8843_v8  ;;  %v6520_v61 = vadd.f32 %v3894_v7, %v8834_v43  ;;  %v4120_v59 = vpop.f32.mrb[66].mxu1  ;;  %v3896_v57 = vpop.f32.mrb[67].mxu0 }
 0x372   :  { %7810 = vtanh.f32 %v6550_v18  ;;  %v6552_v42 = vadd.f32 %v4120_v59, %v8837_v21  ;;  %v4122_v56 = vpop.f32.mrb[67].mxu1  ;;  %v6521_v9 = vadd.f32 %v3896_v57, %v8840_v24 }
 0x373   :  { %7812 = vtanh.f32 %v6519_v13  ;;  %v6553_v12 = vadd.f32 %v4122_v56, %v8843_v8 }
 0x374   :  { %7814 = vtanh.f32 %v6551_v4 }
 0x375   :  { %7816 = vtanh.f32 %v6520_v61 }
 0x376   :  { %7818 = vtanh.f32 %v6552_v42  ;;  %v3900_v34 = vpop.f32.mrb[68].mxu0 }
 0x377   :  { %7820 = vtanh.f32 %v6521_v9  ;;  %v6522_v47 = vadd.f32 %v3900_v34, %v8834_v43  ;;  %v4126_v10 = vpop.f32.mrb[68].mxu1  ;;  %v3902_v7 = vpop.f32.mrb[69].mxu0 }
 0x378   :  { %7822 = vtanh.f32 %v6553_v12  ;;  %v6554_v18 = vadd.f32 %v4126_v10, %v8837_v21  ;;  %v6523_v59 = vadd.f32 %v3902_v7, %v8840_v24  ;;  %v4128_v30 = vpop.f32.mrb[69].mxu1  ;;  %v3904_v13 = vpop.f32.mrb[70].mxu0 }
 0x379   :  { %7824 = vtanh.f32 %v6522_v47  ;;  %v6555_v57 = vadd.f32 %v4128_v30, %v8843_v8  ;;  %v6524_v56 = vadd.f32 %v3904_v13, %v8834_v43  ;;  %v4130_v61 = vpop.f32.mrb[70].mxu1  ;;  %v3906_v4 = vpop.f32.mrb[71].mxu0 }
 0x37a   :  { %7826 = vtanh.f32 %v6554_v18  ;;  %v6556_v42 = vadd.f32 %v4130_v61, %v8837_v21  ;;  %v4132_v9 = vpop.f32.mrb[71].mxu1  ;;  %v6525_v12 = vadd.f32 %v3906_v4, %v8840_v24 }
 0x37b   :  { %v7809_v34 = vpop.eup %7808  ;;  %7828 = vtanh.f32 %v6523_v59  ;;  %v6557_v7 = vadd.f32 %v4132_v9, %v8843_v8 }
 0x37c   :  { %v7811_v10 = vpop.eup %7810  ;;  %7830 = vtanh.f32 %v6555_v57 }
 0x37d   :  { %v7813_v35 = vpop.eup %7812  ;;  %7832 = vtanh.f32 %v6524_v56 }
 0x37e   :  { %v7815_v47 = vpop.eup %7814  ;;  %7834 = vtanh.f32 %v6556_v42  ;;  %v3910_v30 = vpop.f32.mrb[72].mxu0 }
 0x37f   :  { %v7817_v13 = vpop.eup %7816  ;;  %7836 = vtanh.f32 %v6525_v12  ;;  %v6526_v18 = vadd.f32 %v3910_v30, %v8834_v43  ;;  %v4136_v50 = vpop.f32.mrb[72].mxu1 }
 0x380   :  { %v3912_v61 = vpop.f32.mrb[73].mxu0  ;;  %v7819_v49 = vpop.eup %7818  ;;  %7838 = vtanh.f32 %v6557_v7  ;;  %v6558_v59 = vadd.f32 %v4136_v50, %v8837_v21  ;;  %v4259_v9 = vpack.c.bf16 %v7817_v13, %v7809_v34  ;;  %v7592_v13 = vld [vmem:[#allocation10 + $0x224] ss:$16 sps:$4 sm:$0xff]  }
 0x381   :  { %v6527_v4 = vadd.f32 %v3912_v61, %v8840_v24  ;;  %v4138_v57 = vpop.f32.mrb[73].mxu1  ;;  %v3914_v38 = vpop.f32.mrb[74].mxu0  ;;  %7840 = vtanh.f32 %v6526_v18  ;;  %v8866_v30 = vpack.c.bf16 %v7819_v49, %v7811_v10  ;;  %v7584_v61 = vld [vmem:[#allocation10 + $0x200] ss:$16 sps:$4 sm:$0xff]   ;;  %v7595_v18 = vld [vmem:[#allocation10 + $0x22c] ss:$16 sps:$4 sm:$0xff]  }
 0x382   :  { %v7821_v33 = vpop.eup %7820  ;;  %v6559_v56 = vadd.f32 %v4138_v57, %v8843_v8  ;;  %v6528_v42 = vadd.f32 %v3914_v38, %v8834_v43  ;;  %v4140_v12 = vpop.f32.mrb[74].mxu1  ;;  %7842 = vtanh.f32 %v6558_v59  ;;  %v7593_v59 = vld [vmem:[#allocation10 + $0x228] ss:$16 sps:$4 sm:$0xff]  }
 0x383   :  { %v3916_v32 = vpop.f32.mrb[75].mxu0  ;;  %v7823_v31 = vpop.eup %7822  ;;  %v6560_v7 = vadd.f32 %v4140_v12, %v8837_v21  ;;  %v4260_v29 = vpack.c.bf16 %v7821_v33, %v7813_v35  ;;  %7844 = vtanh.f32 %v6527_v4  ;;  %v7601_v12 = vld [vmem:[#allocation10 + $0x24c] ss:$16 sps:$4 sm:$0xff]  }
 0x384   :  { %v4142_v50 = vpop.f32.mrb[75].mxu1  ;;  %v7825_v14 = vpop.eup %7824  ;;  %v6529_v34 = vadd.f32 %v3916_v32, %v8840_v24  ;;  %v8870_v57 = vpack.c.bf16 %v7823_v31, %v7815_v47  ;;  %7846 = vtanh.f32 %v6559_v56  ;;  %v7590_v32 = vld [vmem:[#allocation10 + $0x220] ss:$16 sps:$4 sm:$0xff]  }
 0x385   :  { %v7827_v38 = vpop.eup %7826  ;;  %v6561_v49 = vadd.f32 %v4142_v50, %v8843_v8  ;;  %5113 = vmatprep.mubr.bf16.mxu0 %v4260_v29  ;;  %5339 = vmatprep.mubr.bf16.mxu1 %v4260_v29  ;;  %7848 = vtanh.f32 %v6528_v42  ;;  %v7598_v29 = vld [vmem:[#allocation10 + $0x244] ss:$16 sps:$4 sm:$0xff]  }
 0x386   :  { %v7829_v10 = vpop.eup %7828  ;;  %5114 = vmatmul.mubr.bf16.vlgmr.msra.gmra.mrb[96].mxu0 %v4259_v9  ;;  %5340 = vmatmul.mubr.bf16.vlgmr.msra.gmra.mrb[96].mxu1 %v4259_v9  ;;  %7850 = vtanh.f32 %v6560_v7  ;;  %v3920_v35 = vpop.f32.mrb[76].mxu0 }
 0x387   :  { %v7831_v33 = vpop.eup %7830  ;;  %5195 = vmatpush1.bf16.msra.mxu0 %v7584_v61  ;;  %5421 = vmatpush1.bf16.msra.mxu1 %v7587_v6  ;;  %7852 = vtanh.f32 %v6529_v34  ;;  %v6530_v31 = vadd.f32 %v3920_v35, %v8834_v43  ;;  %v4146_v47 = vpop.f32.mrb[76].mxu1 }
 0x388   :  { %v7833_v4 = vpop.eup %7832  ;;  %5196 = vmatprep.subr.bf16.mxu0 %v7592_v13  ;;  %5422 = vmatprep.subr.bf16.mxu1 %v7595_v18  ;;  %v3922_v56 = vpop.f32.mrb[77].mxu0  ;;  %7854 = vtanh.f32 %v6561_v49  ;;  %v6562_v9 = vadd.f32 %v4146_v47, %v8837_v21 }
 0x389   :  { %v7835_v42 = vpop.eup %7834  ;;  %v6531_v7 = vadd.f32 %v3922_v56, %v8840_v24  ;;  %v4148_v6 = vpop.f32.mrb[77].mxu1  ;;  %v4263_v61 = vpack.c.bf16 %v7833_v4, %v7825_v14  ;;  %7856 = vtanh.f32 %v6530_v31  ;;  %v7599_v14 = vld [vmem:[#allocation10 + $0x248] ss:$16 sps:$4 sm:$0xff]  }
 0x38a   :  { %v3924_v50 = vpop.f32.mrb[78].mxu0  ;;  %v7837_v27 = vpop.eup %7836  ;;  %v6563_v34 = vadd.f32 %v4148_v6, %v8843_v8  ;;  %v8878_v44 = vpack.c.bf16 %v7835_v42, %v7827_v38  ;;  %7858 = vtanh.f32 %v6562_v9  ;;  %v7604_v6 = vld [vmem:[#allocation10 + $0x264] ss:$16 sps:$4 sm:$0xff]  }
 0x38b   :  { %v6532_v35 = vadd.f32 %v3924_v50, %v8834_v43  ;;  %v4150_v13 = vpop.f32.mrb[78].mxu1  ;;  %v3926_v18 = vpop.f32.mrb[79].mxu0  ;;  %5197 = vmatpush1.bf16.msra.mxu0 %v7590_v32  ;;  %5423 = vmatpush1.bf16.msra.mxu1 %v7593_v59  ;;  %v4264_v56 = vpack.c.bf16 %v7837_v27, %v7829_v10  ;;  %7860 = vtanh.f32 %v6531_v7  ;;  %v7607_v50 = vld [vmem:[#allocation10 + $0x26c] ss:$16 sps:$4 sm:$0xff]  }
 0x38c   :  { %v7839_v26 = vpop.eup %7838  ;;  %v6564_v49 = vadd.f32 %v4150_v13, %v8837_v21  ;;  %v4152_v47 = vpop.f32.mrb[79].mxu1  ;;  %v6533_v31 = vadd.f32 %v3926_v18, %v8840_v24  ;;  %5198 = vmatprep.subr.bf16.mxu0 %v7598_v29  ;;  %5424 = vmatprep.subr.bf16.mxu1 %v7601_v12  ;;  %7862 = vtanh.f32 %v6563_v34  ;;  %v7602_v29 = vld [vmem:[#allocation10 + $0x260] ss:$16 sps:$4 sm:$0xff]   ;;  %v7605_v12 = vld [vmem:[#allocation10 + $0x268] ss:$16 sps:$4 sm:$0xff]  }
 0x38d   :  { %v7841_v4 = vpop.eup %7840  ;;  %v8882_v38 = vpack.c.bf16 %v7839_v26, %v7831_v33  ;;  %v6565_v32 = vadd.f32 %v4152_v47, %v8843_v8  ;;  %5123 = vmatprep.mubr.bf16.mxu0 %v4264_v56  ;;  %5349 = vmatprep.mubr.bf16.mxu1 %v4264_v56  ;;  %7864 = vtanh.f32 %v6532_v35  ;;  %v7610_v34 = vld [vmem:[#allocation10 + $0x284] ss:$16 sps:$4 sm:$0xff]   ;;  %v7613_v13 = vld [vmem:[#allocation10 + $0x28c] ss:$16 sps:$4 sm:$0xff]  }
 0x38e   :  { %v7843_v42 = vpop.eup %7842  ;;  %5124 = vmatmul.mubr.bf16.gmra.mrb[100].mxu0 %v4263_v61  ;;  %5350 = vmatmul.mubr.bf16.gmra.mrb[100].mxu1 %v4263_v61  ;;  %7866 = vtanh.f32 %v6564_v49  ;;  %v3930_v10 = vpop.f32.mrb[80].mxu0 }
 0x38f   :  { %v7845_v59 = vpop.eup %7844  ;;  %5199 = vmatpush1.bf16.msra.mxu0 %v7596_v25  ;;  %5425 = vmatpush1.bf16.msra.mxu1 %v7599_v14  ;;  %7868 = vtanh.f32 %v6533_v31  ;;  %v6534_v26 = vadd.f32 %v3930_v10, %v8834_v43  ;;  %v4156_v33 = vpop.f32.mrb[80].mxu1 }
 0x390   :  { %v7847_v27 = vpop.eup %7846  ;;  %5200 = vmatprep.subr.bf16.mxu0 %v7604_v6  ;;  %5426 = vmatprep.subr.bf16.mxu1 %v7607_v50  ;;  %v3932_v7 = vpop.f32.mrb[81].mxu0  ;;  %7870 = vtanh.f32 %v6565_v32  ;;  %v6566_v61 = vadd.f32 %v4156_v33, %v8837_v21 }
 0x391   :  { %v7849_v9 = vpop.eup %7848  ;;  %v6535_v25 = vadd.f32 %v3932_v7, %v8840_v24  ;;  %v4158_v18 = vpop.f32.mrb[81].mxu1  ;;  %7872 = vtanh.f32 %v6534_v26 }
 0x392   :  { %v7851_v35 = vpop.eup %7850  ;;  %v3934_v49 = vpop.f32.mrb[82].mxu0  ;;  %v4267_v47 = vpack.c.bf16 %v7849_v9, %v7841_v4  ;;  %v6567_v14 = vadd.f32 %v4158_v18, %v8843_v8  ;;  %7874 = vtanh.f32 %v6566_v61  ;;  %v7611_v4 = vld [vmem:[#allocation10 + $0x288] ss:$16 sps:$4 sm:$0xff]   ;;  %v7616_v18 = vld [vmem:[#allocation10 + $0x2a4] ss:$16 sps:$4 sm:$0xff]  }
 0x393   :  { %v7853_v56 = vpop.eup %7852  ;;  %v6536_v31 = vadd.f32 %v3934_v49, %v8834_v43  ;;  %v4160_v6 = vpop.f32.mrb[82].mxu1  ;;  %v8890_v10 = vpack.c.bf16 %v7851_v35, %v7843_v42  ;;  %5201 = vmatpush1.bf16.msra.mxu0 %v7602_v29  ;;  %5427 = vmatpush1.bf16.msra.mxu1 %v7605_v12  ;;  %7876 = vtanh.f32 %v6535_v25  ;;  %v7619_v49 = vld [vmem:[#allocation10 + $0x2ac] ss:$16 sps:$4 sm:$0xff]   ;;  %v7617_v61 = vld [vmem:[#allocation10 + $0x2a8] ss:$16 sps:$4 sm:$0xff]  }
 0x394   :  { %v3936_v50 = vpop.f32.mrb[83].mxu0  ;;  %v7855_v23 = vpop.eup %7854  ;;  %v6568_v32 = vadd.f32 %v4160_v6, %v8837_v21  ;;  %v4268_v7 = vpack.c.bf16 %v7853_v56, %v7845_v59  ;;  %5202 = vmatprep.subr.bf16.mxu0 %v7610_v34  ;;  %5428 = vmatprep.subr.bf16.mxu1 %v7613_v13  ;;  %7878 = vtanh.f32 %v6567_v14  ;;  %v7614_v13 = vld [vmem:[#allocation10 + $0x2a0] ss:$16 sps:$4 sm:$0xff]   ;;  %v7622_v14 = vld [vmem:[#allocation10 + $0x2c4] ss:$16 sps:$4 sm:$0xff]  }
 0x395   :  { %v4162_v33 = vpop.f32.mrb[83].mxu1  ;;  %v7857_v9 = vpop.eup %7856  ;;  %v6537_v26 = vadd.f32 %v3936_v50, %v8840_v24  ;;  %v8894_v42 = vpack.c.bf16 %v7855_v23, %v7847_v27  ;;  %7880 = vtanh.f32 %v6536_v31  ;;  %v7625_v6 = vld [vmem:[#allocation10 + $0x2cc] ss:$16 sps:$4 sm:$0xff]  }
 0x396   :  { %v7859_v35 = vpop.eup %7858  ;;  %v6569_v29 = vadd.f32 %v4162_v33, %v8843_v8  ;;  %5133 = vmatprep.mubr.bf16.mxu0 %v4268_v7  ;;  %5359 = vmatprep.mubr.bf16.mxu1 %v4268_v7  ;;  %7882 = vtanh.f32 %v6568_v32  ;;  %v3940_v34 = vpop.f32.mrb[84].mxu0 }
 0x397   :  { %v7861_v12 = vpop.eup %7860  ;;  %5134 = vmatmul.mubr.bf16.gmra.mrb[104].mxu0 %v4267_v47  ;;  %5360 = vmatmul.mubr.bf16.gmra.mrb[104].mxu1 %v4267_v47  ;;  %7884 = vtanh.f32 %v6537_v26  ;;  %v6538_v23 = vadd.f32 %v3940_v34, %v8834_v43  ;;  %v4166_v27 = vpop.f32.mrb[84].mxu1 }
 0x398   :  { %v7863_v59 = vpop.eup %7862  ;;  %5203 = vmatpush1.bf16.msra.mxu0 %v7608_v62  ;;  %5429 = vmatpush1.bf16.msra.mxu1 %v7611_v4  ;;  %v3942_v56 = vpop.f32.mrb[85].mxu0  ;;  %7886 = vtanh.f32 %v6569_v29  ;;  %v6570_v47 = vadd.f32 %v4166_v27, %v8837_v21 }
 0x399   :  { %v7865_v25 = vpop.eup %7864  ;;  %5204 = vmatprep.subr.bf16.mxu0 %v7616_v18  ;;  %5430 = vmatprep.subr.bf16.mxu1 %v7619_v49  ;;  %v6539_v62 = vadd.f32 %v3942_v56, %v8840_v24  ;;  %v4168_v50 = vpop.f32.mrb[85].mxu1  ;;  %7888 = vtanh.f32 %v6538_v23 }
 0x39a   :  { %v7867_v31 = vpop.eup %7866  ;;  %v3944_v32 = vpop.f32.mrb[86].mxu0  ;;  %v4271_v33 = vpack.c.bf16 %v7865_v25, %v7857_v9  ;;  %v6571_v4 = vadd.f32 %v4168_v50, %v8843_v8  ;;  %7890 = vtanh.f32 %v6570_v47  ;;  %v7623_v9 = vld [vmem:[#allocation10 + $0x2c8] ss:$16 sps:$4 sm:$0xff]   ;;  %v7628_v50 = vld [vmem:[#allocation10 + $0x2e4] ss:$16 sps:$4 sm:$0xff]  }
 0x39b   :  { %v7869_v7 = vpop.eup %7868  ;;  %v6540_v26 = vadd.f32 %v3944_v32, %v8834_v43  ;;  %v4170_v18 = vpop.f32.mrb[86].mxu1  ;;  %v8902_v34 = vpack.c.bf16 %v7867_v31, %v7859_v35  ;;  %7892 = vtanh.f32 %v6539_v62  ;;  %v7631_v32 = vld [vmem:[#allocation10 + $0x2ec] ss:$16 sps:$4 sm:$0xff]   ;;  %v7629_v47 = vld [vmem:[#allocation10 + $0x2e8] ss:$16 sps:$4 sm:$0xff]  }
 0x39c   :  { %v3946_v49 = vpop.f32.mrb[87].mxu0  ;;  %v7871_v22 = vpop.eup %7870  ;;  %5205 = vmatpush1.bf16.msra.mxu0 %v7614_v13  ;;  %5431 = vmatpush1.bf16.msra.mxu1 %v7617_v61  ;;  %v6572_v29 = vadd.f32 %v4170_v18, %v8837_v21  ;;  %v4272_v56 = vpack.c.bf16 %v7869_v7, %v7861_v12  ;;  %7894 = vtanh.f32 %v6571_v4  ;;  %v7634_v4 = vld [vmem:[#allocation10 + $0x304] ss:$16 sps:$4 sm:$0xff]   ;;  %v7637_v18 = vld [vmem:[#allocation10 + $0x30c] ss:$16 sps:$4 sm:$0xff]  }
 0x39d   :  { %v4172_v27 = vpop.f32.mrb[87].mxu1  ;;  %v7873_v25 = vpop.eup %7872  ;;  %v6541_v23 = vadd.f32 %v3946_v49, %v8840_v24  ;;  %5206 = vmatprep.subr.bf16.mxu0 %v7622_v14  ;;  %5432 = vmatprep.subr.bf16.mxu1 %v7625_v6  ;;  %v8906_v35 = vpack.c.bf16 %v7871_v22, %v7863_v59  ;;  %7896 = vtanh.f32 %v6540_v26  ;;  %v7626_v6 = vld [vmem:[#allocation10 + $0x2e0] ss:$16 sps:$4 sm:$0xff]  }
 0x39e   :  { %v7875_v31 = vpop.eup %7874  ;;  %v6573_v13 = vadd.f32 %v4172_v27, %v8843_v8  ;;  %5143 = vmatprep.mubr.bf16.mxu0 %v4272_v56  ;;  %5369 = vmatprep.mubr.bf16.mxu1 %v4272_v56  ;;  %7898 = vtanh.f32 %v6572_v29  ;;  %v3950_v14 = vpop.f32.mrb[88].mxu0 }
 0x39f   :  { %v7877_v61 = vpop.eup %7876  ;;  %5144 = vmatmul.mubr.bf16.gmra.mrb[108].mxu0 %v4271_v33  ;;  %5370 = vmatmul.mubr.bf16.gmra.mrb[108].mxu1 %v4271_v33  ;;  %7900 = vtanh.f32 %v6541_v23  ;;  %v6542_v22 = vadd.f32 %v3950_v14, %v8834_v43  ;;  %v4176_v59 = vpop.f32.mrb[88].mxu1 }
 0x3a0   :  { %v7879_v12 = vpop.eup %7878  ;;  %5207 = vmatpush1.bf16.msra.mxu0 %v7620_v20  ;;  %5433 = vmatpush1.bf16.msra.mxu1 %v7623_v9  ;;  %v3952_v7 = vpop.f32.mrb[89].mxu0  ;;  %7902 = vtanh.f32 %v6573_v13  ;;  %v6574_v33 = vadd.f32 %v4176_v59, %v8837_v21 }
 0x3a1   :  { %v7881_v62 = vpop.eup %7880  ;;  %5208 = vmatprep.subr.bf16.mxu0 %v7628_v50  ;;  %5434 = vmatprep.subr.bf16.mxu1 %v7631_v32  ;;  %v6543_v20 = vadd.f32 %v3952_v7, %v8840_v24  ;;  %v4178_v49 = vpop.f32.mrb[89].mxu1  ;;  %7904 = vtanh.f32 %v6542_v22 }
 0x3a2   :  { %v7883_v26 = vpop.eup %7882  ;;  %v3954_v29 = vpop.f32.mrb[90].mxu0  ;;  %v4275_v27 = vpack.c.bf16 %v7881_v62, %v7873_v25  ;;  %v6575_v9 = vadd.f32 %v4178_v49, %v8843_v8  ;;  %7906 = vtanh.f32 %v6574_v33  ;;  %v7635_v25 = vld [vmem:[#allocation10 + $0x308] ss:$16 sps:$4 sm:$0xff]   ;;  %v7640_v49 = vld [vmem:[#allocation10 + $0x324] ss:$16 sps:$4 sm:$0xff]  }
 0x3a3   :  { %v7885_v56 = vpop.eup %7884  ;;  %v6544_v23 = vadd.f32 %v3954_v29, %v8834_v43  ;;  %v4180_v50 = vpop.f32.mrb[90].mxu1  ;;  %v8914_v14 = vpack.c.bf16 %v7883_v26, %v7875_v31  ;;  %7908 = vtanh.f32 %v6543_v20  ;;  %v7643_v29 = vld [vmem:[#allocation10 + $0x32c] ss:$16 sps:$4 sm:$0xff]   ;;  %v7641_v33 = vld [vmem:[#allocation10 + $0x328] ss:$16 sps:$4 sm:$0xff]  }
 0x3a4   :  { %v3956_v32 = vpop.f32.mrb[91].mxu0  ;;  %v7887_v17 = vpop.eup %7886  ;;  %5209 = vmatpush1.bf16.msra.mxu0 %v7626_v6  ;;  %5435 = vmatpush1.bf16.msra.mxu1 %v7629_v47  ;;  %v6576_v13 = vadd.f32 %v4180_v50, %v8837_v21  ;;  %v4276_v7 = vpack.c.bf16 %v7885_v56, %v7877_v61  ;;  %7910 = vtanh.f32 %v6575_v9  ;;  %v7646_v9 = vld [vmem:[#allocation10 + $0x344] ss:$16 sps:$4 sm:$0xff]   ;;  %v7649_v50 = vld [vmem:[#allocation10 + $0x34c] ss:$16 sps:$4 sm:$0xff]  }
 0x3a5   :  { %v4182_v59 = vpop.f32.mrb[91].mxu1  ;;  %v7889_v62 = vpop.eup %7888  ;;  %v6545_v22 = vadd.f32 %v3956_v32, %v8840_v24  ;;  %5210 = vmatprep.subr.bf16.mxu0 %v7634_v4  ;;  %5436 = vmatprep.subr.bf16.mxu1 %v7637_v18  ;;  %v8918_v31 = vpack.c.bf16 %v7887_v17, %v7879_v12  ;;  %7912 = vtanh.f32 %v6544_v23  ;;  %v7638_v18 = vld [vmem:[#allocation10 + $0x320] ss:$16 sps:$4 sm:$0xff]  }
 0x3a6   :  { %v7891_v26 = vpop.eup %7890  ;;  %v6577_v6 = vadd.f32 %v4182_v59, %v8843_v8  ;;  %5153 = vmatprep.mubr.bf16.mxu0 %v4276_v7  ;;  %5379 = vmatprep.mubr.bf16.mxu1 %v4276_v7  ;;  %7914 = vtanh.f32 %v6576_v13  ;;  %v3960_v4 = vpop.f32.mrb[92].mxu0 }
 0x3a7   :  { %v7893_v47 = vpop.eup %7892  ;;  %5154 = vmatmul.mubr.bf16.gmra.mrb[112].mxu0 %v4275_v27  ;;  %5380 = vmatmul.mubr.bf16.gmra.mrb[112].mxu1 %v4275_v27  ;;  %7916 = vtanh.f32 %v6545_v22  ;;  %v6546_v17 = vadd.f32 %v3960_v4, %v8834_v43  ;;  %v4186_v12 = vpop.f32.mrb[92].mxu1 }
 0x3a8   :  { %v7895_v61 = vpop.eup %7894  ;;  %5211 = vmatpush1.bf16.msra.mxu0 %v7632_v52  ;;  %5437 = vmatpush1.bf16.msra.mxu1 %v7635_v25  ;;  %v3962_v56 = vpop.f32.mrb[93].mxu0  ;;  %7918 = vtanh.f32 %v6577_v6  ;;  %v6578_v27 = vadd.f32 %v4186_v12, %v8837_v21 }
 0x3a9   :  { %v7897_v20 = vpop.eup %7896  ;;  %5212 = vmatprep.subr.bf16.mxu0 %v7640_v49  ;;  %5438 = vmatprep.subr.bf16.mxu1 %v7643_v29  ;;  %v6547_v52 = vadd.f32 %v3962_v56, %v8840_v24  ;;  %v4188_v32 = vpop.f32.mrb[93].mxu1  ;;  %7920 = vtanh.f32 %v6546_v17 }
 0x3aa   :  { %v7899_v23 = vpop.eup %7898  ;;  %v3964_v13 = vpop.f32.mrb[94].mxu0  ;;  %v4279_v59 = vpack.c.bf16 %v7897_v20, %v7889_v62  ;;  %v6579_v25 = vadd.f32 %v4188_v32, %v8843_v8  ;;  %7922 = vtanh.f32 %v6578_v27  ;;  %v7647_v62 = vld [vmem:[#allocation10 + $0x348] ss:$16 sps:$4 sm:$0xff]   ;;  %v7655_v32 = vld [vmem:[#allocation10 + $0x36c] ss:$16 sps:$4 sm:$0xff]  }
 0x3ab   :  { %v7901_v7 = vpop.eup %7900  ;;  %v6548_v22 = vadd.f32 %v3964_v13, %v8834_v43  ;;  %v4190_v49 = vpop.f32.mrb[94].mxu1  ;;  %v8926_v4 = vpack.c.bf16 %v7899_v23, %v7891_v26  ;;  %7924 = vtanh.f32 %v6547_v52  ;;  %v7652_v43 = vld [vmem:[#allocation10 + $0x364] ss:$16 sps:$4 sm:$0xff]  }
 0x3ac   :  { %v3966_v29 = vpop.f32.mrb[95].mxu0  ;;  %v7903_v3 = vpop.eup %7902  ;;  %5213 = vmatpush1.bf16.msra.mxu0 %v7638_v18  ;;  %5439 = vmatpush1.bf16.msra.mxu1 %v7641_v33  ;;  %v6580_v6 = vadd.f32 %v4190_v49, %v8837_v21  ;;  %v4280_v56 = vpack.c.bf16 %v7901_v7, %v7893_v47  ;;  %7926 = vtanh.f32 %v6579_v25  ;;  %v7653_v33 = vld [vmem:[#allocation10 + $0x368] ss:$16 sps:$4 sm:$0xff]   ;;  %v7667_v49 = vld [vmem:[#allocation10 + $0x3ac] ss:$16 sps:$4 sm:$0xff]  }
 0x3ad   :  { %v4192_v12 = vpop.f32.mrb[95].mxu1  ;;  %v7905_v20 = vpop.eup %7904  ;;  %v6549_v17 = vadd.f32 %v3966_v29, %v8840_v24  ;;  %5214 = vmatprep.subr.bf16.mxu0 %v7646_v9  ;;  %5440 = vmatprep.subr.bf16.mxu1 %v7649_v50  ;;  %v8930_v26 = vpack.c.bf16 %v7903_v3, %v7895_v61  ;;  %7928 = vtanh.f32 %v6548_v22  ;;  %v7650_v24 = vld [vmem:[#allocation10 + $0x360] ss:$16 sps:$4 sm:$0xff]   ;;  %v7658_v3 = vld [vmem:[#allocation10 + $0x384] ss:$16 sps:$4 sm:$0xff]  }
 0x3ae   :  { %v7907_v23 = vpop.eup %7906  ;;  %v6581_v18 = vadd.f32 %v4192_v12, %v8843_v8  ;;  %5163 = vmatprep.mubr.bf16.mxu0 %v4280_v56  ;;  %5389 = vmatprep.mubr.bf16.mxu1 %v4280_v56  ;;  %7930 = vtanh.f32 %v6580_v6  ;;  %v7661_v61 = vld [vmem:[#allocation10 + $0x38c] ss:$16 sps:$4 sm:$0xff]   ;;  %v7659_v7 = vld [vmem:[#allocation10 + $0x388] ss:$16 sps:$4 sm:$0xff]   ;;  %v7664_v22 = vld [vmem:[#allocation10 + $0x3a4] ss:$16 sps:$4 sm:$0xff]  }
 0x3af   :  { %v7909_v21 = vpop.eup %7908  ;;  %5164 = vmatmul.mubr.bf16.gmra.mrb[116].mxu0 %v4279_v59  ;;  %5390 = vmatmul.mubr.bf16.gmra.mrb[116].mxu1 %v4279_v59  ;;  %7932 = vtanh.f32 %v6549_v17 }
 0x3b0   :  { %v7911_v47 = vpop.eup %7910  ;;  %5215 = vmatpush1.bf16.msra.mxu0 %v7644_v15  ;;  %5441 = vmatpush1.bf16.msra.mxu1 %v7647_v62  ;;  %7934 = vtanh.f32 %v6581_v18  ;;  %v7656_v15 = vld [vmem:[#allocation10 + $0x380] ss:$16 sps:$4 sm:$0xff]  }
 0x3b1   :  { %v7913_v9 = vpop.eup %7912  ;;  %5216 = vmatprep.subr.bf16.mxu0 %v7652_v43  ;;  %5442 = vmatprep.subr.bf16.mxu1 %v7655_v32  ;;  %v7662_v62 = vld [vmem:[#allocation10 + $0x3a0] ss:$16 sps:$4 sm:$0xff]   ;;  %v7670_v43 = vld [vmem:[#allocation10 + $0x3c4] ss:$16 sps:$4 sm:$0xff]   ;;  %v7673_v32 = vld [vmem:[#allocation10 + $0x3cc] ss:$16 sps:$4 sm:$0xff]  }
 0x3b2   :  { %v7915_v50 = vpop.eup %7914  ;;  %v4283_v8 = vpack.c.bf16 %v7913_v9, %v7905_v20  ;;  %v7665_v20 = vld [vmem:[#allocation10 + $0x3a8] ss:$16 sps:$4 sm:$0xff]   ;;  %v7668_v9 = vld [vmem:[#allocation10 + $0x3c0] ss:$16 sps:$4 sm:$0xff]  }
 0x3b3   :  { %v7917_v27 = vpop.eup %7916  ;;  %v8933_v52 = vpack.c.bf16 %v7915_v50, %v7907_v23  ;;  %v7676_v50 = vld [vmem:[#allocation10 + $0x3e4] ss:$16 sps:$4 sm:$0xff]  }
 0x3b4   :  { %v7919_v13 = vpop.eup %7918  ;;  %5217 = vmatpush1.bf16.msra.mxu0 %v7650_v24  ;;  %5443 = vmatpush1.bf16.msra.mxu1 %v7653_v33  ;;  %v4284_v59 = vpack.c.bf16 %v7917_v27, %v7909_v21  ;;  %v7674_v27 = vld [vmem:[#allocation10 + $0x3e0] ss:$16 sps:$4 sm:$0xff]  }
 0x3b5   :  { %v7921_v25 = vpop.eup %7920  ;;  %5218 = vmatprep.subr.bf16.mxu0 %v7658_v3  ;;  %5444 = vmatprep.subr.bf16.mxu1 %v7661_v61  ;;  %v8935_v29 = vpack.c.bf16 %v7919_v13, %v7911_v47  ;;  %v7671_v3 = vld [vmem:[#allocation10 + $0x3c8] ss:$16 sps:$4 sm:$0xff]  }
 0x3b6   :  { %v7923_v6 = vpop.eup %7922  ;;  %5173 = vmatprep.mubr.bf16.mxu0 %v4284_v59  ;;  %5399 = vmatprep.mubr.bf16.mxu1 %v4284_v59  ;;  %v7677_v13 = vld [vmem:[#allocation10 + $0x3e8] ss:$16 sps:$4 sm:$0xff]  }
 0x3b7   :  { %v7925_v12 = vpop.eup %7924  ;;  %5174 = vmatmul.mubr.bf16.gmra.mrb[120].mxu0 %v4283_v8  ;;  %5400 = vmatmul.mubr.bf16.gmra.mrb[120].mxu1 %v4283_v8  ;;  %v7679_v8 = vld [vmem:[#allocation10 + $0x3ec] ss:$16 sps:$4 sm:$0xff]  }
 0x3b8   :  { %v7927_v56 = vpop.eup %7926  ;;  %5219 = vmatpush1.bf16.msra.mxu0 %v7656_v15  ;;  %5445 = vmatpush1.bf16.msra.mxu1 %v7659_v7 }
 0x3b9   :  { %v7929_v17 = vpop.eup %7928  ;;  %5220 = vmatprep.subr.bf16.mxu0 %v7664_v22  ;;  %5446 = vmatprep.subr.bf16.mxu1 %v7667_v49 }
 0x3ba   :  { %v7931_v23 = vpop.eup %7930  ;;  %v4287_v18 = vpack.c.bf16 %v7929_v17, %v7921_v25 }
 0x3bb   :  { %v7933_v21 = vpop.eup %7932  ;;  %v4289_v47 = vpack.c.bf16 %v7931_v23, %v7923_v6 }
 0x3bc   :  { %v7935_v24 = vpop.eup %7934  ;;  %5221 = vmatpush1.bf16.msra.mxu0 %v7662_v62  ;;  %5447 = vmatpush1.bf16.msra.mxu1 %v7665_v20  ;;  %v4288_v33 = vpack.c.bf16 %v7933_v21, %v7925_v12  ;;  %v9503_v62 = vld [vmem:[#allocation20_spill] sm:$0xff] }
 0x3bd   :  { %5222 = vmatprep.subr.bf16.mxu0 %v7670_v43  ;;  %5448 = vmatprep.subr.bf16.mxu1 %v7673_v32  ;;  %v4290_v61 = vpack.c.bf16 %v7935_v24, %v7927_v56  ;;  %v9504_v43 = vld [vmem:[#allocation21_spill] sm:$0xff]  ;;  %v9506_v24 = vld [vmem:[#allocation23_spill] sm:$0xff] }
 0x3be   :  { %5183 = vmatprep.mubr.bf16.mxu0 %v4288_v33  ;;  %5409 = vmatprep.mubr.bf16.mxu1 %v4288_v33 }
 0x3bf   :  { %5184 = vmatmul.mubr.bf16.gmra.mrb[124].mxu0 %v4287_v18  ;;  %5410 = vmatmul.mubr.bf16.gmra.mrb[124].mxu1 %v4287_v18  ;;  %v9505_v18 = vld [vmem:[#allocation22_spill] sm:$0xff] }
 0x3c0   :  { %5223 = vmatpush1.bf16.msra.mxu0 %v7668_v9  ;;  %5226 = vmatprep.mubr.bf16.mxu0 %v8870_v57 }
 0x3c1   :  { %5449 = vmatpush1.bf16.msra.mxu1 %v7671_v3  ;;  %5452 = vmatprep.mubr.bf16.mxu1 %v8870_v57  ;;  %v9507_v3 = vld [vmem:[#allocation24_spill] sm:$0xff] }
 0x3c2   :  { %5224 = vmatprep.subr.bf16.mxu0 %v7676_v50  ;;  %5450 = vmatprep.subr.bf16.mxu1 %v7679_v8  ;;  %v9508_v8 = vld [vmem:[#allocation25_spill] sm:$0xff] }
 0x3c4   :  { %5225 = vmatpush1.bf16.msra.mxu0 %v7674_v27 }
 0x3c5   :  { %5451 = vmatpush1.bf16.msra.mxu1 %v7677_v13 }
 0x3c7   :  { %5227 = vmatmul.mubr.bf16.vlgmr.msra.gmra.mrb[96].mxu0 %v8866_v30 }
 0x3c8   :  { %5453 = vmatmul.mubr.bf16.vlgmr.msra.gmra.mrb[96].mxu1 %v8866_v30  ;;  %5236 = vmatprep.mubr.bf16.mxu0 %v8882_v38 }
 0x3c9   :  { %5462 = vmatprep.mubr.bf16.mxu1 %v8882_v38 }
 0x3cf   :  { %5237 = vmatmul.mubr.bf16.gmra.mrb[100].mxu0 %v8878_v44 }
 0x3d0   :  { %5463 = vmatmul.mubr.bf16.gmra.mrb[100].mxu1 %v8878_v44  ;;  %5246 = vmatprep.mubr.bf16.mxu0 %v8894_v42  ;;  %v1775_v44 = vld [vmem:[%s9448_s5] sm:$0xf] }
 0x3d1   :  { %5472 = vmatprep.mubr.bf16.mxu1 %v8894_v42  ;;  %v8969_v30 = vrot.slane %v1775_v44, %v8551_v36  ;;  %v8972_v57 = vrot.slane %v1775_v44, %v8553_v37  ;;  %v8975_v38 = vrot.slane %v1775_v44, %v8558_v39 }
 0x3d3   :  { %v6454_v42 = vadd.f32 %v8702_v45, %v8969_v30  ;;  %v6457_v45 = vadd.f32 %v8714_v53, %v8975_v38  ;;  %v6460_v53 = vadd.f32 %v8726_v0, %v8969_v30  ;;  %v6462_v0 = vadd.f32 %v8734_v11, %v8969_v30  ;;  %v9500_v11 = vld [vmem:[#allocation17_spill] sm:$0xff] }
 0x3d4   :  { %v6464_v22 = vadd.f32 %v9500_v11, %v8969_v30  ;;  %v6466_v32 = vadd.f32 %v9504_v43, %v8969_v30  ;;  %v6498_v21 = vadd.f32 %v9505_v18, %v8972_v57  ;;  %v6467_v33 = vadd.f32 %v9506_v24, %v8975_v38  ;;  %v9519_v43 = vld [vmem:[#allocation36_spill] sm:$0xff] }
 0x3d5   :  { %7936 = vtanh.f32 %v6454_v42  ;;  %v6468_v27 = vadd.f32 %v9508_v8, %v8969_v30 }
 0x3d7   :  { %5247 = vmatmul.mubr.bf16.gmra.mrb[104].mxu0 %v8890_v10 }
 0x3d8   :  { %5473 = vmatmul.mubr.bf16.gmra.mrb[104].mxu1 %v8890_v10  ;;  %5256 = vmatprep.mubr.bf16.mxu0 %v8906_v35  ;;  %v8978_v10 = vrot.slane %v1775_v44, %v8560_v40  ;;  %v9509_v44 = vld [vmem:[#allocation26_spill] sm:$0xff] }
 0x3d9   :  { %5482 = vmatprep.mubr.bf16.mxu1 %v8906_v35  ;;  %v6455_v35 = vadd.f32 %v8706_v54, %v8975_v38  ;;  %v6458_v54 = vadd.f32 %v8718_v58, %v8969_v30  ;;  %v6500_v42 = vadd.f32 %v9509_v44, %v8972_v57 }
 0x3da   :  { %v6497_v20 = vadd.f32 %v9503_v62, %v8978_v10 }
 0x3df   :  { %5257 = vmatmul.mubr.bf16.gmra.mrb[108].mxu0 %v8902_v34  ;;  %v9008_v58 = vpop.eup %7936 }
 0x3e0   :  { %5483 = vmatmul.mubr.bf16.gmra.mrb[108].mxu1 %v8902_v34  ;;  %5266 = vmatprep.mubr.bf16.mxu0 %v8918_v31  ;;  %v6486_v34 = vadd.f32 %v8704_v60, %v8972_v57  ;;  %v6489_v60 = vadd.f32 %v8716_v55, %v8978_v10  ;;  %v6492_v55 = vadd.f32 %v8728_v1, %v8972_v57 }
 0x3e1   :  { %5492 = vmatprep.mubr.bf16.mxu1 %v8918_v31  ;;  %v6456_v31 = vadd.f32 %v8710_v48, %v8969_v30  ;;  %v6459_v48 = vadd.f32 %v8722_v16, %v8975_v38  ;;  %v6493_v16 = vadd.f32 %v8732_v5, %v8978_v10  ;;  %v6494_v1 = vadd.f32 %v8736_v41, %v8972_v57  ;;  %v9499_v5 = vld [vmem:[#allocation16_spill] sm:$0xff]  ;;  %v9501_v41 = vld [vmem:[#allocation18_spill] sm:$0xff] }
 0x3e2   :  { %7938 = vtanh.f32 %v6486_v34  ;;  %v6495_v7 = vadd.f32 %v9499_v5, %v8978_v10 }
 0x3e3   :  { %7940 = vtanh.f32 %v6455_v35  ;;  %v9510_v35 = vld [vmem:[#allocation27_spill] sm:$0xff] }
 0x3e7   :  { %5267 = vmatmul.mubr.bf16.gmra.mrb[112].mxu0 %v8914_v14 }
 0x3e8   :  { %5493 = vmatmul.mubr.bf16.gmra.mrb[112].mxu1 %v8914_v14  ;;  %5276 = vmatprep.mubr.bf16.mxu0 %v8930_v26  ;;  %v6487_v14 = vadd.f32 %v8708_v46, %v8978_v10  ;;  %v6490_v46 = vadd.f32 %v8720_v19, %v8972_v57  ;;  %v6461_v19 = vadd.f32 %v8730_v2, %v8975_v38 }
 0x3e9   :  { %5502 = vmatprep.mubr.bf16.mxu1 %v8930_v26  ;;  %v6463_v2 = vadd.f32 %v8738_v28, %v8975_v38  ;;  %v9502_v28 = vld [vmem:[#allocation19_spill] sm:$0xff] }
 0x3ea   :  { %7942 = vtanh.f32 %v6487_v14  ;;  %v6465_v12 = vadd.f32 %v9502_v28, %v8975_v38  ;;  %v6469_v14 = vadd.f32 %v9510_v35, %v8975_v38  ;;  %v9523_v35 = vld [vmem:[#allocation40_spill] sm:$0xff] }
 0x3eb   :  { %7944 = vtanh.f32 %v6456_v31 }
 0x3ec   :  { %v9012_v26 = vpop.eup %7938 }
 0x3ef   :  { %5277 = vmatmul.mubr.bf16.gmra.mrb[116].mxu0 %v8926_v4 }
 0x3f0   :  { %5503 = vmatmul.mubr.bf16.gmra.mrb[116].mxu1 %v8926_v4  ;;  %5286 = vmatprep.mubr.bf16.mxu0 %v8935_v29  ;;  %v6488_v4 = vadd.f32 %v8712_v51, %v8972_v57  ;;  %v6491_v51 = vadd.f32 %v8724_v63, %v8978_v10  ;;  %v9016_v63 = vpop.eup %7940 }
 0x3f1   :  { %5512 = vmatprep.mubr.bf16.mxu1 %v8935_v29  ;;  %v6496_v29 = vadd.f32 %v9501_v41, %v8972_v57  ;;  %v9517_v41 = vld [vmem:[#allocation34_spill] sm:$0xff] }
 0x3f2   :  { %7946 = vtanh.f32 %v6488_v4  ;;  %v9511_v4 = vld [vmem:[#allocation28_spill] sm:$0xff] }
 0x3f3   :  { %7948 = vtanh.f32 %v6457_v45  ;;  %v6501_v45 = vadd.f32 %v9511_v4, %v8978_v10 }
 0x3f4   :  { %7950 = vtanh.f32 %v6489_v60 }
 0x3f5   :  { %7952 = vtanh.f32 %v6458_v54  ;;  %v9512_v54 = vld [vmem:[#allocation29_spill] sm:$0xff] }
 0x3f6   :  { %7954 = vtanh.f32 %v6490_v46  ;;  %v6470_v46 = vadd.f32 %v9512_v54, %v8969_v30 }
 0x3f7   :  { %5287 = vmatmul.mubr.bf16.gmra.mrb[120].mxu0 %v8933_v52  ;;  %7956 = vtanh.f32 %v6459_v48 }
 0x3f8   :  { %5513 = vmatmul.mubr.bf16.gmra.mrb[120].mxu1 %v8933_v52  ;;  %5296 = vmatprep.mubr.bf16.mxu0 %v4290_v61  ;;  %7958 = vtanh.f32 %v6491_v51  ;;  %v9020_v52 = vpop.eup %7942  ;;  %v9513_v51 = vld [vmem:[#allocation30_spill] sm:$0xff] }
 0x3f9   :  { %5522 = vmatprep.mubr.bf16.mxu1 %v4290_v61  ;;  %7960 = vtanh.f32 %v6460_v53  ;;  %v9024_v59 = vpop.eup %7944  ;;  %v6499_v61 = vadd.f32 %v9507_v3, %v8978_v10  ;;  %v6502_v53 = vadd.f32 %v9513_v51, %v8972_v57  ;;  %v9521_v3 = vld [vmem:[#allocation38_spill] sm:$0xff] }
 0x3fa   :  { %7962 = vtanh.f32 %v6492_v55  ;;  %v9525_v51 = vld [vmem:[#allocation42_spill] sm:$0xff] }
 0x3fb   :  { %7964 = vtanh.f32 %v6461_v19  ;;  %v9514_v19 = vld [vmem:[#allocation31_spill] sm:$0xff] }
 0x3fc   :  { %v9028_v15 = vpop.eup %7946  ;;  %7966 = vtanh.f32 %v6493_v16  ;;  %v6471_v16 = vadd.f32 %v9514_v19, %v8975_v38 }
 0x3fd   :  { %v9032_v25 = vpop.eup %7948  ;;  %7968 = vtanh.f32 %v6462_v0 }
 0x3fe   :  { %v9036_v49 = vpop.eup %7950  ;;  %7970 = vtanh.f32 %v6494_v1  ;;  %v9515_v1 = vld [vmem:[#allocation32_spill] sm:$0xff] }
 0x3ff   :  { %5297 = vmatmul.mubr.bf16.gmra.mrb[124].mxu0 %v4289_v47  ;;  %v9040_v6 = vpop.eup %7952  ;;  %7972 = vtanh.f32 %v6463_v2  ;;  %v6503_v2 = vadd.f32 %v9515_v1, %v8978_v10 }
 0x400   :  { %5523 = vmatmul.mubr.bf16.gmra.mrb[124].mxu1 %v4289_v47  ;;  %v9044_v56 = vpop.eup %7954  ;;  %7974 = vtanh.f32 %v6495_v7  ;;  %v9516_v7 = vld [vmem:[#allocation33_spill] sm:$0xff] }
 0x401   :  { %v9048_v17 = vpop.eup %7956  ;;  %7976 = vtanh.f32 %v6464_v22  ;;  %v6472_v11 = vadd.f32 %v9516_v7, %v8969_v30  ;;  %v9527_v7 = vld [vmem:[#allocation44_spill] sm:$0xff] }
 0x402   :  { %v9052_v23 = vpop.eup %7958  ;;  %7978 = vtanh.f32 %v6496_v29  ;;  %v6504_v29 = vadd.f32 %v9517_v41, %v8972_v57 }
 0x403   :  { %v9056_v47 = vpop.eup %7960  ;;  %7980 = vtanh.f32 %v6465_v12  ;;  %v9518_v12 = vld [vmem:[#allocation35_spill] sm:$0xff] }
 0x404   :  { %v9060_v9 = vpop.eup %7962  ;;  %7982 = vtanh.f32 %v6497_v20  ;;  %v6473_v62 = vadd.f32 %v9518_v12, %v8975_v38 }
 0x405   :  { %v9064_v50 = vpop.eup %7964  ;;  %7984 = vtanh.f32 %v6466_v32  ;;  %v6505_v32 = vadd.f32 %v9519_v43, %v8978_v10  ;;  %v9529_v43 = vld [vmem:[#allocation46_spill] sm:$0xff] }
 0x406   :  { %v9068_v13 = vpop.eup %7966  ;;  %7986 = vtanh.f32 %v6498_v21  ;;  %v9520_v21 = vld [vmem:[#allocation37_spill] sm:$0xff] }
 0x407   :  { %v9072_v34 = vpop.eup %7968  ;;  %7988 = vtanh.f32 %v6467_v33  ;;  %v6474_v24 = vadd.f32 %v9520_v21, %v8969_v30 }
 0x408   :  { %v9076_v31 = vpop.eup %7970  ;;  %7990 = vtanh.f32 %v6499_v61  ;;  %v6506_v61 = vadd.f32 %v9521_v3, %v8972_v57 }
 0x409   :  { %v9080_v60 = vpop.eup %7972  ;;  %7992 = vtanh.f32 %v6468_v27  ;;  %v9522_v27 = vld [vmem:[#allocation39_spill] sm:$0xff] }
 0x40a   :  { %v9084_v48 = vpop.eup %7974  ;;  %7994 = vtanh.f32 %v6500_v42  ;;  %v6475_v44 = vadd.f32 %v9522_v27, %v8975_v38  ;;  %v9531_v27 = vld [vmem:[#allocation48_spill] sm:$0xff] }
 0x40b   :  { %v9088_v55 = vpop.eup %7976  ;;  %7996 = vtanh.f32 %v6469_v14  ;;  %v6507_v14 = vadd.f32 %v9523_v35, %v8978_v10 }
 0x40c   :  { %v9092_v0 = vpop.eup %7978  ;;  %7998 = vtanh.f32 %v6501_v45  ;;  %v9524_v45 = vld [vmem:[#allocation41_spill] sm:$0xff] }
 0x40d   :  { %v9096_v5 = vpop.eup %7980  ;;  %8000 = vtanh.f32 %v6470_v46  ;;  %v6476_v54 = vadd.f32 %v9524_v45, %v8969_v30 }
 0x40e   :  { %v9100_v22 = vpop.eup %7982  ;;  %8002 = vtanh.f32 %v6502_v53  ;;  %v6508_v53 = vadd.f32 %v9525_v51, %v8972_v57  ;;  %v9533_v51 = vld [vmem:[#allocation50_spill] sm:$0xff] }
 0x40f   :  { %v9104_v28 = vpop.eup %7984  ;;  %8004 = vtanh.f32 %v6471_v16  ;;  %v9526_v16 = vld [vmem:[#allocation43_spill] sm:$0xff] }
 0x410   :  { %v9108_v20 = vpop.eup %7986  ;;  %8006 = vtanh.f32 %v6503_v2  ;;  %v6477_v1 = vadd.f32 %v9526_v16, %v8975_v38 }
 0x411   :  { %v9112_v18 = vpop.eup %7988  ;;  %8008 = vtanh.f32 %v6472_v11  ;;  %v6509_v11 = vadd.f32 %v9527_v7, %v8978_v10 }
 0x412   :  { %v9116_v33 = vpop.eup %7990  ;;  %8010 = vtanh.f32 %v6504_v29  ;;  %v9528_v29 = vld [vmem:[#allocation45_spill] sm:$0xff] }
 0x413   :  { %v9120_v8 = vpop.eup %7992  ;;  %8012 = vtanh.f32 %v6473_v62  ;;  %v6478_v12 = vadd.f32 %v9528_v29, %v8969_v30  ;;  %v9537_v29 = vld [vmem:[#allocation52_spill] sm:$0xff] }
 0x414   :  { %v9124_v42 = vpop.eup %7994  ;;  %8014 = vtanh.f32 %v6505_v32  ;;  %v6510_v32 = vadd.f32 %v9529_v43, %v8972_v57 }
 0x415   :  { %v9128_v4 = vpop.eup %7996  ;;  %8016 = vtanh.f32 %v6474_v24  ;;  %v9530_v24 = vld [vmem:[#allocation47_spill] sm:$0xff] }
 0x416   :  { %v9132_v46 = vpop.eup %7998  ;;  %8018 = vtanh.f32 %v6506_v61  ;;  %v6479_v3 = vadd.f32 %v9530_v24, %v8975_v38 }
 0x417   :  { %v9136_v19 = vpop.eup %8000  ;;  %8020 = vtanh.f32 %v6475_v44  ;;  %v6511_v44 = vadd.f32 %v9531_v27, %v8978_v10 }
 0x418   :  { %v9140_v2 = vpop.eup %8002  ;;  %8022 = vtanh.f32 %v6507_v14  ;;  %v9532_v14 = vld [vmem:[#allocation49_spill] sm:$0xff] }
 0x419   :  { %v9144_v41 = vpop.eup %8004  ;;  %8024 = vtanh.f32 %v6476_v54  ;;  %v6480_v45 = vadd.f32 %v9532_v14, %v8969_v30 }
 0x41a   :  { %v9148_v62 = vpop.eup %8006  ;;  %8026 = vtanh.f32 %v6508_v53  ;;  %v6512_v53 = vadd.f32 %v9533_v51, %v8972_v57 }
 0x41b   :  { %v9152_v21 = vpop.eup %8008  ;;  %8028 = vtanh.f32 %v6477_v1  ;;  %v9535_v1 = vld [vmem:[#allocation51_spill] sm:$0xff] }
 0x41c   :  { %v9156_v61 = vpop.eup %8010  ;;  %8030 = vtanh.f32 %v6509_v11  ;;  %v6481_v7 = vadd.f32 %v9535_v1, %v8975_v38 }
 0x41d   :  { %v9160_v35 = vpop.eup %8012  ;;  %8032 = vtanh.f32 %v6478_v12  ;;  %v6513_v12 = vadd.f32 %v9537_v29, %v8978_v10 }
 0x41e   :  { %v9164_v54 = vpop.eup %8014  ;;  %8034 = vtanh.f32 %v6510_v32  ;;  %v9539_v32 = vld [vmem:[#allocation53_spill] sm:$0xff] }
 0x41f   :  { %v9168_v16 = vpop.eup %8016  ;;  %8036 = vtanh.f32 %v6479_v3  ;;  %v6482_v24 = vadd.f32 %v9539_v32, %v8969_v30  ;;  %v9541_v3 = vld [vmem:[#allocation54_spill] sm:$0xff]  ;;  %v4419_v32 = vld [vmem:[%s9452_s9] sm:$0xf] }
 0x420   :  { %9534 = vst [vmem:[#allocation16_spill] sm:$0xff] %v9168_v16  ;;  %v9172_v11 = vpop.eup %8018  ;;  %8038 = vtanh.f32 %v6511_v44  ;;  %v6514_v14 = vadd.f32 %v9541_v3, %v8972_v57  ;;  %v9543_v44 = vld [vmem:[#allocation55_spill] sm:$0xff]  ;;  %v9547_v3 = vld [vmem:[#allocation57_spill] sm:$0xff] }
 0x421   :  { %9536 = vst [vmem:[#allocation17_spill] sm:$0xff] %v9172_v11  ;;  %v9176_v43 = vpop.eup %8020  ;;  %8040 = vtanh.f32 %v6480_v45  ;;  %v6483_v1 = vadd.f32 %v9543_v44, %v8975_v38  ;;  %v9545_v45 = vld [vmem:[#allocation56_spill] sm:$0xff]  ;;  %v9549_v44 = vld [vmem:[#allocation58_spill] sm:$0xff] }
 0x422   :  { %9538 = vst [vmem:[#allocation18_spill] sm:$0xff] %v9176_v43  ;;  %v9180_v27 = vpop.eup %8022  ;;  %8042 = vtanh.f32 %v6512_v53  ;;  %v6515_v29 = vadd.f32 %v9545_v45, %v8978_v10  ;;  %v9551_v45 = vld [vmem:[#allocation59_spill] sm:$0xff]  ;;  %v9208_v43 = vrot.slane %v4419_v32, %v8551_v36 }
 0x423   :  { %9540 = vst [vmem:[#allocation19_spill] sm:$0xff] %v9180_v27  ;;  %v9184_v51 = vpop.eup %8024  ;;  %8044 = vtanh.f32 %v6481_v7  ;;  %v6485_v27 = vadd.f32 %v9551_v45, %v8975_v38  ;;  %v9223_v38 = vrot.slane %v4419_v32, %v8560_v40 }
 0x424   :  { %9542 = vst [vmem:[#allocation20_spill] sm:$0xff] %v9184_v51  ;;  %v9188_v11 = vpop.eup %8026  ;;  %8046 = vtanh.f32 %v6513_v12  ;;  %v6484_v51 = vadd.f32 %v9547_v3, %v8969_v30  ;;  %v9553_v30 = vld [vmem:[#allocation60_spill] sm:$0xff] }
 0x425   :  { %9544 = vst [vmem:[#allocation21_spill] sm:$0xff] %v9188_v11  ;;  %v9195_v53 = vpop.eup %8028  ;;  %8048 = vtanh.f32 %v6482_v24  ;;  %v6516_v11 = vadd.f32 %v9549_v44, %v8972_v57  ;;  %v6517_v24 = vadd.f32 %v9553_v30, %v8978_v10  ;;  %v9218_v57 = vrot.slane %v4419_v32, %v8558_v39 }
 0x426   :  { %9546 = vst [vmem:[#allocation22_spill] sm:$0xff] %v9195_v53  ;;  %v9199_v7 = vpop.eup %8030  ;;  %8050 = vtanh.f32 %v6514_v14  ;;  %v9215_v14 = vrot.slane %v4419_v32, %v8553_v37 }
 0x427   :  { %9548 = vst [vmem:[#allocation23_spill] sm:$0xff] %v9199_v7  ;;  %v9203_v12 = vpop.eup %8032  ;;  %8052 = vtanh.f32 %v6483_v1 }
 0x428   :  { %9550 = vst [vmem:[#allocation24_spill] sm:$0xff] %v9203_v12  ;;  %v9210_v53 = vpop.eup %8034  ;;  %8054 = vtanh.f32 %v6515_v29 }
 0x429   :  { %9552 = vst [vmem:[#allocation25_spill] sm:$0xff] %v9210_v53  ;;  %v9220_v3 = vpop.eup %8036  ;;  %8056 = vtanh.f32 %v6484_v51 }
 0x42a   :  { %9554 = vst [vmem:[#allocation26_spill] sm:$0xff] %v9220_v3  ;;  %v9225_v36 = vpop.eup %8038  ;;  %8058 = vtanh.f32 %v6516_v11 }
 0x42b   :  { %9555 = vst [vmem:[#allocation27_spill] sm:$0xff] %v9225_v36  ;;  %v9227_v29 = vpop.eup %8040  ;;  %8060 = vtanh.f32 %v6485_v27 }
 0x42c   :  { %9556 = vst [vmem:[#allocation28_spill] sm:$0xff] %v9227_v29  ;;  %v9230_v45 = vpop.eup %8042  ;;  %8062 = vtanh.f32 %v6517_v24 }
 0x42d   :  { %9557 = vst [vmem:[#allocation29_spill] sm:$0xff] %v9230_v45  ;;  %v9234_v30 = vpop.eup %8044 }
 0x42e   :  { %9558 = vst [vmem:[#allocation30_spill] sm:$0xff] %v9234_v30  ;;  %v9238_v36 = vpop.eup %8046 }
 0x42f   :  { %9559 = vst [vmem:[#allocation31_spill] sm:$0xff] %v9238_v36 }
 0x49a   :  { %v5228_v1 = vpop.f32.mrb[96].mxu0 }
 0x49b   :  { %v6582_v10 = vadd.f32 %v5228_v1, %v9208_v43  ;;  %v5454_v37 = vpop.f32.mrb[96].mxu1  ;;  %v5230_v44 = vpop.f32.mrb[97].mxu0 }
 0x49c   :  { %v6614_v39 = vadd.f32 %v5454_v37, %v9215_v14  ;;  %v6583_v51 = vadd.f32 %v5230_v44, %v9218_v57  ;;  %v5456_v40 = vpop.f32.mrb[97].mxu1  ;;  %v5232_v32 = vpop.f32.mrb[98].mxu0 }
 0x49d   :  { %8064 = vtanh.f32 %v6582_v10  ;;  %v6615_v11 = vadd.f32 %v5456_v40, %v9223_v38  ;;  %v6584_v27 = vadd.f32 %v5232_v32, %v9208_v43  ;;  %v5458_v29 = vpop.f32.mrb[98].mxu1  ;;  %v5234_v1 = vpop.f32.mrb[99].mxu0 }
 0x49e   :  { %8066 = vtanh.f32 %v6614_v39  ;;  %v6616_v24 = vadd.f32 %v5458_v29, %v9215_v14  ;;  %v5460_v45 = vpop.f32.mrb[99].mxu1  ;;  %v9241_v37 = vpop.eup %8048  ;;  %v6585_v44 = vadd.f32 %v5234_v1, %v9218_v57 }
 0x49f   :  { %9560 = vst [vmem:[#allocation32_spill] sm:$0xff] %v9241_v37  ;;  %8068 = vtanh.f32 %v6583_v51  ;;  %v9244_v3 = vpop.eup %8050  ;;  %v6617_v10 = vadd.f32 %v5460_v45, %v9223_v38 }
 0x4a0   :  { %9561 = vst [vmem:[#allocation33_spill] sm:$0xff] %v9244_v3  ;;  %8070 = vtanh.f32 %v6615_v11  ;;  %v9247_v40 = vpop.eup %8052 }
 0x4a1   :  { %9562 = vst [vmem:[#allocation34_spill] sm:$0xff] %v9247_v40  ;;  %8072 = vtanh.f32 %v6584_v27  ;;  %v9249_v32 = vpop.eup %8054 }
 0x4a2   :  { %9563 = vst [vmem:[#allocation35_spill] sm:$0xff] %v9249_v32  ;;  %8074 = vtanh.f32 %v6616_v24  ;;  %v5238_v39 = vpop.f32.mrb[100].mxu0  ;;  %v9251_v36 = vpop.eup %8056 }
 0x4a3   :  { %9564 = vst [vmem:[#allocation36_spill] sm:$0xff] %v9251_v36  ;;  %8076 = vtanh.f32 %v6585_v44  ;;  %v6586_v29 = vadd.f32 %v5238_v39, %v9208_v43  ;;  %v5464_v51 = vpop.f32.mrb[100].mxu1  ;;  %v5240_v37 = vpop.f32.mrb[101].mxu0 }
 0x4a4   :  { %v9254_v1 = vpop.eup %8058  ;;  %8078 = vtanh.f32 %v6617_v10  ;;  %v6618_v11 = vadd.f32 %v5464_v51, %v9215_v14  ;;  %v6587_v45 = vadd.f32 %v5240_v37, %v9218_v57  ;;  %v5466_v40 = vpop.f32.mrb[101].mxu1 }
 0x4a5   :  { %9565 = vst [vmem:[#allocation37_spill] sm:$0xff] %v9254_v1  ;;  %v5242_v27 = vpop.f32.mrb[102].mxu0  ;;  %v9258_v3 = vpop.eup %8060  ;;  %8080 = vtanh.f32 %v6586_v29  ;;  %v6619_v24 = vadd.f32 %v5466_v40, %v9223_v38 }
 0x4a6   :  { %9566 = vst [vmem:[#allocation38_spill] sm:$0xff] %v9258_v3  ;;  %v6588_v44 = vadd.f32 %v5242_v27, %v9208_v43  ;;  %v5468_v36 = vpop.f32.mrb[102].mxu1  ;;  %v5244_v39 = vpop.f32.mrb[103].mxu0  ;;  %8082 = vtanh.f32 %v6618_v11 }
 0x4a7   :  { %v9262_v32 = vpop.eup %8062  ;;  %v6620_v10 = vadd.f32 %v5468_v36, %v9215_v14  ;;  %v5470_v1 = vpop.f32.mrb[103].mxu1  ;;  %8084 = vtanh.f32 %v6587_v45  ;;  %v6589_v37 = vadd.f32 %v5244_v39, %v9218_v57 }
 0x4a8   :  { %9567 = vst [vmem:[#allocation39_spill] sm:$0xff] %v9262_v32  ;;  %v8065_v51 = vpop.eup %8064  ;;  %8086 = vtanh.f32 %v6619_v24  ;;  %v6621_v29 = vadd.f32 %v5470_v1, %v9223_v38 }
 0x4a9   :  { %v8067_v30 = vpop.eup %8066  ;;  %v5597_v40 = vmul.f32 %v8065_v51, %v9008_v58  ;;  %8088 = vtanh.f32 %v6588_v44 }
 0x4aa   :  { %v8069_v3 = vpop.eup %8068  ;;  %v5599_v27 = vmul.f32 %v8067_v30, %v9012_v26  ;;  %8090 = vtanh.f32 %v6620_v10  ;;  %v5248_v11 = vpop.f32.mrb[104].mxu0 }
 0x4ab   :  { %v8071_v53 = vpop.eup %8070  ;;  %v5598_v36 = vmul.f32 %v8069_v3, %v9016_v63  ;;  %8092 = vtanh.f32 %v6589_v37  ;;  %v6590_v45 = vadd.f32 %v5248_v11, %v9208_v43  ;;  %v5474_v39 = vpop.f32.mrb[104].mxu1 }
 0x4ac   :  { %v8073_v32 = vpop.eup %8072  ;;  %v5250_v12 = vpop.f32.mrb[105].mxu0  ;;  %v5600_v24 = vmul.f32 %v8071_v53, %v9020_v52  ;;  %8094 = vtanh.f32 %v6621_v29  ;;  %v6622_v58 = vadd.f32 %v5474_v39, %v9215_v14 }
 0x4ad   :  { %v8075_v1 = vpop.eup %8074  ;;  %v6591_v44 = vadd.f32 %v5250_v12, %v9218_v57  ;;  %v5476_v26 = vpop.f32.mrb[105].mxu1  ;;  %v5661_v10 = vadd.f32 %v5598_v36, %v5597_v40  ;;  %8096 = vtanh.f32 %v6590_v45  ;;  %v5601_v7 = vmul.f32 %v8073_v32, %v9024_v59 }
 0x4ae   :  { %v5252_v30 = vpop.f32.mrb[106].mxu0  ;;  %v8077_v51 = vpop.eup %8076  ;;  %v6623_v63 = vadd.f32 %v5476_v26, %v9223_v38  ;;  %8098 = vtanh.f32 %v6622_v58  ;;  %v5603_v45 = vmul.f32 %v8075_v1, %v9028_v15 }
 0x4af   :  { %v6592_v3 = vadd.f32 %v5252_v30, %v9208_v43  ;;  %v5478_v37 = vpop.f32.mrb[106].mxu1  ;;  %v5254_v11 = vpop.f32.mrb[107].mxu0  ;;  %v5662_v39 = vadd.f32 %v5661_v10, %v5599_v27  ;;  %8100 = vtanh.f32 %v6591_v44  ;;  %v5602_v36 = vmul.f32 %v8077_v51, %v9032_v25 }
 0x4b0   :  { %v8079_v52 = vpop.eup %8078  ;;  %v6624_v53 = vadd.f32 %v5478_v37, %v9215_v14  ;;  %v6593_v29 = vadd.f32 %v5254_v11, %v9218_v57  ;;  %v5480_v12 = vpop.f32.mrb[107].mxu1  ;;  %8102 = vtanh.f32 %v6623_v63 }
 0x4b1   :  { %v8081_v16 = vpop.eup %8080  ;;  %v6625_v40 = vadd.f32 %v5480_v12, %v9223_v38  ;;  %v5663_v30 = vadd.f32 %v5662_v39, %v5600_v24  ;;  %v5604_v59 = vmul.f32 %v8079_v52, %v9036_v49  ;;  %8104 = vtanh.f32 %v6592_v3 }
 0x4b2   :  { %v8083_v26 = vpop.eup %8082  ;;  %v5605_v32 = vmul.f32 %v8081_v16, %v9040_v6  ;;  %v5666_v37 = vadd.f32 %v5602_v36, %v5601_v7  ;;  %8106 = vtanh.f32 %v6624_v53  ;;  %v5258_v44 = vpop.f32.mrb[108].mxu0 }
 0x4b3   :  { %v8085_v58 = vpop.eup %8084  ;;  %v5607_v27 = vmul.f32 %v8083_v26, %v9044_v56  ;;  %5664 = vadd.xlane.f32.xlu0 %v5663_v30  ;;  %8108 = vtanh.f32 %v6593_v29  ;;  %v6594_v15 = vadd.f32 %v5258_v44, %v9208_v43  ;;  %v5484_v24 = vpop.f32.mrb[108].mxu1 }
 0x4b4   :  { %v8087_v10 = vpop.eup %8086  ;;  %v5606_v25 = vmul.f32 %v8085_v58, %v9048_v17  ;;  %v5260_v1 = vpop.f32.mrb[109].mxu0  ;;  %v5667_v49 = vadd.f32 %v5666_v37, %v5603_v45  ;;  %8110 = vtanh.f32 %v6625_v40  ;;  %v6626_v7 = vadd.f32 %v5484_v24, %v9215_v14 }
 0x4b5   :  { %v8089_v51 = vpop.eup %8088  ;;  %v5608_v6 = vmul.f32 %v8087_v10, %v9052_v23  ;;  %v6595_v56 = vadd.f32 %v5260_v1, %v9218_v57  ;;  %v5486_v63 = vpop.f32.mrb[109].mxu1  ;;  %8112 = vtanh.f32 %v6594_v15 }
 0x4b6   :  { %v8091_v16 = vpop.eup %8090  ;;  %v5262_v3 = vpop.f32.mrb[110].mxu0  ;;  %v5671_v11 = vadd.f32 %v5606_v25, %v5605_v32  ;;  %v6627_v17 = vadd.f32 %v5486_v63, %v9223_v38  ;;  %v5668_v39 = vadd.f32 %v5667_v49, %v5604_v59  ;;  %8114 = vtanh.f32 %v6626_v7 }
 0x4b7   :  { %v8093_v52 = vpop.eup %8092  ;;  %v6596_v53 = vadd.f32 %v5262_v3, %v9208_v43  ;;  %v5488_v29 = vpop.f32.mrb[110].mxu1  ;;  %8116 = vtanh.f32 %v6595_v56  ;;  %v5609_v58 = vmul.f32 %v8089_v51, %v9056_v47  ;;  %v5611_v44 = vmul.f32 %v8091_v16, %v9060_v9 }
 0x4b8   :  { %v5264_v12 = vpop.f32.mrb[111].mxu0  ;;  %v8095_v36 = vpop.eup %8094  ;;  %v6628_v23 = vadd.f32 %v5488_v29, %v9215_v14  ;;  %v5672_v26 = vadd.f32 %v5671_v11, %v5607_v27  ;;  %5669 = vadd.xlane.f32.xlu0 %v5668_v39  ;;  %v5610_v37 = vmul.f32 %v8093_v52, %v9064_v50  ;;  %8118 = vtanh.f32 %v6627_v17 }
 0x4b9   :  { %v6597_v40 = vadd.f32 %v5264_v12, %v9218_v57  ;;  %v5490_v45 = vpop.f32.mrb[111].mxu1  ;;  %v8097_v30 = vpop.eup %8096  ;;  %v5612_v25 = vmul.f32 %v8095_v36, %v9068_v13  ;;  %8120 = vtanh.f32 %v6596_v53 }
 0x4ba   :  { %v6629_v32 = vadd.f32 %v5490_v45, %v9223_v38  ;;  %v8099_v10 = vpop.eup %8098  ;;  %v5673_v59 = vadd.f32 %v5672_v26, %v5608_v6  ;;  %v5676_v24 = vadd.f32 %v5610_v37, %v5609_v58  ;;  %v5613_v27 = vmul.f32 %v8097_v30, %v9072_v34  ;;  %v5268_v47 = vpop.f32.mrb[112].mxu0 }
 0x4bb   :  { %v8101_v15 = vpop.eup %8100  ;;  %v5615_v1 = vmul.f32 %v8099_v10, %v9076_v31  ;;  %8122 = vtanh.f32 %v6628_v23  ;;  %v6598_v6 = vadd.f32 %v5268_v47, %v9208_v43  ;;  %v5494_v9 = vpop.f32.mrb[112].mxu1 }
 0x4bc   :  { %v8103_v49 = vpop.eup %8102  ;;  %5674 = vadd.xlane.f32.xlu1 %v5673_v59  ;;  %v5614_v50 = vmul.f32 %v8101_v15, %v9080_v60  ;;  %8124 = vtanh.f32 %v6597_v40  ;;  %v5270_v16 = vpop.f32.mrb[113].mxu0  ;;  %v5677_v13 = vadd.f32 %v5676_v24, %v5611_v44  ;;  %v6630_v34 = vadd.f32 %v5494_v9, %v9215_v14 }
 0x4bd   :  { %v8105_v51 = vpop.eup %8104  ;;  %v5616_v7 = vmul.f32 %v8103_v49, %v9084_v48  ;;  %8126 = vtanh.f32 %v6629_v32  ;;  %v6599_v31 = vadd.f32 %v5270_v16, %v9218_v57  ;;  %v5496_v63 = vpop.f32.mrb[113].mxu1 }
 0x4be   :  { %v8107_v56 = vpop.eup %8106  ;;  %v5272_v3 = vpop.f32.mrb[114].mxu0  ;;  %v5681_v11 = vadd.f32 %v5614_v50, %v5613_v27  ;;  %8128 = vtanh.f32 %v6598_v6  ;;  %v6631_v60 = vadd.f32 %v5496_v63, %v9223_v38  ;;  %v5678_v12 = vadd.f32 %v5677_v13, %v5612_v25 }
 0x4bf   :  { %v8109_v52 = vpop.eup %8108  ;;  %v6600_v17 = vadd.f32 %v5272_v3, %v9208_v43  ;;  %v5498_v53 = vpop.f32.mrb[114].mxu1  ;;  %8130 = vtanh.f32 %v6630_v34  ;;  %v5617_v30 = vmul.f32 %v8105_v51, %v9088_v55  ;;  %v5619_v10 = vmul.f32 %v8107_v56, %v9092_v0 }
 0x4c0   :  { %v5274_v29 = vpop.f32.mrb[115].mxu0  ;;  %v8111_v39 = vpop.eup %8110  ;;  %v6632_v48 = vadd.f32 %v5498_v53, %v9215_v14  ;;  %v5682_v40 = vadd.f32 %v5681_v11, %v5615_v1  ;;  %8132 = vtanh.f32 %v6599_v31  ;;  %5679 = vadd.xlane.f32.xlu1 %v5678_v12  ;;  %v5618_v32 = vmul.f32 %v8109_v52, %v9096_v5 }
 0x4c1   :  { %v6601_v36 = vadd.f32 %v5274_v29, %v9218_v57  ;;  %v5500_v23 = vpop.f32.mrb[115].mxu1  ;;  %v8113_v45 = vpop.eup %8112  ;;  %8134 = vtanh.f32 %v6631_v60  ;;  %v5620_v59 = vmul.f32 %v8111_v39, %v9100_v22 }
 0x4c2   :  { %v6633_v26 = vadd.f32 %v5500_v23, %v9223_v38  ;;  %v8115_v58 = vpop.eup %8114  ;;  %v5683_v37 = vadd.f32 %v5682_v40, %v5616_v7  ;;  %8136 = vtanh.f32 %v6600_v17  ;;  %v5686_v25 = vadd.f32 %v5618_v32, %v5617_v30  ;;  %v5278_v55 = vpop.f32.mrb[116].mxu0 }
 0x4c3   :  { %v8117_v44 = vpop.eup %8116  ;;  %v5621_v15 = vmul.f32 %v8113_v45, %v9104_v28  ;;  %v5623_v24 = vmul.f32 %v8115_v58, %v9108_v20  ;;  %8138 = vtanh.f32 %v6632_v48  ;;  %v6602_v49 = vadd.f32 %v5278_v55, %v9208_v43  ;;  %v5504_v0 = vpop.f32.mrb[116].mxu1 }
 0x4c4   :  { %v8119_v27 = vpop.eup %8118  ;;  %5684 = vadd.xlane.f32.xlu0 %v5683_v37  ;;  %v5622_v5 = vmul.f32 %v8117_v44, %v9112_v18  ;;  %8140 = vtanh.f32 %v6601_v36  ;;  %v5280_v47 = vpop.f32.mrb[117].mxu0  ;;  %v5687_v22 = vadd.f32 %v5686_v25, %v5619_v10  ;;  %v6634_v28 = vadd.f32 %v5504_v0, %v9215_v14 }
 0x4c5   :  { %v8121_v1 = vpop.eup %8120  ;;  %v5624_v50 = vmul.f32 %v8119_v27, %v9116_v33  ;;  %8142 = vtanh.f32 %v6633_v26  ;;  %v6603_v20 = vadd.f32 %v5280_v47, %v9218_v57  ;;  %v5506_v6 = vpop.f32.mrb[117].mxu1 }
 0x4c6   :  { %v8123_v51 = vpop.eup %8122  ;;  %v5282_v9 = vpop.f32.mrb[118].mxu0  ;;  %v5691_v16 = vadd.f32 %v5622_v5, %v5621_v15  ;;  %8144 = vtanh.f32 %v6602_v49  ;;  %v6635_v18 = vadd.f32 %v5506_v6, %v9223_v38  ;;  %v5688_v7 = vadd.f32 %v5687_v22, %v5620_v59 }
 0x4c7   :  { %v8125_v13 = vpop.eup %8124  ;;  %v6604_v56 = vadd.f32 %v5282_v9, %v9208_v43  ;;  %v5508_v34 = vpop.f32.mrb[118].mxu1  ;;  %8146 = vtanh.f32 %v6634_v28  ;;  %v5625_v53 = vmul.f32 %v8121_v1, %v9120_v8  ;;  %v5627_v48 = vmul.f32 %v8123_v51, %v9124_v42 }
 0x4c8   :  { %v5284_v31 = vpop.f32.mrb[119].mxu0  ;;  %v8127_v63 = vpop.eup %8126  ;;  %v6636_v33 = vadd.f32 %v5508_v34, %v9215_v14  ;;  %v5692_v52 = vadd.f32 %v5691_v16, %v5623_v24  ;;  %8148 = vtanh.f32 %v6603_v20  ;;  %5689 = vadd.xlane.f32.xlu1 %v5688_v7  ;;  %v5626_v29 = vmul.f32 %v8125_v13, %v9128_v4 }
 0x4c9   :  { %v6605_v3 = vadd.f32 %v5284_v31, %v9218_v57  ;;  %v5510_v11 = vpop.f32.mrb[119].mxu1  ;;  %v8129_v60 = vpop.eup %8128  ;;  %8150 = vtanh.f32 %v6635_v18  ;;  %v5628_v36 = vmul.f32 %v8127_v63, %v9132_v46  ;;  %v9569_v31 = vld [vmem:[#allocation17_spill] sm:$0xff] }
 0x4ca   :  { %v6637_v17 = vadd.f32 %v5510_v11, %v9223_v38  ;;  %v8131_v12 = vpop.eup %8130  ;;  %v5693_v39 = vadd.f32 %v5692_v52, %v5624_v50  ;;  %8152 = vtanh.f32 %v6604_v56  ;;  %v5696_v40 = vadd.f32 %v5626_v29, %v5625_v53  ;;  %v5288_v8 = vpop.f32.mrb[120].mxu0  ;;  %v9568_v56 = vld [vmem:[#allocation16_spill] sm:$0xff] }
 0x4cb   :  { %v8133_v23 = vpop.eup %8132  ;;  %v5629_v45 = vmul.f32 %v8129_v60, %v9136_v19  ;;  %v5631_v26 = vmul.f32 %v8131_v12, %v9140_v2  ;;  %8154 = vtanh.f32 %v6636_v33  ;;  %v6606_v58 = vadd.f32 %v5288_v8, %v9208_v43  ;;  %v5514_v42 = vpop.f32.mrb[120].mxu1 }
 0x4cc   :  { %v8135_v30 = vpop.eup %8134  ;;  %5694 = vadd.xlane.f32.xlu0 %v5693_v39  ;;  %v5630_v4 = vmul.f32 %v8133_v23, %v9144_v41  ;;  %8156 = vtanh.f32 %v6605_v3  ;;  %v5290_v37 = vpop.f32.mrb[121].mxu0  ;;  %v5697_v46 = vadd.f32 %v5696_v40, %v5627_v48  ;;  %v6638_v19 = vadd.f32 %v5514_v42, %v9215_v14  ;;  %v9570_v3 = vld [vmem:[#allocation18_spill] sm:$0xff] }
 0x4cd   :  { %v8137_v32 = vpop.eup %8136  ;;  %v5632_v10 = vmul.f32 %v8135_v30, %v9148_v62  ;;  %8158 = vtanh.f32 %v6637_v17  ;;  %v6607_v2 = vadd.f32 %v5290_v37, %v9218_v57  ;;  %v5516_v44 = vpop.f32.mrb[121].mxu1  ;;  %v9571_v17 = vld [vmem:[#allocation19_spill] sm:$0xff] }
 0x4ce   :  { %v8139_v59 = vpop.eup %8138  ;;  %v5292_v25 = vpop.f32.mrb[122].mxu0  ;;  %v5701_v15 = vadd.f32 %v5630_v4, %v5629_v45  ;;  %8160 = vtanh.f32 %v6606_v58  ;;  %v6639_v41 = vadd.f32 %v5516_v44, %v9223_v38  ;;  %v5698_v27 = vadd.f32 %v5697_v46, %v5628_v36  ;;  %v9573_v44 = vld [vmem:[#allocation22_spill] sm:$0xff] }
 0x4cf   :  { %v8141_v24 = vpop.eup %8140  ;;  %v6608_v55 = vadd.f32 %v5292_v25, %v9208_v43  ;;  %v5518_v5 = vpop.f32.mrb[122].mxu1  ;;  %8162 = vtanh.f32 %v6638_v19  ;;  %v5633_v28 = vmul.f32 %v8137_v32, %v9152_v21  ;;  %v5635_v16 = vmul.f32 %v8139_v59, %v9156_v61  ;;  %v9572_v19 = vld [vmem:[#allocation20_spill] sm:$0xff] }
 0x4d0   :  { %v5294_v1 = vpop.f32.mrb[123].mxu0  ;;  %v8143_v49 = vpop.eup %8142  ;;  %v6640_v62 = vadd.f32 %v5518_v5, %v9215_v14  ;;  %v5702_v22 = vadd.f32 %v5701_v15, %v5631_v26  ;;  %8164 = vtanh.f32 %v6607_v2  ;;  %5699 = vadd.xlane.f32.xlu1 %v5698_v27  ;;  %v5634_v20 = vmul.f32 %v8141_v24, %v9160_v35  ;;  %v9574_v24 = vld [vmem:[#allocation21_spill] sm:$0xff]  ;;  %v9575_v27 = vld [vmem:[#allocation23_spill] sm:$0xff]  ;;  %v9576_v5 = vld [vmem:[#allocation24_spill] sm:$0xff] }
 0x4d1   :  { %v6609_v0 = vadd.f32 %v5294_v1, %v9218_v57  ;;  %v5520_v47 = vpop.f32.mrb[123].mxu1  ;;  %v8145_v50 = vpop.eup %8144  ;;  %8166 = vtanh.f32 %v6639_v41  ;;  %v5636_v13 = vmul.f32 %v8143_v49, %v9164_v54  ;;  %v9577_v49 = vld [vmem:[#allocation25_spill] sm:$0xff] }
 0x4d2   :  { %v6641_v51 = vadd.f32 %v5520_v47, %v9223_v38  ;;  %v8147_v6 = vpop.eup %8146  ;;  %v5703_v9 = vadd.f32 %v5702_v22, %v5632_v10  ;;  %8168 = vtanh.f32 %v6608_v55  ;;  %v5706_v7 = vadd.f32 %v5634_v20, %v5633_v28  ;;  %v5298_v21 = vpop.f32.mrb[124].mxu0 }
 0x4d3   :  { %v8149_v18 = vpop.eup %8148  ;;  %v5637_v34 = vmul.f32 %v8145_v50, %v9568_v56  ;;  %v5639_v63 = vmul.f32 %v8147_v6, %v9569_v31  ;;  %8170 = vtanh.f32 %v6640_v62  ;;  %v6610_v52 = vadd.f32 %v5298_v21, %v9208_v43  ;;  %v5524_v61 = vpop.f32.mrb[124].mxu1 }
 0x4d4   :  { %v8151_v33 = vpop.eup %8150  ;;  %5704 = vadd.xlane.f32.xlu0 %v5703_v9  ;;  %v5638_v35 = vmul.f32 %v8149_v18, %v9570_v3  ;;  %8172 = vtanh.f32 %v6609_v0  ;;  %v5300_v60 = vpop.f32.mrb[125].mxu0  ;;  %v5707_v54 = vadd.f32 %v5706_v7, %v5635_v16  ;;  %v6642_v12 = vadd.f32 %v5524_v61, %v9215_v14  ;;  %v9580_v9 = vld [vmem:[#allocation28_spill] sm:$0xff]  ;;  %v9581_v7 = vld [vmem:[#allocation29_spill] sm:$0xff]  ;;  %v9583_v3 = vld [vmem:[#allocation31_spill] sm:$0xff] }
 0x4d5   :  { %v8153_v11 = vpop.eup %8152  ;;  %v5640_v53 = vmul.f32 %v8151_v33, %v9571_v17  ;;  %8174 = vtanh.f32 %v6641_v51  ;;  %v6611_v39 = vadd.f32 %v5300_v60, %v9218_v57  ;;  %v5526_v48 = vpop.f32.mrb[125].mxu1  ;;  %v9579_v51 = vld [vmem:[#allocation27_spill] sm:$0xff]  ;;  %v9584_v60 = vld [vmem:[#allocation32_spill] sm:$0xff] }
 0x4d6   :  { %v8155_v29 = vpop.eup %8154  ;;  %v5302_v36 = vpop.f32.mrb[126].mxu0  ;;  %v5711_v23 = vadd.f32 %v5638_v35, %v5637_v34  ;;  %8176 = vtanh.f32 %v6610_v52  ;;  %v6643_v45 = vadd.f32 %v5526_v48, %v9223_v38  ;;  %v5708_v26 = vadd.f32 %v5707_v54, %v5636_v13  ;;  %v9586_v48 = vld [vmem:[#allocation34_spill] sm:$0xff] }
 0x4d7   :  { %v8157_v40 = vpop.eup %8156  ;;  %v6612_v30 = vadd.f32 %v5302_v36, %v9208_v43  ;;  %v5528_v8 = vpop.f32.mrb[126].mxu1  ;;  %8178 = vtanh.f32 %v6642_v12  ;;  %v5641_v2 = vmul.f32 %v8153_v11, %v9572_v19  ;;  %v5643_v41 = vmul.f32 %v8155_v29, %v9574_v24 }
 0x4d8   :  { %v5304_v4 = vpop.f32.mrb[127].mxu0  ;;  %v8159_v32 = vpop.eup %8158  ;;  %v6644_v58 = vadd.f32 %v5528_v8, %v9215_v14  ;;  %v5712_v46 = vadd.f32 %v5711_v23, %v5639_v63  ;;  %8180 = vtanh.f32 %v6611_v39  ;;  %5709 = vadd.xlane.f32.xlu1 %v5708_v26  ;;  %v5642_v25 = vmul.f32 %v8157_v40, %v9573_v44  ;;  %v9582_v63 = vld [vmem:[#allocation30_spill] sm:$0xff]  ;;  %v9587_v40 = vld [vmem:[#allocation35_spill] sm:$0xff] }
 0x4d9   :  { %v6613_v42 = vadd.f32 %v5304_v4, %v9218_v57  ;;  %v5530_v37 = vpop.f32.mrb[127].mxu1  ;;  %v8161_v10 = vpop.eup %8160  ;;  %8182 = vtanh.f32 %v6643_v45  ;;  %v5644_v14 = vmul.f32 %v8159_v32, %v9575_v27  ;;  %v9588_v4 = vld [vmem:[#allocation36_spill] sm:$0xff] }
 0x4da   :  { %v6645_v59 = vadd.f32 %v5530_v37, %v9223_v38  ;;  %v8163_v43 = vpop.eup %8162  ;;  %v5713_v15 = vadd.f32 %v5712_v46, %v5640_v53  ;;  %8184 = vtanh.f32 %v6612_v30  ;;  %v5716_v57 = vadd.f32 %v5642_v25, %v5641_v2  ;;  %v9578_v38 = vld [vmem:[#allocation26_spill] sm:$0xff]  ;;  %v9585_v53 = vld [vmem:[#allocation33_spill] sm:$0xff]  ;;  %v9591_v2 = vld [vmem:[#allocation39_spill] sm:$0xff] }
 0x4db   :  { %v8165_v55 = vpop.eup %8164  ;;  %v5645_v1 = vmul.f32 %v8161_v10, %v9576_v5  ;;  %v5647_v62 = vmul.f32 %v8163_v43, %v9577_v49  ;;  %8186 = vtanh.f32 %v6644_v58 }
 0x4dc   :  { %v8167_v0 = vpop.eup %8166  ;;  %5714 = vadd.xlane.f32.xlu0 %v5713_v15  ;;  %v5646_v47 = vmul.f32 %v8165_v55, %v9578_v38  ;;  %8188 = vtanh.f32 %v6613_v42  ;;  %v5717_v50 = vadd.f32 %v5716_v57, %v5643_v41  ;;  %v9589_v42 = vld [vmem:[#allocation37_spill] sm:$0xff] }
 0x4dd   :  { %v8169_v22 = vpop.eup %8168  ;;  %v5648_v28 = vmul.f32 %v8167_v0, %v9579_v51  ;;  %8190 = vtanh.f32 %v6645_v59  ;;  %v9590_v59 = vld [vmem:[#allocation38_spill] sm:$0xff] }
 0x4de   :  { %v8171_v20 = vpop.eup %8170  ;;  %v5721_v6 = vadd.f32 %v5646_v47, %v5645_v1  ;;  %v5649_v16 = vmul.f32 %v8169_v22, %v9580_v9  ;;  %v5718_v18 = vadd.f32 %v5717_v50, %v5644_v14 }
 0x4df   :  { %v8173_v13 = vpop.eup %8172  ;;  %v5651_v56 = vmul.f32 %v8171_v20, %v9581_v7 }
 0x4e0   :  { %v8175_v34 = vpop.eup %8174  ;;  %v5722_v31 = vadd.f32 %v5721_v6, %v5647_v62  ;;  %v5650_v33 = vmul.f32 %v8173_v13, %v9582_v63  ;;  %5719 = vadd.xlane.f32.xlu1 %v5718_v18 }
 0x4e1   :  { %v8177_v21 = vpop.eup %8176  ;;  %v5652_v35 = vmul.f32 %v8175_v34, %v9583_v3 }
 0x4e2   :  { %v8179_v11 = vpop.eup %8178  ;;  %v5723_v52 = vadd.f32 %v5722_v31, %v5648_v28  ;;  %v5726_v61 = vadd.f32 %v5650_v33, %v5649_v16  ;;  %v5653_v54 = vmul.f32 %v8177_v21, %v9584_v60 }
 0x4e3   :  { %v8181_v17 = vpop.eup %8180  ;;  %v5655_v29 = vmul.f32 %v8179_v11, %v9585_v53 }
 0x4e4   :  { %v8183_v12 = vpop.eup %8182  ;;  %5724 = vadd.xlane.f32.xlu0 %v5723_v52  ;;  %v5727_v39 = vadd.f32 %v5726_v61, %v5651_v56  ;;  %v5654_v36 = vmul.f32 %v8181_v17, %v9586_v48 }
 0x4e5   :  { %v8185_v23 = vpop.eup %8184  ;;  %v5656_v45 = vmul.f32 %v8183_v12, %v9587_v40 }
 0x4e6   :  { %v8187_v26 = vpop.eup %8186  ;;  %v5728_v30 = vadd.f32 %v5727_v39, %v5652_v35  ;;  %v5731_v8 = vadd.f32 %v5654_v36, %v5653_v54  ;;  %v5657_v32 = vmul.f32 %v8185_v23, %v9588_v4 }
 0x4e7   :  { %v8189_v58 = vpop.eup %8188  ;;  %v5659_v37 = vmul.f32 %v8187_v26, %v9589_v42 }
 0x4e8   :  { %v8191_v46 = vpop.eup %8190  ;;  %5729 = vadd.xlane.f32.xlu1 %v5728_v30  ;;  %v5732_v10 = vadd.f32 %v5731_v8, %v5655_v29  ;;  %v5658_v19 = vmul.f32 %v8189_v58, %v9590_v59 }
 0x4e9   :  { %v5660_v44 = vmul.f32 %v8191_v46, %v9591_v2 }
 0x4ea   :  { %v5733_v25 = vadd.f32 %v5732_v10, %v5656_v45  ;;  %v5736_v43 = vadd.f32 %v5658_v19, %v5657_v32 }
 0x4ec   :  { %5734 = vadd.xlane.f32.xlu0 %v5733_v25  ;;  %v5737_v15 = vadd.f32 %v5736_v43, %v5659_v37 }
 0x4ee   :  { %v5738_v24 = vadd.f32 %v5737_v15, %v5660_v44 }
 0x4f0   :  { %5739 = vadd.xlane.f32.xlu1 %v5738_v24 }
 0x540   :  { %v5665_v41 = vpop.xlane.xlu0 %5664 }
 0x541   :  { %v6374_v27 = vmul.f32 -1.442695, %v5665_v41 }
 0x543   :  { %8192 = vpow2.f32 %v6374_v27 }
 0x545   :  { %v5670_v14 = vpop.xlane.xlu0 %5669 }
 0x546   :  { %v6375_v55 = vmul.f32 -1.442695, %v5670_v14 }
 0x548   :  { %8194 = vpow2.f32 %v6375_v55 }
 0x549   :  { %v5675_v57 = vpop.xlane.xlu1 %5674 }
 0x54a   :  { %v6376_v5 = vmul.f32 -1.442695, %v5675_v57 }
 0x54c   :  { %8196 = vpow2.f32 %v6376_v5 }
 0x54d   :  { %v8193_v1 = vpop.eup %8192  ;;  %v5680_v49 = vpop.xlane.xlu1 %5679 }
 0x54e   :  { %v5789_v62 = vadd.f32 1.0, %v8193_v1  ;;  %v6377_v0 = vmul.f32 -1.442695, %v5680_v49 }
 0x550   :  { %8198 = vrcp.f32 %v5789_v62 }
 0x551   :  { %v5685_v38 = vpop.xlane.xlu0 %5684  ;;  %8200 = vpow2.f32 %v6377_v0 }
 0x552   :  { %v6378_v47 = vmul.f32 -1.442695, %v5685_v38  ;;  %v8195_v22 = vpop.eup %8194 }
 0x553   :  { %v5790_v50 = vadd.f32 1.0, %v8195_v22 }
 0x554   :  { %8202 = vpow2.f32 %v6378_v47 }
 0x555   :  { %8204 = vrcp.f32 %v5790_v50  ;;  %v5690_v28 = vpop.xlane.xlu1 %5689 }
 0x556   :  { %v8197_v51 = vpop.eup %8196  ;;  %v6379_v6 = vmul.f32 -1.442695, %v5690_v28 }
 0x557   :  { %v5791_v20 = vadd.f32 1.0, %v8197_v51 }
 0x559   :  { %8206 = vrcp.f32 %v5791_v20  ;;  %v5695_v9 = vpop.xlane.xlu0 %5694 }
 0x55a   :  { %8208 = vpow2.f32 %v6379_v6  ;;  %v6380_v16 = vmul.f32 -1.442695, %v5695_v9  ;;  %v8199_v13 = vpop.eup %8198 }
 0x55b   :  { %v8201_v18 = vpop.eup %8200  ;;  %5838 = vst.msk [vmem:[%s9453_s10] sm:$0xff] %vm5837_vm0, %v8199_v13 }
 0x55c   :  { %8210 = vpow2.f32 %v6380_v16  ;;  %v5792_v7 = vadd.f32 1.0, %v8201_v18 }
 0x55d   :  { %v5700_v34 = vpop.xlane.xlu1 %5699 }
 0x55e   :  { %v8203_v56 = vpop.eup %8202  ;;  %8212 = vrcp.f32 %v5792_v7  ;;  %v6381_v63 = vmul.f32 -1.442695, %v5700_v34 }
 0x55f   :  { %v5793_v31 = vadd.f32 1.0, %v8203_v56  ;;  %v8205_v33 = vpop.eup %8204 }
 0x560   :  { %5839 = vst.msk [vmem:[%s9453_s10 + $0x8] sm:$0xff] %vm5837_vm0, %v8205_v33 }
 0x561   :  { %8214 = vrcp.f32 %v5793_v31  ;;  %v5705_v21 = vpop.xlane.xlu0 %5704 }
 0x562   :  { %8216 = vpow2.f32 %v6381_v63  ;;  %v6382_v3 = vmul.f32 -1.442695, %v5705_v21 }
 0x563   :  { %v8207_v35 = vpop.eup %8206 }
 0x564   :  { %v8209_v11 = vpop.eup %8208  ;;  %5840 = vst.msk [vmem:[%s9453_s10 + $0x10] sm:$0xff] %vm5837_vm0, %v8207_v35  ;;  %8218 = vpow2.f32 %v6382_v3 }
 0x565   :  { %v5794_v52 = vadd.f32 1.0, %v8209_v11  ;;  %v5710_v60 = vpop.xlane.xlu1 %5709 }
 0x566   :  { %v8211_v61 = vpop.eup %8210  ;;  %v6383_v17 = vmul.f32 -1.442695, %v5710_v60 }
 0x567   :  { %8220 = vrcp.f32 %v5794_v52  ;;  %v5795_v54 = vadd.f32 1.0, %v8211_v61 }
 0x568   :  { %v8213_v53 = vpop.eup %8212 }
 0x569   :  { %8222 = vrcp.f32 %v5795_v54  ;;  %v5715_v29 = vpop.xlane.xlu0 %5714  ;;  %5841 = vst.msk [vmem:[%s9453_s10 + $0x18] sm:$0xff] %vm5837_vm0, %v8213_v53 }
 0x56a   :  { %8224 = vpow2.f32 %v6383_v17  ;;  %v6384_v12 = vmul.f32 -1.442695, %v5715_v29 }
 0x56b   :  { %v8215_v39 = vpop.eup %8214 }
 0x56c   :  { %v8217_v48 = vpop.eup %8216  ;;  %5842 = vst.msk [vmem:[%s9453_s10 + $0x20] sm:$0xff] %vm5837_vm0, %v8215_v39  ;;  %8226 = vpow2.f32 %v6384_v12 }
 0x56d   :  { %v5796_v36 = vadd.f32 1.0, %v8217_v48  ;;  %v5720_v40 = vpop.xlane.xlu1 %5719 }
 0x56e   :  { %v8219_v23 = vpop.eup %8218  ;;  %v6385_v26 = vmul.f32 -1.442695, %v5720_v40 }
 0x56f   :  { %8228 = vrcp.f32 %v5796_v36  ;;  %v5797_v45 = vadd.f32 1.0, %v8219_v23 }
 0x571   :  { %v8221_v30 = vpop.eup %8220  ;;  %8230 = vrcp.f32 %v5797_v45  ;;  %v5725_v8 = vpop.xlane.xlu0 %5724 }
 0x572   :  { %5843 = vst.msk [vmem:[%s9453_s10 + $0x28] sm:$0xff] %vm5837_vm0, %v8221_v30  ;;  %8232 = vpow2.f32 %v6385_v26  ;;  %v6386_v4 = vmul.f32 -1.442695, %v5725_v8 }
 0x573   :  { %v8223_v32 = vpop.eup %8222 }
 0x574   :  { %v8225_v58 = vpop.eup %8224  ;;  %5844 = vst.msk [vmem:[%s9453_s10 + $0x30] sm:$0xff] %vm5837_vm0, %v8223_v32  ;;  %8234 = vpow2.f32 %v6386_v4 }
 0x575   :  { %v5798_v42 = vadd.f32 1.0, %v8225_v58  ;;  %v5730_v37 = vpop.xlane.xlu1 %5729 }
 0x576   :  { %v8227_v46 = vpop.eup %8226  ;;  %v6387_v10 = vmul.f32 -1.442695, %v5730_v37 }
 0x577   :  { %8236 = vrcp.f32 %v5798_v42  ;;  %v5799_v59 = vadd.f32 1.0, %v8227_v46 }
 0x578   :  { %8238 = vpow2.f32 %v6387_v10 }
 0x579   :  { %v8229_v19 = vpop.eup %8228  ;;  %8240 = vrcp.f32 %v5799_v59  ;;  %v5735_v2 = vpop.xlane.xlu0 %5734 }
 0x57a   :  { %5845 = vst.msk [vmem:[%s9453_s10 + $0x38] sm:$0xff] %vm5837_vm0, %v8229_v19  ;;  %v6388_v44 = vmul.f32 -1.442695, %v5735_v2 }
 0x57b   :  { %v8231_v25 = vpop.eup %8230 }
 0x57c   :  { %v8233_v43 = vpop.eup %8232  ;;  %5846 = vst.msk [vmem:[%s9453_s10 + $0x40] sm:$0xff] %vm5837_vm0, %v8231_v25  ;;  %8242 = vpow2.f32 %v6388_v44 }
 0x57d   :  { %v5800_v15 = vadd.f32 1.0, %v8233_v43  ;;  %v5740_v24 = vpop.xlane.xlu1 %5739 }
 0x57e   :  { %v8235_v41 = vpop.eup %8234  ;;  %v6389_v27 = vmul.f32 -1.442695, %v5740_v24 }
 0x57f   :  { %8244 = vrcp.f32 %v5800_v15  ;;  %v5801_v14 = vadd.f32 1.0, %v8235_v41 }
 0x580   :  { %8246 = vpow2.f32 %v6389_v27 }
 0x581   :  { %v8237_v55 = vpop.eup %8236  ;;  %8248 = vrcp.f32 %v5801_v14 }
 0x582   :  { %v8239_v57 = vpop.eup %8238  ;;  %5847 = vst.msk [vmem:[%s9453_s10 + $0x48] sm:$0xff] %vm5837_vm0, %v8237_v55 }
 0x583   :  { %v8241_v5 = vpop.eup %8240  ;;  %v5802_v1 = vadd.f32 1.0, %v8239_v57 }
 0x584   :  { %5848 = vst.msk [vmem:[%s9453_s10 + $0x50] sm:$0xff] %vm5837_vm0, %v8241_v5 }
 0x585   :  { %8250 = vrcp.f32 %v5802_v1 }
 0x586   :  { %v8243_v49 = vpop.eup %8242 }
 0x587   :  { %v5803_v62 = vadd.f32 1.0, %v8243_v49 }
 0x589   :  { %v8245_v0 = vpop.eup %8244  ;;  %8252 = vrcp.f32 %v5803_v62 }
 0x58a   :  { %v8247_v38 = vpop.eup %8246  ;;  %5849 = vst.msk [vmem:[%s9453_s10 + $0x58] sm:$0xff] %vm5837_vm0, %v8245_v0 }
 0x58b   :  { %v8249_v47 = vpop.eup %8248  ;;  %v5804_v22 = vadd.f32 1.0, %v8247_v38 }
 0x58c   :  { %5850 = vst.msk [vmem:[%s9453_s10 + $0x60] sm:$0xff] %vm5837_vm0, %v8249_v47 }
 0x58d   :  { %8254 = vrcp.f32 %v5804_v22 }
 0x58f   :  { %v8251_v50 = vpop.eup %8250 }
 0x590   :  { %5851 = vst.msk [vmem:[%s9453_s10 + $0x68] sm:$0xff] %vm5837_vm0, %v8251_v50 }
 0x593   :  { %v8253_v51 = vpop.eup %8252 }
 0x594   :  { %5852 = vst.msk [vmem:[%s9453_s10 + $0x70] sm:$0xff] %vm5837_vm0, %v8253_v51 }
 0x597   :  { %v8255_v28 = vpop.eup %8254 }
 0x598   :  { %5853 = vst.msk [vmem:[%s9453_s10 + $0x78] sm:$0xff] %vm5837_vm0, %v8255_v28 }
 0x599   :  { %5858 = vsyncpa [#allocation3], 1 }
 0x59a   :  { %5859 = vsyncpa [#allocation5], 1 }
 0x59b   :  { %5860 = vsyncpa [#allocation8], 1 }
 0x59c   :  { %5861 = vsyncpa [#allocation11], 1 }

</bundles_post_ra>
